<compile_context>
chip_gen: v6e
topology: v6e:2x2x1
jax: 0.10.0
libtpu: 0.0.40
codegen_flags: <defaults>
</compile_context>

<pallas_src>
import functools
import math

import jax
import jax.numpy as jnp
from jax import lax
from jax.experimental import pallas as pl
from jax.experimental.pallas import tpu as pltpu


# ----------------------------------------------------------------------------
# Helpers
# ----------------------------------------------------------------------------
def _round_up(x, m):
    return ((x + m - 1) // m) * m


@functools.lru_cache(maxsize=1)
def _vmem_limit_bytes():
    """~3/4 of this generation's physical VMEM (64 MiB on v7x, 128 MiB on v5e/v6e)."""
    cap = 64 * 1024 * 1024
    try:
        info = pltpu.get_tpu_info()
        cap = int(getattr(info, "vmem_capacity_bytes", cap))
    except Exception:
        pass
    return (cap * 3) // 4


def _pick_time_chunk(T, Bp, in_dim, H, in_bytes, out_bytes):
    """Largest divisor of T whose chunked working set fits the per-generation VMEM budget."""
    limit = _vmem_limit_bytes()
    fixed = (T * Bp * 2 * H * out_bytes          # VMEM-resident lane-concatenated output
             + 2 * in_dim * 8 * H * in_bytes     # input-projection weights (both directions)
             + 2 * H * 8 * H * in_bytes          # fused block-diagonal hidden weights
             + 4 * 1024 * 1024)                  # headroom: bias, state, pipeline bookkeeping
    budget = max(limit - fixed, 0)
    per_step = (2 * 2 * Bp * in_dim * in_bytes   # xf + xb windows, double-buffered
                + 2 * Bp * 8 * H * 4)            # gxf + gxb fp32 scratch
    chunk = 1
    for c in range(1, T + 1):
        if T % c == 0 and c * per_step <= budget:
            chunk = c
    return chunk


# ----------------------------------------------------------------------------
# Fused bidirectional-LSTM layer kernel (directions + input projection fused)
# ----------------------------------------------------------------------------
def _bilstm_layer_kernel(xf_ref, xb_ref, wf_ref, wb_ref, whh_ref, b_ref, out_ref,
                         gxf_scr, gxb_scr, h_scr, c_scr):
    """One bidirectional LSTM layer; grid = (time_chunks,), processed sequentially.

    xf_ref : (chunk*Bp, Din)  x rows of chunk c            (forward processing order)
    xb_ref : (chunk*Bp, Din)  x rows of chunk nc-1-c       (consumed in reverse inside)
    wf_ref : (Din, 8H)  forward  W_ih spread into the fused gate layout (bwd sub-cols zero)
    wb_ref : (Din, 8H)  backward W_ih spread into the fused gate layout (fwd sub-cols zero)
    whh_ref: (2H, 8H)   block-diagonal W_hh acting on the fused [h_f | h_b] state
    b_ref  : (1, 8H)    fused bias (b_ih + b_hh, both directions), fp32
    out_ref: (T*Bp, 2H) lane-concatenated [h_f | h_b]; VMEM-resident for the whole grid
    gxf/gxb_scr : (chunk*Bp, 8H) fp32 per-chunk gate pre-activations
    h_scr, c_scr: (Bp, 2H) fp32 fused recurrent state (persists across chunks)

    Fused gate layout along the 8H lanes: [i_f i_b | f_f f_b | g_f g_b | o_f o_b].
    """
    Bp, H2 = h_scr.shape
    H = H2 // 2
    chunk = gxf_scr.shape[0] // Bp
    T = out_ref.shape[0] // Bp
    c_idx = pl.program_id(0)

    @pl.when(c_idx == 0)
    def _():
        h_scr[...] = jnp.zeros_like(h_scr)
        c_scr[...] = jnp.zeros_like(c_scr)

    # Bulk per-chunk input projection for both directions (one MXU GEMM each, fp32 accumulate,
    # bias folded in).  Replaces the old HBM-resident gx tensor entirely.
    gxf_scr[...] = jnp.dot(xf_ref[...], wf_ref[...],
                           preferred_element_type=jnp.float32) + b_ref[...]
    gxb_scr[...] = jnp.dot(xb_ref[...], wb_ref[...],
                           preferred_element_type=jnp.float32)

    whh = whh_ref[...]                      # hoisted: loaded once per chunk, not per step
    base = c_idx * chunk                    # forward-direction global time of step i == 0

    def step(i):
        rf = pl.multiple_of(i * Bp, Bp)
        rb = pl.multiple_of((chunk - 1 - i) * Bp, Bp)
        gates = (gxf_scr[pl.ds(rf, Bp), :] + gxb_scr[pl.ds(rb, Bp), :]
                 + jnp.dot(h_scr[...].astype(whh.dtype), whh,
                           preferred_element_type=jnp.float32))
        sig = jax.nn.sigmoid(gates)                       # one full-width EUP pass (i, f, o)
        g_act = jnp.tanh(gates[:, 2 * H2:3 * H2])         # tanh only on the candidate lanes
        c_new = sig[:, H2:2 * H2] * c_scr[...] + sig[:, 0:H2] * g_act
        h_new = sig[:, 3 * H2:4 * H2] * jnp.tanh(c_new)
        h_scr[...] = h_new
        c_scr[...] = c_new
        tf = base + i                                     # forward output time index
        tb = T - 1 - tf                                   # backward output time index
        out_ref[pl.ds(pl.multiple_of(tf * Bp, Bp), Bp),
                pl.ds(0, H)] = h_new[:, 0:H].astype(out_ref.dtype)
        out_ref[pl.ds(pl.multiple_of(tb * Bp, Bp), Bp),
                pl.ds(H, H)] = h_new[:, H:H2].astype(out_ref.dtype)

    unroll = next(u for u in (8, 4, 2, 1) if chunk % u == 0)

    def body(j, carry):
        for u in range(unroll):             # manual unroll for LLO scheduler visibility
            step(j * unroll + u)
        return carry

    lax.fori_loop(0, chunk // unroll, body, 0)


def run_bilstm_layer(x2d, wf, wb, whh, b, T, Bp, out_dtype):
    """x2d: (T*Bp, Din) time-major rows -> (T*Bp, 2H) lane-concatenated [h_f | h_b]."""
    M, Din = x2d.shape
    H2 = whh.shape[0]
    H = H2 // 2
    in_bytes = jnp.dtype(x2d.dtype).itemsize
    out_bytes = jnp.dtype(out_dtype).itemsize
    chunk = _pick_time_chunk(T, Bp, Din, H, in_bytes, out_bytes)
    nc = T // chunk
    rows = chunk * Bp

    return pl.pallas_call(
        _bilstm_layer_kernel,
        out_shape=jax.ShapeDtypeStruct((M, H2), out_dtype),
        grid=(nc,),
        in_specs=[
            pl.BlockSpec((rows, Din), lambda c: (c, 0)),            # forward x window
            pl.BlockSpec((rows, Din), lambda c: (nc - 1 - c, 0)),   # backward x window
            pl.BlockSpec((Din, 8 * H), lambda c: (0, 0)),
            pl.BlockSpec((Din, 8 * H), lambda c: (0, 0)),
            pl.BlockSpec((H2, 8 * H), lambda c: (0, 0)),
            pl.BlockSpec((1, 8 * H), lambda c: (0, 0)),
        ],
        # Output is resident in VMEM across the whole (sequential) grid: fwd rows of chunk c and
        # bwd rows of chunk nc-1-c are written each step; written back to HBM once at the end.
        out_specs=pl.BlockSpec((M, H2), lambda c: (0, 0)),
        scratch_shapes=[
            pltpu.VMEM((rows, 8 * H), jnp.float32),   # gxf (fwd gate pre-activations)
            pltpu.VMEM((rows, 8 * H), jnp.float32),   # gxb (bwd gate pre-activations)
            pltpu.VMEM((Bp, H2), jnp.float32),        # fused h state [h_f | h_b]
            pltpu.VMEM((Bp, H2), jnp.float32),        # fused c state [c_f | c_b]
        ],
        compiler_params=pltpu.CompilerParams(
            dimension_semantics=("arbitrary",),
            vmem_limit_bytes=_vmem_limit_bytes()),
    )(x2d, x2d, wf, wb, whh, b)


# ----------------------------------------------------------------------------
# Final FC projection (row-tiled GEMM, vocab padded to 128 lanes)
# ----------------------------------------------------------------------------
def _fc_kernel(x_ref, w_ref, b_ref, o_ref):
    o_ref[...] = (jnp.dot(x_ref[...], w_ref[...], preferred_element_type=jnp.float32)
                  + b_ref[...]).astype(o_ref.dtype)


def run_fc(x2d, w, b):
    M, K = x2d.shape
    Vp = w.shape[1]
    tm = 512                                  # large, HBM-roofline-friendly row tile
    if M <= tm:
        tm, Mp = M, M
    else:
        Mp = _round_up(M, tm)
        if Mp != M:                           # pad rows instead of falling back to one block
            x2d = jnp.pad(x2d, ((0, Mp - M), (0, 0)))
    out = pl.pallas_call(
        _fc_kernel,
        out_shape=jax.ShapeDtypeStruct((Mp, Vp), jnp.float32),
        grid=(Mp // tm,),
        in_specs=[
            pl.BlockSpec((tm, K), lambda m: (m, 0)),
            pl.BlockSpec((K, Vp), lambda m: (0, 0)),
            pl.BlockSpec((1, Vp), lambda m: (0, 0)),
        ],
        out_specs=pl.BlockSpec((tm, Vp), lambda m: (m, 0)),
        compiler_params=pltpu.CompilerParams(
            dimension_semantics=("parallel",),
            vmem_limit_bytes=_vmem_limit_bytes()),
    )(x2d, w, b)
    return out[:M]


# ----------------------------------------------------------------------------
# Forward pass
# ----------------------------------------------------------------------------
def speech_model_forward(x, packed, *, vocab_size):
    """x: (B, T, input_dim) float32 -> logits (B, T, vocab_size) float32."""
    B, T, Din = x.shape
    cdt = packed["lstm"][0]["wf"].dtype                 # compute/stream dtype (f32 or bf16)
    bpad = 16 if jnp.dtype(cdt).itemsize == 2 else 8    # bf16 packs two rows per sublane
    Bp = _round_up(B, bpad)
    if Bp != B:
        x = jnp.pad(x, ((0, Bp - B), (0, 0), (0, 0)))
    h = jnp.transpose(x, (1, 0, 2)).astype(cdt).reshape(T * Bp, Din)   # time-major rows

    for layer in packed["lstm"]:
        h = run_bilstm_layer(h, layer["wf"], layer["wb"], layer["whh"], layer["b"],
                             T, Bp, cdt)                               # (M, 2H) [h_f | h_b]

    logits = run_fc(h, packed["fc_w"], packed["fc_b"])                 # (M, Vp) fp32
    logits = logits[:, :vocab_size].reshape(T, Bp, vocab_size)[:, :B]
    return jnp.transpose(logits, (1, 0, 2))


# ----------------------------------------------------------------------------
# Parameter init (PyTorch-compatible shapes/init) and kernel-friendly packing
# ----------------------------------------------------------------------------
def init_params(key, input_dim, hidden_dim, vocab_size, num_layers=2):
    def uniform(k, shape, bound):
        return jax.random.uniform(k, shape, jnp.float32, -bound, bound)

    bound = 1.0 / math.sqrt(hidden_dim)
    layers = []
    in_dim = input_dim
    for _ in range(num_layers):
        dirs = {}
        for d in ("fwd", "bwd"):
            key, k1, k2, k3, k4 = jax.random.split(key, 5)
            wih = uniform(k1, (in_dim, 4 * hidden_dim), bound)      # transposed vs PyTorch
            whh = uniform(k2, (hidden_dim, 4 * hidden_dim), bound)
            b_ih = uniform(k3, (1, 4 * hidden_dim), bound)
            b_hh = uniform(k4, (1, 4 * hidden_dim), bound)
            dirs[d] = (wih, whh, b_ih + b_hh)
        layers.append(dirs)
        in_dim = 2 * hidden_dim

    key, k1, k2 = jax.random.split(key, 3)
    fc_bound = 1.0 / math.sqrt(2 * hidden_dim)
    fc_w = uniform(k1, (2 * hidden_dim, vocab_size), fc_bound)
    fc_b = uniform(k2, (1, vocab_size), fc_bound)
    return {"lstm": layers, "fc_w": fc_w, "fc_b": fc_b}


def _spread(w, h, direction):
    """(K, 4H) gate-major [i f g o] -> (K, 8H) fused layout [i_f i_b f_f f_b g_f g_b o_f o_b],
    with the other direction's sub-columns zeroed (gives the block-diagonal structure)."""
    K = w.shape[0]
    w4 = w.reshape(K, 4, h)
    z = jnp.zeros_like(w4)
    parts = (w4, z) if direction == "fwd" else (z, w4)
    return jnp.stack(parts, axis=2).reshape(K, 8 * h)


def pack_params(params, compute_dtype=jnp.float32):
    """Spread both directions into the fused gate layout; pad vocab to 128 lanes."""
    packed_layers = []
    for layer in params["lstm"]:
        wih_f, whh_f, b_f = layer["fwd"]
        wih_b, whh_b, b_b = layer["bwd"]
        H = whh_f.shape[0]
        packed_layers.append({
            "wf": _spread(wih_f, H, "fwd").astype(compute_dtype),          # (Din, 8H)
            "wb": _spread(wih_b, H, "bwd").astype(compute_dtype),          # (Din, 8H)
            "whh": jnp.concatenate([_spread(whh_f, H, "fwd"),
                                    _spread(whh_b, H, "bwd")],
                                   axis=0).astype(compute_dtype),          # (2H, 8H) block-diag
            "b": (_spread(b_f, H, "fwd")
                  + _spread(b_b, H, "bwd")).astype(jnp.float32),           # (1, 8H) fp32
        })

    fc_w, fc_b = params["fc_w"], params["fc_b"]
    V = fc_w.shape[1]
    Vp = _round_up(V, 128)
    return {
        "lstm": packed_layers,
        "fc_w": jnp.pad(fc_w, ((0, 0), (0, Vp - V))).astype(compute_dtype),
        "fc_b": jnp.pad(fc_b, ((0, 0), (0, Vp - V))).astype(jnp.float32),
    }


# ----------------------------------------------------------------------------
# Pure-JAX reference (matches PyTorch LSTM semantics)
# ----------------------------------------------------------------------------
def _lstm_dir_ref(x_tmaj, wih, whh, b, reverse):
    T, B, _ = x_tmaj.shape
    H = whh.shape[0]
    xs = x_tmaj[::-1] if reverse else x_tmaj

    def step(carry, x_t):
        h, c = carry
        g = x_t @ wih + h @ whh + b
        i = jax.nn.sigmoid(g[:, :H])
        f = jax.nn.sigmoid(g[:, H:2 * H])
        gg = jnp.tanh(g[:, 2 * H:3 * H])
        o = jax.nn.sigmoid(g[:, 3 * H:])
        c = f * c + i * gg
        h = o * jnp.tanh(c)
        return (h, c), h

    init = (jnp.zeros((B, H), jnp.float32), jnp.zeros((B, H), jnp.float32))
    _, hs = lax.scan(step, init, xs)
    return hs[::-1] if reverse else hs


def speech_model_ref(x, params):
    h = jnp.transpose(x, (1, 0, 2))
    for layer in params["lstm"]:
        fwd = _lstm_dir_ref(h, *layer["fwd"], reverse=False)
        bwd = _lstm_dir_ref(h, *layer["bwd"], reverse=True)
        h = jnp.concatenate([fwd, bwd], axis=-1)
    out = h @ params["fc_w"] + params["fc_b"]
    return jnp.transpose(out, (1, 0, 2))


# ----------------------------------------------------------------------------
if __name__ == "__main__":
    B, T = 2, 8
    input_dim, hidden_dim, vocab_size = 16, 32, 20

    key = jax.random.PRNGKey(0)
    key, pkey, xkey = jax.random.split(key, 3)
    params = init_params(pkey, input_dim, hidden_dim, vocab_size)
    x = jax.random.normal(xkey, (B, T, input_dim), jnp.float32)

    fwd = jax.jit(functools.partial(speech_model_forward, vocab_size=vocab_size))
    ref = speech_model_ref(x, params)

    # fp32 path: strict correctness check against the pure-JAX reference.
    out = jax.block_until_ready(fwd(x, pack_params(params, jnp.float32)))
    assert out.shape == (B, T, vocab_size), out.shape
    assert jnp.allclose(out, ref, atol=1e-4, rtol=1e-4), float(jnp.abs(out - ref).max())

    # bf16 weights/activations (fp32 gate math, state and accumulation): loose accuracy check.
    out_bf16 = jax.block_until_ready(fwd(x, pack_params(params, jnp.bfloat16)))
    assert out_bf16.shape == (B, T, vocab_size), out_bf16.shape
    err = float(jnp.max(jnp.abs(out_bf16.astype(jnp.float32) - ref)))
    assert err < 0.1, err

    print("KERNEL_OK")
</pallas_src>

<mosaic_0001>
module attributes {stable_mosaic.version = 11 : i64} {
  func.func @_bilstm_layer_kernel(%arg0: i32, %arg1: memref<64x64xf32, #tpu.memory_space<vmem>>, %arg2: memref<64x64xf32, #tpu.memory_space<vmem>>, %arg3: memref<64x256xf32, #tpu.memory_space<vmem>>, %arg4: memref<64x256xf32, #tpu.memory_space<vmem>>, %arg5: memref<64x256xf32, #tpu.memory_space<vmem>>, %arg6: memref<1x256xf32, #tpu.memory_space<vmem>>, %arg7: memref<64x64xf32, #tpu.memory_space<vmem>>, %arg8: memref<64x256xf32, #tpu.memory_space<vmem>>, %arg9: memref<64x256xf32, #tpu.memory_space<vmem>>, %arg10: memref<8x64xf32, #tpu.memory_space<vmem>>, %arg11: memref<8x64xf32, #tpu.memory_space<vmem>>) attributes {dimension_semantics = [#tpu.dimension_semantics<arbitrary>], iteration_bounds = array<i64: 1>, scalar_prefetch = 0 : i64, scratch_operands = 4 : i64, tpu.core_type = #tpu.core_type<tc>, window_params = [{transform_indices = @transform_0, window_bounds = array<i64: 64, 64>}, {transform_indices = @transform_1, window_bounds = array<i64: 64, 64>}, {pipeline_mode = #tpu.pipeline_mode<synchronous>, transform_indices = @transform_2, window_bounds = array<i64: 64, 256>}, {pipeline_mode = #tpu.pipeline_mode<synchronous>, transform_indices = @transform_3, window_bounds = array<i64: 64, 256>}, {pipeline_mode = #tpu.pipeline_mode<synchronous>, transform_indices = @transform_4, window_bounds = array<i64: 64, 256>}, {pipeline_mode = #tpu.pipeline_mode<synchronous>, transform_indices = @transform_5, window_bounds = array<i64: 1, 256>}, {pipeline_mode = #tpu.pipeline_mode<synchronous>, transform_indices = @transform_6, window_bounds = array<i64: 64, 64>}]} {
    %c0_i32 = arith.constant 0 : i32
    %0 = arith.cmpi eq, %arg0, %c0_i32 : i32
    %1 = arith.extui %0 : i1 to i32
    %c0_i32_0 = arith.constant 0 : i32
    %2 = arith.cmpi ne, %1, %c0_i32_0 : i32
    scf.if %2 {
      %cst_187 = arith.constant 0.000000e+00 : f32
      %376 = vector.broadcast %cst_187 : f32 to vector<8x64xf32>
      %c0_188 = arith.constant 0 : index
      %c0_189 = arith.constant 0 : index
      %377 = vector.load %arg10[%c0_188, %c0_189] : memref<8x64xf32, #tpu.memory_space<vmem>>, vector<8x64xf32>
      tpu.vector_store %arg10[%c0_188, %c0_189], %376 {strides = array<i32>} : memref<8x64xf32, #tpu.memory_space<vmem>>, vector<8x64xf32>,
      %cst_190 = arith.constant 0.000000e+00 : f32
      %378 = vector.broadcast %cst_190 : f32 to vector<8x64xf32>
      %c0_191 = arith.constant 0 : index
      %c0_192 = arith.constant 0 : index
      %379 = vector.load %arg11[%c0_191, %c0_192] : memref<8x64xf32, #tpu.memory_space<vmem>>, vector<8x64xf32>
      tpu.vector_store %arg11[%c0_191, %c0_192], %378 {strides = array<i32>} : memref<8x64xf32, #tpu.memory_space<vmem>>, vector<8x64xf32>,
    } else {
    }
    %c0 = arith.constant 0 : index
    %c0_1 = arith.constant 0 : index
    %3 = vector.load %arg1[%c0, %c0_1] : memref<64x64xf32, #tpu.memory_space<vmem>>, vector<64x64xf32>
    %c0_2 = arith.constant 0 : index
    %c0_3 = arith.constant 0 : index
    %4 = vector.load %arg3[%c0_2, %c0_3] : memref<64x256xf32, #tpu.memory_space<vmem>>, vector<64x256xf32>
    %cst = arith.constant dense<0.000000e+00> : vector<64x256xf32>
    %5 = tpu.matmul %3, %4, %cst {dimension_numbers = #tpu.dot_dimension_numbers<[1], [0], [0], [1], [0, 0, 1, 1], [], []>} : vector<64x64xf32>, vector<64x256xf32>, vector<64x256xf32> -> vector<64x256xf32>
    %c0_4 = arith.constant 0 : index
    %c0_5 = arith.constant 0 : index
    %6 = vector.load %arg6[%c0_4, %c0_5] : memref<1x256xf32, #tpu.memory_space<vmem>>, vector<1x256xf32>
    %7 = vector.broadcast %6 : vector<1x256xf32> to vector<64x256xf32>
    %8 = arith.addf %5, %7 : vector<64x256xf32>
    %c0_6 = arith.constant 0 : index
    %c0_7 = arith.constant 0 : index
    %9 = vector.load %arg8[%c0_6, %c0_7] : memref<64x256xf32, #tpu.memory_space<vmem>>, vector<64x256xf32>
    tpu.vector_store %arg8[%c0_6, %c0_7], %8 {strides = array<i32>} : memref<64x256xf32, #tpu.memory_space<vmem>>, vector<64x256xf32>,
    %c0_8 = arith.constant 0 : index
    %c0_9 = arith.constant 0 : index
    %10 = vector.load %arg2[%c0_8, %c0_9] : memref<64x64xf32, #tpu.memory_space<vmem>>, vector<64x64xf32>
    %c0_10 = arith.constant 0 : index
    %c0_11 = arith.constant 0 : index
    %11 = vector.load %arg4[%c0_10, %c0_11] : memref<64x256xf32, #tpu.memory_space<vmem>>, vector<64x256xf32>
    %cst_12 = arith.constant dense<0.000000e+00> : vector<64x256xf32>
    %12 = tpu.matmul %10, %11, %cst_12 {dimension_numbers = #tpu.dot_dimension_numbers<[1], [0], [0], [1], [0, 0, 1, 1], [], []>} : vector<64x64xf32>, vector<64x256xf32>, vector<64x256xf32> -> vector<64x256xf32>
    %c0_13 = arith.constant 0 : index
    %c0_14 = arith.constant 0 : index
    %13 = vector.load %arg9[%c0_13, %c0_14] : memref<64x256xf32, #tpu.memory_space<vmem>>, vector<64x256xf32>
    tpu.vector_store %arg9[%c0_13, %c0_14], %12 {strides = array<i32>} : memref<64x256xf32, #tpu.memory_space<vmem>>, vector<64x256xf32>,
    %c0_15 = arith.constant 0 : index
    %c0_16 = arith.constant 0 : index
    %14 = vector.load %arg5[%c0_15, %c0_16] : memref<64x256xf32, #tpu.memory_space<vmem>>, vector<64x256xf32>
    %c8_i32 = arith.constant 8 : i32
    %15 = arith.muli %arg0, %c8_i32 : i32
    %c0_i32_17 = arith.constant 0 : i32
    %c8_i32_18 = arith.constant 8 : i32
    %16 = arith.muli %c0_i32_17, %c8_i32_18 : i32
    %c0_i32_19 = arith.constant 0 : i32
    %17 = arith.addi %16, %c0_i32_19 : i32
    %c8_i32_20 = arith.constant 8 : i32
    %18 = arith.muli %17, %c8_i32_20 : i32
    %19 = tpu.assume_multiple %18, 8 : i32
    %c7_i32 = arith.constant 7 : i32
    %20 = arith.subi %c7_i32, %17 : i32
    %c8_i32_21 = arith.constant 8 : i32
    %21 = arith.muli %20, %c8_i32_21 : i32
    %22 = tpu.assume_multiple %21, 8 : i32
    %23 = arith.index_cast %19 : i32 to index
    %c0_22 = arith.constant 0 : index
    %24 = vector.load %arg8[%23, %c0_22] : memref<64x256xf32, #tpu.memory_space<vmem>>, vector<8x256xf32>
    %25 = arith.index_cast %22 : i32 to index
    %c0_23 = arith.constant 0 : index
    %26 = vector.load %arg9[%25, %c0_23] : memref<64x256xf32, #tpu.memory_space<vmem>>, vector<8x256xf32>
    %27 = arith.addf %24, %26 : vector<8x256xf32>
    %c0_24 = arith.constant 0 : index
    %c0_25 = arith.constant 0 : index
    %28 = vector.load %arg10[%c0_24, %c0_25] : memref<8x64xf32, #tpu.memory_space<vmem>>, vector<8x64xf32>
    %cst_26 = arith.constant dense<0.000000e+00> : vector<8x256xf32>
    %29 = tpu.matmul %28, %14, %cst_26 {dimension_numbers = #tpu.dot_dimension_numbers<[1], [0], [0], [1], [0, 0, 1, 1], [], []>} : vector<8x64xf32>, vector<64x256xf32>, vector<8x256xf32> -> vector<8x256xf32>
    %30 = arith.addf %27, %29 : vector<8x256xf32>
    %31 = arith.negf %30 : vector<8x256xf32>
    %32 = math.exp %31 : vector<8x256xf32>
    %cst_27 = arith.constant 1.000000e+00 : f32
    %33 = vector.broadcast %cst_27 : f32 to vector<8x256xf32>
    %34 = arith.addf %33, %32 : vector<8x256xf32>
    %35 = arith.divf %33, %34 : vector<8x256xf32>
    %36 = vector.extract_strided_slice %30 {offsets = [0, 128], sizes = [8, 64], strides = [1, 1]} : vector<8x256xf32> to vector<8x64xf32>
    %37 = math.tanh %36 : vector<8x64xf32>
    %38 = vector.extract_strided_slice %35 {offsets = [0, 64], sizes = [8, 64], strides = [1, 1]} : vector<8x256xf32> to vector<8x64xf32>
    %c0_28 = arith.constant 0 : index
    %c0_29 = arith.constant 0 : index
    %39 = vector.load %arg11[%c0_28, %c0_29] : memref<8x64xf32, #tpu.memory_space<vmem>>, vector<8x64xf32>
    %40 = arith.mulf %38, %39 : vector<8x64xf32>
    %41 = vector.extract_strided_slice %35 {offsets = [0, 0], sizes = [8, 64], strides = [1, 1]} : vector<8x256xf32> to vector<8x64xf32>
    %42 = arith.mulf %41, %37 : vector<8x64xf32>
    %43 = arith.addf %40, %42 : vector<8x64xf32>
    %44 = vector.extract_strided_slice %35 {offsets = [0, 192], sizes = [8, 64], strides = [1, 1]} : vector<8x256xf32> to vector<8x64xf32>
    %45 = math.tanh %43 : vector<8x64xf32>
    %46 = arith.mulf %44, %45 : vector<8x64xf32>
    %c0_30 = arith.constant 0 : index
    %c0_31 = arith.constant 0 : index
    %47 = vector.load %arg10[%c0_30, %c0_31] : memref<8x64xf32, #tpu.memory_space<vmem>>, vector<8x64xf32>
    tpu.vector_store %arg10[%c0_30, %c0_31], %46 {strides = array<i32>} : memref<8x64xf32, #tpu.memory_space<vmem>>, vector<8x64xf32>,
    %c0_32 = arith.constant 0 : index
    %c0_33 = arith.constant 0 : index
    %48 = vector.load %arg11[%c0_32, %c0_33] : memref<8x64xf32, #tpu.memory_space<vmem>>, vector<8x64xf32>
    tpu.vector_store %arg11[%c0_32, %c0_33], %43 {strides = array<i32>} : memref<8x64xf32, #tpu.memory_space<vmem>>, vector<8x64xf32>,
    %49 = arith.addi %15, %17 : i32
    %c7_i32_34 = arith.constant 7 : i32
    %50 = arith.subi %c7_i32_34, %49 : i32
    %51 = vector.extract_strided_slice %46 {offsets = [0, 0], sizes = [8, 32], strides = [1, 1]} : vector<8x64xf32> to vector<8x32xf32>
    %c8_i32_35 = arith.constant 8 : i32
    %52 = arith.muli %49, %c8_i32_35 : i32
    %53 = tpu.assume_multiple %52, 8 : i32
    %54 = arith.index_cast %53 : i32 to index
    %c0_36 = arith.constant 0 : index
    %55 = vector.load %arg7[%54, %c0_36] : memref<64x64xf32, #tpu.memory_space<vmem>>, vector<8x32xf32>
    tpu.vector_store %arg7[%54, %c0_36], %51 {strides = array<i32>} : memref<64x64xf32, #tpu.memory_space<vmem>>, vector<8x32xf32>,
    %56 = vector.extract_strided_slice %46 {offsets = [0, 32], sizes = [8, 32], strides = [1, 1]} : vector<8x64xf32> to vector<8x32xf32>
    %c8_i32_37 = arith.constant 8 : i32
    %57 = arith.muli %50, %c8_i32_37 : i32
    %58 = tpu.assume_multiple %57, 8 : i32
    %59 = arith.index_cast %58 : i32 to index
    %c32 = arith.constant 32 : index
    %60 = vector.load %arg7[%59, %c32] : memref<64x64xf32, #tpu.memory_space<vmem>>, vector<8x32xf32>
    tpu.vector_store %arg7[%59, %c32], %56 {strides = array<i32>} : memref<64x64xf32, #tpu.memory_space<vmem>>, vector<8x32xf32>,
    %c8_i32_38 = arith.constant 8 : i32
    %61 = arith.muli %c0_i32_17, %c8_i32_38 : i32
    %c1_i32 = arith.constant 1 : i32
    %62 = arith.addi %61, %c1_i32 : i32
    %c8_i32_39 = arith.constant 8 : i32
    %63 = arith.muli %62, %c8_i32_39 : i32
    %64 = tpu.assume_multiple %63, 8 : i32
    %c7_i32_40 = arith.constant 7 : i32
    %65 = arith.subi %c7_i32_40, %62 : i32
    %c8_i32_41 = arith.constant 8 : i32
    %66 = arith.muli %65, %c8_i32_41 : i32
    %67 = tpu.assume_multiple %66, 8 : i32
    %68 = arith.index_cast %64 : i32 to index
    %c0_42 = arith.constant 0 : index
    %69 = vector.load %arg8[%68, %c0_42] : memref<64x256xf32, #tpu.memory_space<vmem>>, vector<8x256xf32>
    %70 = arith.index_cast %67 : i32 to index
    %c0_43 = arith.constant 0 : index
    %71 = vector.load %arg9[%70, %c0_43] : memref<64x256xf32, #tpu.memory_space<vmem>>, vector<8x256xf32>
    %72 = arith.addf %69, %71 : vector<8x256xf32>
    %c0_44 = arith.constant 0 : index
    %c0_45 = arith.constant 0 : index
    %73 = vector.load %arg10[%c0_44, %c0_45] : memref<8x64xf32, #tpu.memory_space<vmem>>, vector<8x64xf32>
    %cst_46 = arith.constant dense<0.000000e+00> : vector<8x256xf32>
    %74 = tpu.matmul %73, %14, %cst_46 {dimension_numbers = #tpu.dot_dimension_numbers<[1], [0], [0], [1], [0, 0, 1, 1], [], []>} : vector<8x64xf32>, vector<64x256xf32>, vector<8x256xf32> -> vector<8x256xf32>
    %75 = arith.addf %72, %74 : vector<8x256xf32>
    %76 = arith.negf %75 : vector<8x256xf32>
    %77 = math.exp %76 : vector<8x256xf32>
    %cst_47 = arith.constant 1.000000e+00 : f32
    %78 = vector.broadcast %cst_47 : f32 to vector<8x256xf32>
    %79 = arith.addf %78, %77 : vector<8x256xf32>
    %80 = arith.divf %78, %79 : vector<8x256xf32>
    %81 = vector.extract_strided_slice %75 {offsets = [0, 128], sizes = [8, 64], strides = [1, 1]} : vector<8x256xf32> to vector<8x64xf32>
    %82 = math.tanh %81 : vector<8x64xf32>
    %83 = vector.extract_strided_slice %80 {offsets = [0, 64], sizes = [8, 64], strides = [1, 1]} : vector<8x256xf32> to vector<8x64xf32>
    %c0_48 = arith.constant 0 : index
    %c0_49 = arith.constant 0 : index
    %84 = vector.load %arg11[%c0_48, %c0_49] : memref<8x64xf32, #tpu.memory_space<vmem>>, vector<8x64xf32>
    %85 = arith.mulf %83, %84 : vector<8x64xf32>
    %86 = vector.extract_strided_slice %80 {offsets = [0, 0], sizes = [8, 64], strides = [1, 1]} : vector<8x256xf32> to vector<8x64xf32>
    %87 = arith.mulf %86, %82 : vector<8x64xf32>
    %88 = arith.addf %85, %87 : vector<8x64xf32>
    %89 = vector.extract_strided_slice %80 {offsets = [0, 192], sizes = [8, 64], strides = [1, 1]} : vector<8x256xf32> to vector<8x64xf32>
    %90 = math.tanh %88 : vector<8x64xf32>
    %91 = arith.mulf %89, %90 : vector<8x64xf32>
    %c0_50 = arith.constant 0 : index
    %c0_51 = arith.constant 0 : index
    %92 = vector.load %arg10[%c0_50, %c0_51] : memref<8x64xf32, #tpu.memory_space<vmem>>, vector<8x64xf32>
    tpu.vector_store %arg10[%c0_50, %c0_51], %91 {strides = array<i32>} : memref<8x64xf32, #tpu.memory_space<vmem>>, vector<8x64xf32>,
    %c0_52 = arith.constant 0 : index
    %c0_53 = arith.constant 0 : index
    %93 = vector.load %arg11[%c0_52, %c0_53] : memref<8x64xf32, #tpu.memory_space<vmem>>, vector<8x64xf32>
    tpu.vector_store %arg11[%c0_52, %c0_53], %88 {strides = array<i32>} : memref<8x64xf32, #tpu.memory_space<vmem>>, vector<8x64xf32>,
    %94 = arith.addi %15, %62 : i32
    %c7_i32_54 = arith.constant 7 : i32
    %95 = arith.subi %c7_i32_54, %94 : i32
    %96 = vector.extract_strided_slice %91 {offsets = [0, 0], sizes = [8, 32], strides = [1, 1]} : vector<8x64xf32> to vector<8x32xf32>
    %c8_i32_55 = arith.constant 8 : i32
    %97 = arith.muli %94, %c8_i32_55 : i32
    %98 = tpu.assume_multiple %97, 8 : i32
    %99 = arith.index_cast %98 : i32 to index
    %c0_56 = arith.constant 0 : index
    %100 = vector.load %arg7[%99, %c0_56] : memref<64x64xf32, #tpu.memory_space<vmem>>, vector<8x32xf32>
    tpu.vector_store %arg7[%99, %c0_56], %96 {strides = array<i32>} : memref<64x64xf32, #tpu.memory_space<vmem>>, vector<8x32xf32>,
    %101 = vector.extract_strided_slice %91 {offsets = [0, 32], sizes = [8, 32], strides = [1, 1]} : vector<8x64xf32> to vector<8x32xf32>
    %c8_i32_57 = arith.constant 8 : i32
    %102 = arith.muli %95, %c8_i32_57 : i32
    %103 = tpu.assume_multiple %102, 8 : i32
    %104 = arith.index_cast %103 : i32 to index
    %c32_58 = arith.constant 32 : index
    %105 = vector.load %arg7[%104, %c32_58] : memref<64x64xf32, #tpu.memory_space<vmem>>, vector<8x32xf32>
    tpu.vector_store %arg7[%104, %c32_58], %101 {strides = array<i32>} : memref<64x64xf32, #tpu.memory_space<vmem>>, vector<8x32xf32>,
    %c8_i32_59 = arith.constant 8 : i32
    %106 = arith.muli %c0_i32_17, %c8_i32_59 : i32
    %c2_i32 = arith.constant 2 : i32
    %107 = arith.addi %106, %c2_i32 : i32
    %c8_i32_60 = arith.constant 8 : i32
    %108 = arith.muli %107, %c8_i32_60 : i32
    %109 = tpu.assume_multiple %108, 8 : i32
    %c7_i32_61 = arith.constant 7 : i32
    %110 = arith.subi %c7_i32_61, %107 : i32
    %c8_i32_62 = arith.constant 8 : i32
    %111 = arith.muli %110, %c8_i32_62 : i32
    %112 = tpu.assume_multiple %111, 8 : i32
    %113 = arith.index_cast %109 : i32 to index
    %c0_63 = arith.constant 0 : index
    %114 = vector.load %arg8[%113, %c0_63] : memref<64x256xf32, #tpu.memory_space<vmem>>, vector<8x256xf32>
    %115 = arith.index_cast %112 : i32 to index
    %c0_64 = arith.constant 0 : index
    %116 = vector.load %arg9[%115, %c0_64] : memref<64x256xf32, #tpu.memory_space<vmem>>, vector<8x256xf32>
    %117 = arith.addf %114, %116 : vector<8x256xf32>
    %c0_65 = arith.constant 0 : index
    %c0_66 = arith.constant 0 : index
    %118 = vector.load %arg10[%c0_65, %c0_66] : memref<8x64xf32, #tpu.memory_space<vmem>>, vector<8x64xf32>
    %cst_67 = arith.constant dense<0.000000e+00> : vector<8x256xf32>
    %119 = tpu.matmul %118, %14, %cst_67 {dimension_numbers = #tpu.dot_dimension_numbers<[1], [0], [0], [1], [0, 0, 1, 1], [], []>} : vector<8x64xf32>, vector<64x256xf32>, vector<8x256xf32> -> vector<8x256xf32>
    %120 = arith.addf %117, %119 : vector<8x256xf32>
    %121 = arith.negf %120 : vector<8x256xf32>
    %122 = math.exp %121 : vector<8x256xf32>
    %cst_68 = arith.constant 1.000000e+00 : f32
    %123 = vector.broadcast %cst_68 : f32 to vector<8x256xf32>
    %124 = arith.addf %123, %122 : vector<8x256xf32>
    %125 = arith.divf %123, %124 : vector<8x256xf32>
    %126 = vector.extract_strided_slice %120 {offsets = [0, 128], sizes = [8, 64], strides = [1, 1]} : vector<8x256xf32> to vector<8x64xf32>
    %127 = math.tanh %126 : vector<8x64xf32>
    %128 = vector.extract_strided_slice %125 {offsets = [0, 64], sizes = [8, 64], strides = [1, 1]} : vector<8x256xf32> to vector<8x64xf32>
    %c0_69 = arith.constant 0 : index
    %c0_70 = arith.constant 0 : index
    %129 = vector.load %arg11[%c0_69, %c0_70] : memref<8x64xf32, #tpu.memory_space<vmem>>, vector<8x64xf32>
    %130 = arith.mulf %128, %129 : vector<8x64xf32>
    %131 = vector.extract_strided_slice %125 {offsets = [0, 0], sizes = [8, 64], strides = [1, 1]} : vector<8x256xf32> to vector<8x64xf32>
    %132 = arith.mulf %131, %127 : vector<8x64xf32>
    %133 = arith.addf %130, %132 : vector<8x64xf32>
    %134 = vector.extract_strided_slice %125 {offsets = [0, 192], sizes = [8, 64], strides = [1, 1]} : vector<8x256xf32> to vector<8x64xf32>
    %135 = math.tanh %133 : vector<8x64xf32>
    %136 = arith.mulf %134, %135 : vector<8x64xf32>
    %c0_71 = arith.constant 0 : index
    %c0_72 = arith.constant 0 : index
    %137 = vector.load %arg10[%c0_71, %c0_72] : memref<8x64xf32, #tpu.memory_space<vmem>>, vector<8x64xf32>
    tpu.vector_store %arg10[%c0_71, %c0_72], %136 {strides = array<i32>} : memref<8x64xf32, #tpu.memory_space<vmem>>, vector<8x64xf32>,
    %c0_73 = arith.constant 0 : index
    %c0_74 = arith.constant 0 : index
    %138 = vector.load %arg11[%c0_73, %c0_74] : memref<8x64xf32, #tpu.memory_space<vmem>>, vector<8x64xf32>
    tpu.vector_store %arg11[%c0_73, %c0_74], %133 {strides = array<i32>} : memref<8x64xf32, #tpu.memory_space<vmem>>, vector<8x64xf32>,
    %139 = arith.addi %15, %107 : i32
    %c7_i32_75 = arith.constant 7 : i32
    %140 = arith.subi %c7_i32_75, %139 : i32
    %141 = vector.extract_strided_slice %136 {offsets = [0, 0], sizes = [8, 32], strides = [1, 1]} : vector<8x64xf32> to vector<8x32xf32>
    %c8_i32_76 = arith.constant 8 : i32
    %142 = arith.muli %139, %c8_i32_76 : i32
    %143 = tpu.assume_multiple %142, 8 : i32
    %144 = arith.index_cast %143 : i32 to index
    %c0_77 = arith.constant 0 : index
    %145 = vector.load %arg7[%144, %c0_77] : memref<64x64xf32, #tpu.memory_space<vmem>>, vector<8x32xf32>
    tpu.vector_store %arg7[%144, %c0_77], %141 {strides = array<i32>} : memref<64x64xf32, #tpu.memory_space<vmem>>, vector<8x32xf32>,
    %146 = vector.extract_strided_slice %136 {offsets = [0, 32], sizes = [8, 32], strides = [1, 1]} : vector<8x64xf32> to vector<8x32xf32>
    %c8_i32_78 = arith.constant 8 : i32
    %147 = arith.muli %140, %c8_i32_78 : i32
    %148 = tpu.assume_multiple %147, 8 : i32
    %149 = arith.index_cast %148 : i32 to index
    %c32_79 = arith.constant 32 : index
    %150 = vector.load %arg7[%149, %c32_79] : memref<64x64xf32, #tpu.memory_space<vmem>>, vector<8x32xf32>
    tpu.vector_store %arg7[%149, %c32_79], %146 {strides = array<i32>} : memref<64x64xf32, #tpu.memory_space<vmem>>, vector<8x32xf32>,
    %c8_i32_80 = arith.constant 8 : i32
    %151 = arith.muli %c0_i32_17, %c8_i32_80 : i32
    %c3_i32 = arith.constant 3 : i32
    %152 = arith.addi %151, %c3_i32 : i32
    %c8_i32_81 = arith.constant 8 : i32
    %153 = arith.muli %152, %c8_i32_81 : i32
    %154 = tpu.assume_multiple %153, 8 : i32
    %c7_i32_82 = arith.constant 7 : i32
    %155 = arith.subi %c7_i32_82, %152 : i32
    %c8_i32_83 = arith.constant 8 : i32
    %156 = arith.muli %155, %c8_i32_83 : i32
    %157 = tpu.assume_multiple %156, 8 : i32
    %158 = arith.index_cast %154 : i32 to index
    %c0_84 = arith.constant 0 : index
    %159 = vector.load %arg8[%158, %c0_84] : memref<64x256xf32, #tpu.memory_space<vmem>>, vector<8x256xf32>
    %160 = arith.index_cast %157 : i32 to index
    %c0_85 = arith.constant 0 : index
    %161 = vector.load %arg9[%160, %c0_85] : memref<64x256xf32, #tpu.memory_space<vmem>>, vector<8x256xf32>
    %162 = arith.addf %159, %161 : vector<8x256xf32>
    %c0_86 = arith.constant 0 : index
    %c0_87 = arith.constant 0 : index
    %163 = vector.load %arg10[%c0_86, %c0_87] : memref<8x64xf32, #tpu.memory_space<vmem>>, vector<8x64xf32>
    %cst_88 = arith.constant dense<0.000000e+00> : vector<8x256xf32>
    %164 = tpu.matmul %163, %14, %cst_88 {dimension_numbers = #tpu.dot_dimension_numbers<[1], [0], [0], [1], [0, 0, 1, 1], [], []>} : vector<8x64xf32>, vector<64x256xf32>, vector<8x256xf32> -> vector<8x256xf32>
    %165 = arith.addf %162, %164 : vector<8x256xf32>
    %166 = arith.negf %165 : vector<8x256xf32>
    %167 = math.exp %166 : vector<8x256xf32>
    %cst_89 = arith.constant 1.000000e+00 : f32
    %168 = vector.broadcast %cst_89 : f32 to vector<8x256xf32>
    %169 = arith.addf %168, %167 : vector<8x256xf32>
    %170 = arith.divf %168, %169 : vector<8x256xf32>
    %171 = vector.extract_strided_slice %165 {offsets = [0, 128], sizes = [8, 64], strides = [1, 1]} : vector<8x256xf32> to vector<8x64xf32>
    %172 = math.tanh %171 : vector<8x64xf32>
    %173 = vector.extract_strided_slice %170 {offsets = [0, 64], sizes = [8, 64], strides = [1, 1]} : vector<8x256xf32> to vector<8x64xf32>
    %c0_90 = arith.constant 0 : index
    %c0_91 = arith.constant 0 : index
    %174 = vector.load %arg11[%c0_90, %c0_91] : memref<8x64xf32, #tpu.memory_space<vmem>>, vector<8x64xf32>
    %175 = arith.mulf %173, %174 : vector<8x64xf32>
    %176 = vector.extract_strided_slice %170 {offsets = [0, 0], sizes = [8, 64], strides = [1, 1]} : vector<8x256xf32> to vector<8x64xf32>
    %177 = arith.mulf %176, %172 : vector<8x64xf32>
    %178 = arith.addf %175, %177 : vector<8x64xf32>
    %179 = vector.extract_strided_slice %170 {offsets = [0, 192], sizes = [8, 64], strides = [1, 1]} : vector<8x256xf32> to vector<8x64xf32>
    %180 = math.tanh %178 : vector<8x64xf32>
    %181 = arith.mulf %179, %180 : vector<8x64xf32>
    %c0_92 = arith.constant 0 : index
    %c0_93 = arith.constant 0 : index
    %182 = vector.load %arg10[%c0_92, %c0_93] : memref<8x64xf32, #tpu.memory_space<vmem>>, vector<8x64xf32>
    tpu.vector_store %arg10[%c0_92, %c0_93], %181 {strides = array<i32>} : memref<8x64xf32, #tpu.memory_space<vmem>>, vector<8x64xf32>,
    %c0_94 = arith.constant 0 : index
    %c0_95 = arith.constant 0 : index
    %183 = vector.load %arg11[%c0_94, %c0_95] : memref<8x64xf32, #tpu.memory_space<vmem>>, vector<8x64xf32>
    tpu.vector_store %arg11[%c0_94, %c0_95], %178 {strides = array<i32>} : memref<8x64xf32, #tpu.memory_space<vmem>>, vector<8x64xf32>,
    %184 = arith.addi %15, %152 : i32
    %c7_i32_96 = arith.constant 7 : i32
    %185 = arith.subi %c7_i32_96, %184 : i32
    %186 = vector.extract_strided_slice %181 {offsets = [0, 0], sizes = [8, 32], strides = [1, 1]} : vector<8x64xf32> to vector<8x32xf32>
    %c8_i32_97 = arith.constant 8 : i32
    %187 = arith.muli %184, %c8_i32_97 : i32
    %188 = tpu.assume_multiple %187, 8 : i32
    %189 = arith.index_cast %188 : i32 to index
    %c0_98 = arith.constant 0 : index
    %190 = vector.load %arg7[%189, %c0_98] : memref<64x64xf32, #tpu.memory_space<vmem>>, vector<8x32xf32>
    tpu.vector_store %arg7[%189, %c0_98], %186 {strides = array<i32>} : memref<64x64xf32, #tpu.memory_space<vmem>>, vector<8x32xf32>,
    %191 = vector.extract_strided_slice %181 {offsets = [0, 32], sizes = [8, 32], strides = [1, 1]} : vector<8x64xf32> to vector<8x32xf32>
    %c8_i32_99 = arith.constant 8 : i32
    %192 = arith.muli %185, %c8_i32_99 : i32
    %193 = tpu.assume_multiple %192, 8 : i32
    %194 = arith.index_cast %193 : i32 to index
    %c32_100 = arith.constant 32 : index
    %195 = vector.load %arg7[%194, %c32_100] : memref<64x64xf32, #tpu.memory_space<vmem>>, vector<8x32xf32>
    tpu.vector_store %arg7[%194, %c32_100], %191 {strides = array<i32>} : memref<64x64xf32, #tpu.memory_space<vmem>>, vector<8x32xf32>,
    %c8_i32_101 = arith.constant 8 : i32
    %196 = arith.muli %c0_i32_17, %c8_i32_101 : i32
    %c4_i32 = arith.constant 4 : i32
    %197 = arith.addi %196, %c4_i32 : i32
    %c8_i32_102 = arith.constant 8 : i32
    %198 = arith.muli %197, %c8_i32_102 : i32
    %199 = tpu.assume_multiple %198, 8 : i32
    %c7_i32_103 = arith.constant 7 : i32
    %200 = arith.subi %c7_i32_103, %197 : i32
    %c8_i32_104 = arith.constant 8 : i32
    %201 = arith.muli %200, %c8_i32_104 : i32
    %202 = tpu.assume_multiple %201, 8 : i32
    %203 = arith.index_cast %199 : i32 to index
    %c0_105 = arith.constant 0 : index
    %204 = vector.load %arg8[%203, %c0_105] : memref<64x256xf32, #tpu.memory_space<vmem>>, vector<8x256xf32>
    %205 = arith.index_cast %202 : i32 to index
    %c0_106 = arith.constant 0 : index
    %206 = vector.load %arg9[%205, %c0_106] : memref<64x256xf32, #tpu.memory_space<vmem>>, vector<8x256xf32>
    %207 = arith.addf %204, %206 : vector<8x256xf32>
    %c0_107 = arith.constant 0 : index
    %c0_108 = arith.constant 0 : index
    %208 = vector.load %arg10[%c0_107, %c0_108] : memref<8x64xf32, #tpu.memory_space<vmem>>, vector<8x64xf32>
    %cst_109 = arith.constant dense<0.000000e+00> : vector<8x256xf32>
    %209 = tpu.matmul %208, %14, %cst_109 {dimension_numbers = #tpu.dot_dimension_numbers<[1], [0], [0], [1], [0, 0, 1, 1], [], []>} : vector<8x64xf32>, vector<64x256xf32>, vector<8x256xf32> -> vector<8x256xf32>
    %210 = arith.addf %207, %209 : vector<8x256xf32>
    %211 = arith.negf %210 : vector<8x256xf32>
    %212 = math.exp %211 : vector<8x256xf32>
    %cst_110 = arith.constant 1.000000e+00 : f32
    %213 = vector.broadcast %cst_110 : f32 to vector<8x256xf32>
    %214 = arith.addf %213, %212 : vector<8x256xf32>
    %215 = arith.divf %213, %214 : vector<8x256xf32>
    %216 = vector.extract_strided_slice %210 {offsets = [0, 128], sizes = [8, 64], strides = [1, 1]} : vector<8x256xf32> to vector<8x64xf32>
    %217 = math.tanh %216 : vector<8x64xf32>
    %218 = vector.extract_strided_slice %215 {offsets = [0, 64], sizes = [8, 64], strides = [1, 1]} : vector<8x256xf32> to vector<8x64xf32>
    %c0_111 = arith.constant 0 : index
    %c0_112 = arith.constant 0 : index
    %219 = vector.load %arg11[%c0_111, %c0_112] : memref<8x64xf32, #tpu.memory_space<vmem>>, vector<8x64xf32>
    %220 = arith.mulf %218, %219 : vector<8x64xf32>
    %221 = vector.extract_strided_slice %215 {offsets = [0, 0], sizes = [8, 64], strides = [1, 1]} : vector<8x256xf32> to vector<8x64xf32>
    %222 = arith.mulf %221, %217 : vector<8x64xf32>
    %223 = arith.addf %220, %222 : vector<8x64xf32>
    %224 = vector.extract_strided_slice %215 {offsets = [0, 192], sizes = [8, 64], strides = [1, 1]} : vector<8x256xf32> to vector<8x64xf32>
    %225 = math.tanh %223 : vector<8x64xf32>
    %226 = arith.mulf %224, %225 : vector<8x64xf32>
    %c0_113 = arith.constant 0 : index
    %c0_114 = arith.constant 0 : index
    %227 = vector.load %arg10[%c0_113, %c0_114] : memref<8x64xf32, #tpu.memory_space<vmem>>, vector<8x64xf32>
    tpu.vector_store %arg10[%c0_113, %c0_114], %226 {strides = array<i32>} : memref<8x64xf32, #tpu.memory_space<vmem>>, vector<8x64xf32>,
    %c0_115 = arith.constant 0 : index
    %c0_116 = arith.constant 0 : index
    %228 = vector.load %arg11[%c0_115, %c0_116] : memref<8x64xf32, #tpu.memory_space<vmem>>, vector<8x64xf32>
    tpu.vector_store %arg11[%c0_115, %c0_116], %223 {strides = array<i32>} : memref<8x64xf32, #tpu.memory_space<vmem>>, vector<8x64xf32>,
    %229 = arith.addi %15, %197 : i32
    %c7_i32_117 = arith.constant 7 : i32
    %230 = arith.subi %c7_i32_117, %229 : i32
    %231 = vector.extract_strided_slice %226 {offsets = [0, 0], sizes = [8, 32], strides = [1, 1]} : vector<8x64xf32> to vector<8x32xf32>
    %c8_i32_118 = arith.constant 8 : i32
    %232 = arith.muli %229, %c8_i32_118 : i32
    %233 = tpu.assume_multiple %232, 8 : i32
    %234 = arith.index_cast %233 : i32 to index
    %c0_119 = arith.constant 0 : index
    %235 = vector.load %arg7[%234, %c0_119] : memref<64x64xf32, #tpu.memory_space<vmem>>, vector<8x32xf32>
    tpu.vector_store %arg7[%234, %c0_119], %231 {strides = array<i32>} : memref<64x64xf32, #tpu.memory_space<vmem>>, vector<8x32xf32>,
    %236 = vector.extract_strided_slice %226 {offsets = [0, 32], sizes = [8, 32], strides = [1, 1]} : vector<8x64xf32> to vector<8x32xf32>
    %c8_i32_120 = arith.constant 8 : i32
    %237 = arith.muli %230, %c8_i32_120 : i32
    %238 = tpu.assume_multiple %237, 8 : i32
    %239 = arith.index_cast %238 : i32 to index
    %c32_121 = arith.constant 32 : index
    %240 = vector.load %arg7[%239, %c32_121] : memref<64x64xf32, #tpu.memory_space<vmem>>, vector<8x32xf32>
    tpu.vector_store %arg7[%239, %c32_121], %236 {strides = array<i32>} : memref<64x64xf32, #tpu.memory_space<vmem>>, vector<8x32xf32>,
    %c8_i32_122 = arith.constant 8 : i32
    %241 = arith.muli %c0_i32_17, %c8_i32_122 : i32
    %c5_i32 = arith.constant 5 : i32
    %242 = arith.addi %241, %c5_i32 : i32
    %c8_i32_123 = arith.constant 8 : i32
    %243 = arith.muli %242, %c8_i32_123 : i32
    %244 = tpu.assume_multiple %243, 8 : i32
    %c7_i32_124 = arith.constant 7 : i32
    %245 = arith.subi %c7_i32_124, %242 : i32
    %c8_i32_125 = arith.constant 8 : i32
    %246 = arith.muli %245, %c8_i32_125 : i32
    %247 = tpu.assume_multiple %246, 8 : i32
    %248 = arith.index_cast %244 : i32 to index
    %c0_126 = arith.constant 0 : index
    %249 = vector.load %arg8[%248, %c0_126] : memref<64x256xf32, #tpu.memory_space<vmem>>, vector<8x256xf32>
    %250 = arith.index_cast %247 : i32 to index
    %c0_127 = arith.constant 0 : index
    %251 = vector.load %arg9[%250, %c0_127] : memref<64x256xf32, #tpu.memory_space<vmem>>, vector<8x256xf32>
    %252 = arith.addf %249, %251 : vector<8x256xf32>
    %c0_128 = arith.constant 0 : index
    %c0_129 = arith.constant 0 : index
    %253 = vector.load %arg10[%c0_128, %c0_129] : memref<8x64xf32, #tpu.memory_space<vmem>>, vector<8x64xf32>
    %cst_130 = arith.constant dense<0.000000e+00> : vector<8x256xf32>
    %254 = tpu.matmul %253, %14, %cst_130 {dimension_numbers = #tpu.dot_dimension_numbers<[1], [0], [0], [1], [0, 0, 1, 1], [], []>} : vector<8x64xf32>, vector<64x256xf32>, vector<8x256xf32> -> vector<8x256xf32>
    %255 = arith.addf %252, %254 : vector<8x256xf32>
    %256 = arith.negf %255 : vector<8x256xf32>
    %257 = math.exp %256 : vector<8x256xf32>
    %cst_131 = arith.constant 1.000000e+00 : f32
    %258 = vector.broadcast %cst_131 : f32 to vector<8x256xf32>
    %259 = arith.addf %258, %257 : vector<8x256xf32>
    %260 = arith.divf %258, %259 : vector<8x256xf32>
    %261 = vector.extract_strided_slice %255 {offsets = [0, 128], sizes = [8, 64], strides = [1, 1]} : vector<8x256xf32> to vector<8x64xf32>
    %262 = math.tanh %261 : vector<8x64xf32>
    %263 = vector.extract_strided_slice %260 {offsets = [0, 64], sizes = [8, 64], strides = [1, 1]} : vector<8x256xf32> to vector<8x64xf32>
    %c0_132 = arith.constant 0 : index
    %c0_133 = arith.constant 0 : index
    %264 = vector.load %arg11[%c0_132, %c0_133] : memref<8x64xf32, #tpu.memory_space<vmem>>, vector<8x64xf32>
    %265 = arith.mulf %263, %264 : vector<8x64xf32>
    %266 = vector.extract_strided_slice %260 {offsets = [0, 0], sizes = [8, 64], strides = [1, 1]} : vector<8x256xf32> to vector<8x64xf32>
    %267 = arith.mulf %266, %262 : vector<8x64xf32>
    %268 = arith.addf %265, %267 : vector<8x64xf32>
    %269 = vector.extract_strided_slice %260 {offsets = [0, 192], sizes = [8, 64], strides = [1, 1]} : vector<8x256xf32> to vector<8x64xf32>
    %270 = math.tanh %268 : vector<8x64xf32>
    %271 = arith.mulf %269, %270 : vector<8x64xf32>
    %c0_134 = arith.constant 0 : index
    %c0_135 = arith.constant 0 : index
    %272 = vector.load %arg10[%c0_134, %c0_135] : memref<8x64xf32, #tpu.memory_space<vmem>>, vector<8x64xf32>
    tpu.vector_store %arg10[%c0_134, %c0_135], %271 {strides = array<i32>} : memref<8x64xf32, #tpu.memory_space<vmem>>, vector<8x64xf32>,
    %c0_136 = arith.constant 0 : index
    %c0_137 = arith.constant 0 : index
    %273 = vector.load %arg11[%c0_136, %c0_137] : memref<8x64xf32, #tpu.memory_space<vmem>>, vector<8x64xf32>
    tpu.vector_store %arg11[%c0_136, %c0_137], %268 {strides = array<i32>} : memref<8x64xf32, #tpu.memory_space<vmem>>, vector<8x64xf32>,
    %274 = arith.addi %15, %242 : i32
    %c7_i32_138 = arith.constant 7 : i32
    %275 = arith.subi %c7_i32_138, %274 : i32
    %276 = vector.extract_strided_slice %271 {offsets = [0, 0], sizes = [8, 32], strides = [1, 1]} : vector<8x64xf32> to vector<8x32xf32>
    %c8_i32_139 = arith.constant 8 : i32
    %277 = arith.muli %274, %c8_i32_139 : i32
    %278 = tpu.assume_multiple %277, 8 : i32
    %279 = arith.index_cast %278 : i32 to index
    %c0_140 = arith.constant 0 : index
    %280 = vector.load %arg7[%279, %c0_140] : memref<64x64xf32, #tpu.memory_space<vmem>>, vector<8x32xf32>
    tpu.vector_store %arg7[%279, %c0_140], %276 {strides = array<i32>} : memref<64x64xf32, #tpu.memory_space<vmem>>, vector<8x32xf32>,
    %281 = vector.extract_strided_slice %271 {offsets = [0, 32], sizes = [8, 32], strides = [1, 1]} : vector<8x64xf32> to vector<8x32xf32>
    %c8_i32_141 = arith.constant 8 : i32
    %282 = arith.muli %275, %c8_i32_141 : i32
    %283 = tpu.assume_multiple %282, 8 : i32
    %284 = arith.index_cast %283 : i32 to index
    %c32_142 = arith.constant 32 : index
    %285 = vector.load %arg7[%284, %c32_142] : memref<64x64xf32, #tpu.memory_space<vmem>>, vector<8x32xf32>
    tpu.vector_store %arg7[%284, %c32_142], %281 {strides = array<i32>} : memref<64x64xf32, #tpu.memory_space<vmem>>, vector<8x32xf32>,
    %c8_i32_143 = arith.constant 8 : i32
    %286 = arith.muli %c0_i32_17, %c8_i32_143 : i32
    %c6_i32 = arith.constant 6 : i32
    %287 = arith.addi %286, %c6_i32 : i32
    %c8_i32_144 = arith.constant 8 : i32
    %288 = arith.muli %287, %c8_i32_144 : i32
    %289 = tpu.assume_multiple %288, 8 : i32
    %c7_i32_145 = arith.constant 7 : i32
    %290 = arith.subi %c7_i32_145, %287 : i32
    %c8_i32_146 = arith.constant 8 : i32
    %291 = arith.muli %290, %c8_i32_146 : i32
    %292 = tpu.assume_multiple %291, 8 : i32
    %293 = arith.index_cast %289 : i32 to index
    %c0_147 = arith.constant 0 : index
    %294 = vector.load %arg8[%293, %c0_147] : memref<64x256xf32, #tpu.memory_space<vmem>>, vector<8x256xf32>
    %295 = arith.index_cast %292 : i32 to index
    %c0_148 = arith.constant 0 : index
    %296 = vector.load %arg9[%295, %c0_148] : memref<64x256xf32, #tpu.memory_space<vmem>>, vector<8x256xf32>
    %297 = arith.addf %294, %296 : vector<8x256xf32>
    %c0_149 = arith.constant 0 : index
    %c0_150 = arith.constant 0 : index
    %298 = vector.load %arg10[%c0_149, %c0_150] : memref<8x64xf32, #tpu.memory_space<vmem>>, vector<8x64xf32>
    %cst_151 = arith.constant dense<0.000000e+00> : vector<8x256xf32>
    %299 = tpu.matmul %298, %14, %cst_151 {dimension_numbers = #tpu.dot_dimension_numbers<[1], [0], [0], [1], [0, 0, 1, 1], [], []>} : vector<8x64xf32>, vector<64x256xf32>, vector<8x256xf32> -> vector<8x256xf32>
    %300 = arith.addf %297, %299 : vector<8x256xf32>
    %301 = arith.negf %300 : vector<8x256xf32>
    %302 = math.exp %301 : vector<8x256xf32>
    %cst_152 = arith.constant 1.000000e+00 : f32
    %303 = vector.broadcast %cst_152 : f32 to vector<8x256xf32>
    %304 = arith.addf %303, %302 : vector<8x256xf32>
    %305 = arith.divf %303, %304 : vector<8x256xf32>
    %306 = vector.extract_strided_slice %300 {offsets = [0, 128], sizes = [8, 64], strides = [1, 1]} : vector<8x256xf32> to vector<8x64xf32>
    %307 = math.tanh %306 : vector<8x64xf32>
    %308 = vector.extract_strided_slice %305 {offsets = [0, 64], sizes = [8, 64], strides = [1, 1]} : vector<8x256xf32> to vector<8x64xf32>
    %c0_153 = arith.constant 0 : index
    %c0_154 = arith.constant 0 : index
    %309 = vector.load %arg11[%c0_153, %c0_154] : memref<8x64xf32, #tpu.memory_space<vmem>>, vector<8x64xf32>
    %310 = arith.mulf %308, %309 : vector<8x64xf32>
    %311 = vector.extract_strided_slice %305 {offsets = [0, 0], sizes = [8, 64], strides = [1, 1]} : vector<8x256xf32> to vector<8x64xf32>
    %312 = arith.mulf %311, %307 : vector<8x64xf32>
    %313 = arith.addf %310, %312 : vector<8x64xf32>
    %314 = vector.extract_strided_slice %305 {offsets = [0, 192], sizes = [8, 64], strides = [1, 1]} : vector<8x256xf32> to vector<8x64xf32>
    %315 = math.tanh %313 : vector<8x64xf32>
    %316 = arith.mulf %314, %315 : vector<8x64xf32>
    %c0_155 = arith.constant 0 : index
    %c0_156 = arith.constant 0 : index
    %317 = vector.load %arg10[%c0_155, %c0_156] : memref<8x64xf32, #tpu.memory_space<vmem>>, vector<8x64xf32>
    tpu.vector_store %arg10[%c0_155, %c0_156], %316 {strides = array<i32>} : memref<8x64xf32, #tpu.memory_space<vmem>>, vector<8x64xf32>,
    %c0_157 = arith.constant 0 : index
    %c0_158 = arith.constant 0 : index
    %318 = vector.load %arg11[%c0_157, %c0_158] : memref<8x64xf32, #tpu.memory_space<vmem>>, vector<8x64xf32>
    tpu.vector_store %arg11[%c0_157, %c0_158], %313 {strides = array<i32>} : memref<8x64xf32, #tpu.memory_space<vmem>>, vector<8x64xf32>,
    %319 = arith.addi %15, %287 : i32
    %c7_i32_159 = arith.constant 7 : i32
    %320 = arith.subi %c7_i32_159, %319 : i32
    %321 = vector.extract_strided_slice %316 {offsets = [0, 0], sizes = [8, 32], strides = [1, 1]} : vector<8x64xf32> to vector<8x32xf32>
    %c8_i32_160 = arith.constant 8 : i32
    %322 = arith.muli %319, %c8_i32_160 : i32
    %323 = tpu.assume_multiple %322, 8 : i32
    %324 = arith.index_cast %323 : i32 to index
    %c0_161 = arith.constant 0 : index
    %325 = vector.load %arg7[%324, %c0_161] : memref<64x64xf32, #tpu.memory_space<vmem>>, vector<8x32xf32>
    tpu.vector_store %arg7[%324, %c0_161], %321 {strides = array<i32>} : memref<64x64xf32, #tpu.memory_space<vmem>>, vector<8x32xf32>,
    %326 = vector.extract_strided_slice %316 {offsets = [0, 32], sizes = [8, 32], strides = [1, 1]} : vector<8x64xf32> to vector<8x32xf32>
    %c8_i32_162 = arith.constant 8 : i32
    %327 = arith.muli %320, %c8_i32_162 : i32
    %328 = tpu.assume_multiple %327, 8 : i32
    %329 = arith.index_cast %328 : i32 to index
    %c32_163 = arith.constant 32 : index
    %330 = vector.load %arg7[%329, %c32_163] : memref<64x64xf32, #tpu.memory_space<vmem>>, vector<8x32xf32>
    tpu.vector_store %arg7[%329, %c32_163], %326 {strides = array<i32>} : memref<64x64xf32, #tpu.memory_space<vmem>>, vector<8x32xf32>,
    %c8_i32_164 = arith.constant 8 : i32
    %331 = arith.muli %c0_i32_17, %c8_i32_164 : i32
    %c7_i32_165 = arith.constant 7 : i32
    %332 = arith.addi %331, %c7_i32_165 : i32
    %c8_i32_166 = arith.constant 8 : i32
    %333 = arith.muli %332, %c8_i32_166 : i32
    %334 = tpu.assume_multiple %333, 8 : i32
    %c7_i32_167 = arith.constant 7 : i32
    %335 = arith.subi %c7_i32_167, %332 : i32
    %c8_i32_168 = arith.constant 8 : i32
    %336 = arith.muli %335, %c8_i32_168 : i32
    %337 = tpu.assume_multiple %336, 8 : i32
    %338 = arith.index_cast %334 : i32 to index
    %c0_169 = arith.constant 0 : index
    %339 = vector.load %arg8[%338, %c0_169] : memref<64x256xf32, #tpu.memory_space<vmem>>, vector<8x256xf32>
    %340 = arith.index_cast %337 : i32 to index
    %c0_170 = arith.constant 0 : index
    %341 = vector.load %arg9[%340, %c0_170] : memref<64x256xf32, #tpu.memory_space<vmem>>, vector<8x256xf32>
    %342 = arith.addf %339, %341 : vector<8x256xf32>
    %c0_171 = arith.constant 0 : index
    %c0_172 = arith.constant 0 : index
    %343 = vector.load %arg10[%c0_171, %c0_172] : memref<8x64xf32, #tpu.memory_space<vmem>>, vector<8x64xf32>
    %cst_173 = arith.constant dense<0.000000e+00> : vector<8x256xf32>
    %344 = tpu.matmul %343, %14, %cst_173 {dimension_numbers = #tpu.dot_dimension_numbers<[1], [0], [0], [1], [0, 0, 1, 1], [], []>} : vector<8x64xf32>, vector<64x256xf32>, vector<8x256xf32> -> vector<8x256xf32>
    %345 = arith.addf %342, %344 : vector<8x256xf32>
    %346 = arith.negf %345 : vector<8x256xf32>
    %347 = math.exp %346 : vector<8x256xf32>
    %cst_174 = arith.constant 1.000000e+00 : f32
    %348 = vector.broadcast %cst_174 : f32 to vector<8x256xf32>
    %349 = arith.addf %348, %347 : vector<8x256xf32>
    %350 = arith.divf %348, %349 : vector<8x256xf32>
    %351 = vector.extract_strided_slice %345 {offsets = [0, 128], sizes = [8, 64], strides = [1, 1]} : vector<8x256xf32> to vector<8x64xf32>
    %352 = math.tanh %351 : vector<8x64xf32>
    %353 = vector.extract_strided_slice %350 {offsets = [0, 64], sizes = [8, 64], strides = [1, 1]} : vector<8x256xf32> to vector<8x64xf32>
    %c0_175 = arith.constant 0 : index
    %c0_176 = arith.constant 0 : index
    %354 = vector.load %arg11[%c0_175, %c0_176] : memref<8x64xf32, #tpu.memory_space<vmem>>, vector<8x64xf32>
    %355 = arith.mulf %353, %354 : vector<8x64xf32>
    %356 = vector.extract_strided_slice %350 {offsets = [0, 0], sizes = [8, 64], strides = [1, 1]} : vector<8x256xf32> to vector<8x64xf32>
    %357 = arith.mulf %356, %352 : vector<8x64xf32>
    %358 = arith.addf %355, %357 : vector<8x64xf32>
    %359 = vector.extract_strided_slice %350 {offsets = [0, 192], sizes = [8, 64], strides = [1, 1]} : vector<8x256xf32> to vector<8x64xf32>
    %360 = math.tanh %358 : vector<8x64xf32>
    %361 = arith.mulf %359, %360 : vector<8x64xf32>
    %c0_177 = arith.constant 0 : index
    %c0_178 = arith.constant 0 : index
    %362 = vector.load %arg10[%c0_177, %c0_178] : memref<8x64xf32, #tpu.memory_space<vmem>>, vector<8x64xf32>
    tpu.vector_store %arg10[%c0_177, %c0_178], %361 {strides = array<i32>} : memref<8x64xf32, #tpu.memory_space<vmem>>, vector<8x64xf32>,
    %c0_179 = arith.constant 0 : index
    %c0_180 = arith.constant 0 : index
    %363 = vector.load %arg11[%c0_179, %c0_180] : memref<8x64xf32, #tpu.memory_space<vmem>>, vector<8x64xf32>
    tpu.vector_store %arg11[%c0_179, %c0_180], %358 {strides = array<i32>} : memref<8x64xf32, #tpu.memory_space<vmem>>, vector<8x64xf32>,
    %364 = arith.addi %15, %332 : i32
    %c7_i32_181 = arith.constant 7 : i32
    %365 = arith.subi %c7_i32_181, %364 : i32
    %366 = vector.extract_strided_slice %361 {offsets = [0, 0], sizes = [8, 32], strides = [1, 1]} : vector<8x64xf32> to vector<8x32xf32>
    %c8_i32_182 = arith.constant 8 : i32
    %367 = arith.muli %364, %c8_i32_182 : i32
    %368 = tpu.assume_multiple %367, 8 : i32
    %369 = arith.index_cast %368 : i32 to index
    %c0_183 = arith.constant 0 : index
    %370 = vector.load %arg7[%369, %c0_183] : memref<64x64xf32, #tpu.memory_space<vmem>>, vector<8x32xf32>
    tpu.vector_store %arg7[%369, %c0_183], %366 {strides = array<i32>} : memref<64x64xf32, #tpu.memory_space<vmem>>, vector<8x32xf32>,
    %371 = vector.extract_strided_slice %361 {offsets = [0, 32], sizes = [8, 32], strides = [1, 1]} : vector<8x64xf32> to vector<8x32xf32>
    %c8_i32_184 = arith.constant 8 : i32
    %372 = arith.muli %365, %c8_i32_184 : i32
    %373 = tpu.assume_multiple %372, 8 : i32
    %374 = arith.index_cast %373 : i32 to index
    %c32_185 = arith.constant 32 : index
    %375 = vector.load %arg7[%374, %c32_185] : memref<64x64xf32, #tpu.memory_space<vmem>>, vector<8x32xf32>
    tpu.vector_store %arg7[%374, %c32_185], %371 {strides = array<i32>} : memref<64x64xf32, #tpu.memory_space<vmem>>, vector<8x32xf32>,
    %c1_i32_186 = arith.constant 1 : i32
    return
  }
  func.func @transform_0(%arg0: i32) -> (i32, i32) {
    %c0_i32 = arith.constant 0 : i32
    %c0_i32_0 = arith.constant 0 : i32
    return %arg0, %c0_i32 : i32, i32
  }
  func.func @transform_1(%arg0: i32) -> (i32, i32) {
    %c0_i32 = arith.constant 0 : i32
    %0 = arith.subi %c0_i32, %arg0 : i32
    %c0_i32_0 = arith.constant 0 : i32
    %c0_i32_1 = arith.constant 0 : i32
    return %0, %c0_i32_0 : i32, i32
  }
  func.func @transform_2(%arg0: i32) -> (i32, i32) {
    %c0_i32 = arith.constant 0 : i32
    %c0_i32_0 = arith.constant 0 : i32
    %c0_i32_1 = arith.constant 0 : i32
    return %c0_i32, %c0_i32_0 : i32, i32
  }
  func.func @transform_3(%arg0: i32) -> (i32, i32) {
    %c0_i32 = arith.constant 0 : i32
    %c0_i32_0 = arith.constant 0 : i32
    %c0_i32_1 = arith.constant 0 : i32
    return %c0_i32, %c0_i32_0 : i32, i32
  }
  func.func @transform_4(%arg0: i32) -> (i32, i32) {
    %c0_i32 = arith.constant 0 : i32
    %c0_i32_0 = arith.constant 0 : i32
    %c0_i32_1 = arith.constant 0 : i32
    return %c0_i32, %c0_i32_0 : i32, i32
  }
  func.func @transform_5(%arg0: i32) -> (i32, i32) {
    %c0_i32 = arith.constant 0 : i32
    %c0_i32_0 = arith.constant 0 : i32
    %c0_i32_1 = arith.constant 0 : i32
    return %c0_i32, %c0_i32_0 : i32, i32
  }
  func.func @transform_6(%arg0: i32) -> (i32, i32) {
    %c0_i32 = arith.constant 0 : i32
    %c0_i32_0 = arith.constant 0 : i32
    %c0_i32_1 = arith.constant 0 : i32
    return %c0_i32, %c0_i32_0 : i32, i32
  }
}

module attributes {stable_mosaic.version = 11 : i64} {
  func.func @_bilstm_layer_kernel(%arg0: i32, %arg1: memref<64x16xf32, #tpu.memory_space<vmem>>, %arg2: memref<64x16xf32, #tpu.memory_space<vmem>>, %arg3: memref<16x256xf32, #tpu.memory_space<vmem>>, %arg4: memref<16x256xf32, #tpu.memory_space<vmem>>, %arg5: memref<64x256xf32, #tpu.memory_space<vmem>>, %arg6: memref<1x256xf32, #tpu.memory_space<vmem>>, %arg7: memref<64x64xf32, #tpu.memory_space<vmem>>, %arg8: memref<64x256xf32, #tpu.memory_space<vmem>>, %arg9: memref<64x256xf32, #tpu.memory_space<vmem>>, %arg10: memref<8x64xf32, #tpu.memory_space<vmem>>, %arg11: memref<8x64xf32, #tpu.memory_space<vmem>>) attributes {dimension_semantics = [#tpu.dimension_semantics<arbitrary>], iteration_bounds = array<i64: 1>, scalar_prefetch = 0 : i64, scratch_operands = 4 : i64, tpu.core_type = #tpu.core_type<tc>, window_params = [{transform_indices = @transform_0, window_bounds = array<i64: 64, 16>}, {transform_indices = @transform_1, window_bounds = array<i64: 64, 16>}, {pipeline_mode = #tpu.pipeline_mode<synchronous>, transform_indices = @transform_2, window_bounds = array<i64: 16, 256>}, {pipeline_mode = #tpu.pipeline_mode<synchronous>, transform_indices = @transform_3, window_bounds = array<i64: 16, 256>}, {pipeline_mode = #tpu.pipeline_mode<synchronous>, transform_indices = @transform_4, window_bounds = array<i64: 64, 256>}, {pipeline_mode = #tpu.pipeline_mode<synchronous>, transform_indices = @transform_5, window_bounds = array<i64: 1, 256>}, {pipeline_mode = #tpu.pipeline_mode<synchronous>, transform_indices = @transform_6, window_bounds = array<i64: 64, 64>}]} {
    %c0_i32 = arith.constant 0 : i32
    %0 = arith.cmpi eq, %arg0, %c0_i32 : i32
    %1 = arith.extui %0 : i1 to i32
    %c0_i32_0 = arith.constant 0 : i32
    %2 = arith.cmpi ne, %1, %c0_i32_0 : i32
    scf.if %2 {
      %cst_187 = arith.constant 0.000000e+00 : f32
      %376 = vector.broadcast %cst_187 : f32 to vector<8x64xf32>
      %c0_188 = arith.constant 0 : index
      %c0_189 = arith.constant 0 : index
      %377 = vector.load %arg10[%c0_188, %c0_189] : memref<8x64xf32, #tpu.memory_space<vmem>>, vector<8x64xf32>
      tpu.vector_store %arg10[%c0_188, %c0_189], %376 {strides = array<i32>} : memref<8x64xf32, #tpu.memory_space<vmem>>, vector<8x64xf32>,
      %cst_190 = arith.constant 0.000000e+00 : f32
      %378 = vector.broadcast %cst_190 : f32 to vector<8x64xf32>
      %c0_191 = arith.constant 0 : index
      %c0_192 = arith.constant 0 : index
      %379 = vector.load %arg11[%c0_191, %c0_192] : memref<8x64xf32, #tpu.memory_space<vmem>>, vector<8x64xf32>
      tpu.vector_store %arg11[%c0_191, %c0_192], %378 {strides = array<i32>} : memref<8x64xf32, #tpu.memory_space<vmem>>, vector<8x64xf32>,
    } else {
    }
    %c0 = arith.constant 0 : index
    %c0_1 = arith.constant 0 : index
    %3 = vector.load %arg1[%c0, %c0_1] : memref<64x16xf32, #tpu.memory_space<vmem>>, vector<64x16xf32>
    %c0_2 = arith.constant 0 : index
    %c0_3 = arith.constant 0 : index
    %4 = vector.load %arg3[%c0_2, %c0_3] : memref<16x256xf32, #tpu.memory_space<vmem>>, vector<16x256xf32>
    %cst = arith.constant dense<0.000000e+00> : vector<64x256xf32>
    %5 = tpu.matmul %3, %4, %cst {dimension_numbers = #tpu.dot_dimension_numbers<[1], [0], [0], [1], [0, 0, 1, 1], [], []>} : vector<64x16xf32>, vector<16x256xf32>, vector<64x256xf32> -> vector<64x256xf32>
    %c0_4 = arith.constant 0 : index
    %c0_5 = arith.constant 0 : index
    %6 = vector.load %arg6[%c0_4, %c0_5] : memref<1x256xf32, #tpu.memory_space<vmem>>, vector<1x256xf32>
    %7 = vector.broadcast %6 : vector<1x256xf32> to vector<64x256xf32>
    %8 = arith.addf %5, %7 : vector<64x256xf32>
    %c0_6 = arith.constant 0 : index
    %c0_7 = arith.constant 0 : index
    %9 = vector.load %arg8[%c0_6, %c0_7] : memref<64x256xf32, #tpu.memory_space<vmem>>, vector<64x256xf32>
    tpu.vector_store %arg8[%c0_6, %c0_7], %8 {strides = array<i32>} : memref<64x256xf32, #tpu.memory_space<vmem>>, vector<64x256xf32>,
    %c0_8 = arith.constant 0 : index
    %c0_9 = arith.constant 0 : index
    %10 = vector.load %arg2[%c0_8, %c0_9] : memref<64x16xf32, #tpu.memory_space<vmem>>, vector<64x16xf32>
    %c0_10 = arith.constant 0 : index
    %c0_11 = arith.constant 0 : index
    %11 = vector.load %arg4[%c0_10, %c0_11] : memref<16x256xf32, #tpu.memory_space<vmem>>, vector<16x256xf32>
    %cst_12 = arith.constant dense<0.000000e+00> : vector<64x256xf32>
    %12 = tpu.matmul %10, %11, %cst_12 {dimension_numbers = #tpu.dot_dimension_numbers<[1], [0], [0], [1], [0, 0, 1, 1], [], []>} : vector<64x16xf32>, vector<16x256xf32>, vector<64x256xf32> -> vector<64x256xf32>
    %c0_13 = arith.constant 0 : index
    %c0_14 = arith.constant 0 : index
    %13 = vector.load %arg9[%c0_13, %c0_14] : memref<64x256xf32, #tpu.memory_space<vmem>>, vector<64x256xf32>
    tpu.vector_store %arg9[%c0_13, %c0_14], %12 {strides = array<i32>} : memref<64x256xf32, #tpu.memory_space<vmem>>, vector<64x256xf32>,
    %c0_15 = arith.constant 0 : index
    %c0_16 = arith.constant 0 : index
    %14 = vector.load %arg5[%c0_15, %c0_16] : memref<64x256xf32, #tpu.memory_space<vmem>>, vector<64x256xf32>
    %c8_i32 = arith.constant 8 : i32
    %15 = arith.muli %arg0, %c8_i32 : i32
    %c0_i32_17 = arith.constant 0 : i32
    %c8_i32_18 = arith.constant 8 : i32
    %16 = arith.muli %c0_i32_17, %c8_i32_18 : i32
    %c0_i32_19 = arith.constant 0 : i32
    %17 = arith.addi %16, %c0_i32_19 : i32
    %c8_i32_20 = arith.constant 8 : i32
    %18 = arith.muli %17, %c8_i32_20 : i32
    %19 = tpu.assume_multiple %18, 8 : i32
    %c7_i32 = arith.constant 7 : i32
    %20 = arith.subi %c7_i32, %17 : i32
    %c8_i32_21 = arith.constant 8 : i32
    %21 = arith.muli %20, %c8_i32_21 : i32
    %22 = tpu.assume_multiple %21, 8 : i32
    %23 = arith.index_cast %19 : i32 to index
    %c0_22 = arith.constant 0 : index
    %24 = vector.load %arg8[%23, %c0_22] : memref<64x256xf32, #tpu.memory_space<vmem>>, vector<8x256xf32>
    %25 = arith.index_cast %22 : i32 to index
    %c0_23 = arith.constant 0 : index
    %26 = vector.load %arg9[%25, %c0_23] : memref<64x256xf32, #tpu.memory_space<vmem>>, vector<8x256xf32>
    %27 = arith.addf %24, %26 : vector<8x256xf32>
    %c0_24 = arith.constant 0 : index
    %c0_25 = arith.constant 0 : index
    %28 = vector.load %arg10[%c0_24, %c0_25] : memref<8x64xf32, #tpu.memory_space<vmem>>, vector<8x64xf32>
    %cst_26 = arith.constant dense<0.000000e+00> : vector<8x256xf32>
    %29 = tpu.matmul %28, %14, %cst_26 {dimension_numbers = #tpu.dot_dimension_numbers<[1], [0], [0], [1], [0, 0, 1, 1], [], []>} : vector<8x64xf32>, vector<64x256xf32>, vector<8x256xf32> -> vector<8x256xf32>
    %30 = arith.addf %27, %29 : vector<8x256xf32>
    %31 = arith.negf %30 : vector<8x256xf32>
    %32 = math.exp %31 : vector<8x256xf32>
    %cst_27 = arith.constant 1.000000e+00 : f32
    %33 = vector.broadcast %cst_27 : f32 to vector<8x256xf32>
    %34 = arith.addf %33, %32 : vector<8x256xf32>
    %35 = arith.divf %33, %34 : vector<8x256xf32>
    %36 = vector.extract_strided_slice %30 {offsets = [0, 128], sizes = [8, 64], strides = [1, 1]} : vector<8x256xf32> to vector<8x64xf32>
    %37 = math.tanh %36 : vector<8x64xf32>
    %38 = vector.extract_strided_slice %35 {offsets = [0, 64], sizes = [8, 64], strides = [1, 1]} : vector<8x256xf32> to vector<8x64xf32>
    %c0_28 = arith.constant 0 : index
    %c0_29 = arith.constant 0 : index
    %39 = vector.load %arg11[%c0_28, %c0_29] : memref<8x64xf32, #tpu.memory_space<vmem>>, vector<8x64xf32>
    %40 = arith.mulf %38, %39 : vector<8x64xf32>
    %41 = vector.extract_strided_slice %35 {offsets = [0, 0], sizes = [8, 64], strides = [1, 1]} : vector<8x256xf32> to vector<8x64xf32>
    %42 = arith.mulf %41, %37 : vector<8x64xf32>
    %43 = arith.addf %40, %42 : vector<8x64xf32>
    %44 = vector.extract_strided_slice %35 {offsets = [0, 192], sizes = [8, 64], strides = [1, 1]} : vector<8x256xf32> to vector<8x64xf32>
    %45 = math.tanh %43 : vector<8x64xf32>
    %46 = arith.mulf %44, %45 : vector<8x64xf32>
    %c0_30 = arith.constant 0 : index
    %c0_31 = arith.constant 0 : index
    %47 = vector.load %arg10[%c0_30, %c0_31] : memref<8x64xf32, #tpu.memory_space<vmem>>, vector<8x64xf32>
    tpu.vector_store %arg10[%c0_30, %c0_31], %46 {strides = array<i32>} : memref<8x64xf32, #tpu.memory_space<vmem>>, vector<8x64xf32>,
    %c0_32 = arith.constant 0 : index
    %c0_33 = arith.constant 0 : index
    %48 = vector.load %arg11[%c0_32, %c0_33] : memref<8x64xf32, #tpu.memory_space<vmem>>, vector<8x64xf32>
    tpu.vector_store %arg11[%c0_32, %c0_33], %43 {strides = array<i32>} : memref<8x64xf32, #tpu.memory_space<vmem>>, vector<8x64xf32>,
    %49 = arith.addi %15, %17 : i32
    %c7_i32_34 = arith.constant 7 : i32
    %50 = arith.subi %c7_i32_34, %49 : i32
    %51 = vector.extract_strided_slice %46 {offsets = [0, 0], sizes = [8, 32], strides = [1, 1]} : vector<8x64xf32> to vector<8x32xf32>
    %c8_i32_35 = arith.constant 8 : i32
    %52 = arith.muli %49, %c8_i32_35 : i32
    %53 = tpu.assume_multiple %52, 8 : i32
    %54 = arith.index_cast %53 : i32 to index
    %c0_36 = arith.constant 0 : index
    %55 = vector.load %arg7[%54, %c0_36] : memref<64x64xf32, #tpu.memory_space<vmem>>, vector<8x32xf32>
    tpu.vector_store %arg7[%54, %c0_36], %51 {strides = array<i32>} : memref<64x64xf32, #tpu.memory_space<vmem>>, vector<8x32xf32>,
    %56 = vector.extract_strided_slice %46 {offsets = [0, 32], sizes = [8, 32], strides = [1, 1]} : vector<8x64xf32> to vector<8x32xf32>
    %c8_i32_37 = arith.constant 8 : i32
    %57 = arith.muli %50, %c8_i32_37 : i32
    %58 = tpu.assume_multiple %57, 8 : i32
    %59 = arith.index_cast %58 : i32 to index
    %c32 = arith.constant 32 : index
    %60 = vector.load %arg7[%59, %c32] : memref<64x64xf32, #tpu.memory_space<vmem>>, vector<8x32xf32>
    tpu.vector_store %arg7[%59, %c32], %56 {strides = array<i32>} : memref<64x64xf32, #tpu.memory_space<vmem>>, vector<8x32xf32>,
    %c8_i32_38 = arith.constant 8 : i32
    %61 = arith.muli %c0_i32_17, %c8_i32_38 : i32
    %c1_i32 = arith.constant 1 : i32
    %62 = arith.addi %61, %c1_i32 : i32
    %c8_i32_39 = arith.constant 8 : i32
    %63 = arith.muli %62, %c8_i32_39 : i32
    %64 = tpu.assume_multiple %63, 8 : i32
    %c7_i32_40 = arith.constant 7 : i32
    %65 = arith.subi %c7_i32_40, %62 : i32
    %c8_i32_41 = arith.constant 8 : i32
    %66 = arith.muli %65, %c8_i32_41 : i32
    %67 = tpu.assume_multiple %66, 8 : i32
    %68 = arith.index_cast %64 : i32 to index
    %c0_42 = arith.constant 0 : index
    %69 = vector.load %arg8[%68, %c0_42] : memref<64x256xf32, #tpu.memory_space<vmem>>, vector<8x256xf32>
    %70 = arith.index_cast %67 : i32 to index
    %c0_43 = arith.constant 0 : index
    %71 = vector.load %arg9[%70, %c0_43] : memref<64x256xf32, #tpu.memory_space<vmem>>, vector<8x256xf32>
    %72 = arith.addf %69, %71 : vector<8x256xf32>
    %c0_44 = arith.constant 0 : index
    %c0_45 = arith.constant 0 : index
    %73 = vector.load %arg10[%c0_44, %c0_45] : memref<8x64xf32, #tpu.memory_space<vmem>>, vector<8x64xf32>
    %cst_46 = arith.constant dense<0.000000e+00> : vector<8x256xf32>
    %74 = tpu.matmul %73, %14, %cst_46 {dimension_numbers = #tpu.dot_dimension_numbers<[1], [0], [0], [1], [0, 0, 1, 1], [], []>} : vector<8x64xf32>, vector<64x256xf32>, vector<8x256xf32> -> vector<8x256xf32>
    %75 = arith.addf %72, %74 : vector<8x256xf32>
    %76 = arith.negf %75 : vector<8x256xf32>
    %77 = math.exp %76 : vector<8x256xf32>
    %cst_47 = arith.constant 1.000000e+00 : f32
    %78 = vector.broadcast %cst_47 : f32 to vector<8x256xf32>
    %79 = arith.addf %78, %77 : vector<8x256xf32>
    %80 = arith.divf %78, %79 : vector<8x256xf32>
    %81 = vector.extract_strided_slice %75 {offsets = [0, 128], sizes = [8, 64], strides = [1, 1]} : vector<8x256xf32> to vector<8x64xf32>
    %82 = math.tanh %81 : vector<8x64xf32>
    %83 = vector.extract_strided_slice %80 {offsets = [0, 64], sizes = [8, 64], strides = [1, 1]} : vector<8x256xf32> to vector<8x64xf32>
    %c0_48 = arith.constant 0 : index
    %c0_49 = arith.constant 0 : index
    %84 = vector.load %arg11[%c0_48, %c0_49] : memref<8x64xf32, #tpu.memory_space<vmem>>, vector<8x64xf32>
    %85 = arith.mulf %83, %84 : vector<8x64xf32>
    %86 = vector.extract_strided_slice %80 {offsets = [0, 0], sizes = [8, 64], strides = [1, 1]} : vector<8x256xf32> to vector<8x64xf32>
    %87 = arith.mulf %86, %82 : vector<8x64xf32>
    %88 = arith.addf %85, %87 : vector<8x64xf32>
    %89 = vector.extract_strided_slice %80 {offsets = [0, 192], sizes = [8, 64], strides = [1, 1]} : vector<8x256xf32> to vector<8x64xf32>
    %90 = math.tanh %88 : vector<8x64xf32>
    %91 = arith.mulf %89, %90 : vector<8x64xf32>
    %c0_50 = arith.constant 0 : index
    %c0_51 = arith.constant 0 : index
    %92 = vector.load %arg10[%c0_50, %c0_51] : memref<8x64xf32, #tpu.memory_space<vmem>>, vector<8x64xf32>
    tpu.vector_store %arg10[%c0_50, %c0_51], %91 {strides = array<i32>} : memref<8x64xf32, #tpu.memory_space<vmem>>, vector<8x64xf32>,
    %c0_52 = arith.constant 0 : index
    %c0_53 = arith.constant 0 : index
    %93 = vector.load %arg11[%c0_52, %c0_53] : memref<8x64xf32, #tpu.memory_space<vmem>>, vector<8x64xf32>
    tpu.vector_store %arg11[%c0_52, %c0_53], %88 {strides = array<i32>} : memref<8x64xf32, #tpu.memory_space<vmem>>, vector<8x64xf32>,
    %94 = arith.addi %15, %62 : i32
    %c7_i32_54 = arith.constant 7 : i32
    %95 = arith.subi %c7_i32_54, %94 : i32
    %96 = vector.extract_strided_slice %91 {offsets = [0, 0], sizes = [8, 32], strides = [1, 1]} : vector<8x64xf32> to vector<8x32xf32>
    %c8_i32_55 = arith.constant 8 : i32
    %97 = arith.muli %94, %c8_i32_55 : i32
    %98 = tpu.assume_multiple %97, 8 : i32
    %99 = arith.index_cast %98 : i32 to index
    %c0_56 = arith.constant 0 : index
    %100 = vector.load %arg7[%99, %c0_56] : memref<64x64xf32, #tpu.memory_space<vmem>>, vector<8x32xf32>
    tpu.vector_store %arg7[%99, %c0_56], %96 {strides = array<i32>} : memref<64x64xf32, #tpu.memory_space<vmem>>, vector<8x32xf32>,
    %101 = vector.extract_strided_slice %91 {offsets = [0, 32], sizes = [8, 32], strides = [1, 1]} : vector<8x64xf32> to vector<8x32xf32>
    %c8_i32_57 = arith.constant 8 : i32
    %102 = arith.muli %95, %c8_i32_57 : i32
    %103 = tpu.assume_multiple %102, 8 : i32
    %104 = arith.index_cast %103 : i32 to index
    %c32_58 = arith.constant 32 : index
    %105 = vector.load %arg7[%104, %c32_58] : memref<64x64xf32, #tpu.memory_space<vmem>>, vector<8x32xf32>
    tpu.vector_store %arg7[%104, %c32_58], %101 {strides = array<i32>} : memref<64x64xf32, #tpu.memory_space<vmem>>, vector<8x32xf32>,
    %c8_i32_59 = arith.constant 8 : i32
    %106 = arith.muli %c0_i32_17, %c8_i32_59 : i32
    %c2_i32 = arith.constant 2 : i32
    %107 = arith.addi %106, %c2_i32 : i32
    %c8_i32_60 = arith.constant 8 : i32
    %108 = arith.muli %107, %c8_i32_60 : i32
    %109 = tpu.assume_multiple %108, 8 : i32
    %c7_i32_61 = arith.constant 7 : i32
    %110 = arith.subi %c7_i32_61, %107 : i32
    %c8_i32_62 = arith.constant 8 : i32
    %111 = arith.muli %110, %c8_i32_62 : i32
    %112 = tpu.assume_multiple %111, 8 : i32
    %113 = arith.index_cast %109 : i32 to index
    %c0_63 = arith.constant 0 : index
    %114 = vector.load %arg8[%113, %c0_63] : memref<64x256xf32, #tpu.memory_space<vmem>>, vector<8x256xf32>
    %115 = arith.index_cast %112 : i32 to index
    %c0_64 = arith.constant 0 : index
    %116 = vector.load %arg9[%115, %c0_64] : memref<64x256xf32, #tpu.memory_space<vmem>>, vector<8x256xf32>
    %117 = arith.addf %114, %116 : vector<8x256xf32>
    %c0_65 = arith.constant 0 : index
    %c0_66 = arith.constant 0 : index
    %118 = vector.load %arg10[%c0_65, %c0_66] : memref<8x64xf32, #tpu.memory_space<vmem>>, vector<8x64xf32>
    %cst_67 = arith.constant dense<0.000000e+00> : vector<8x256xf32>
    %119 = tpu.matmul %118, %14, %cst_67 {dimension_numbers = #tpu.dot_dimension_numbers<[1], [0], [0], [1], [0, 0, 1, 1], [], []>} : vector<8x64xf32>, vector<64x256xf32>, vector<8x256xf32> -> vector<8x256xf32>
    %120 = arith.addf %117, %119 : vector<8x256xf32>
    %121 = arith.negf %120 : vector<8x256xf32>
    %122 = math.exp %121 : vector<8x256xf32>
    %cst_68 = arith.constant 1.000000e+00 : f32
    %123 = vector.broadcast %cst_68 : f32 to vector<8x256xf32>
    %124 = arith.addf %123, %122 : vector<8x256xf32>
    %125 = arith.divf %123, %124 : vector<8x256xf32>
    %126 = vector.extract_strided_slice %120 {offsets = [0, 128], sizes = [8, 64], strides = [1, 1]} : vector<8x256xf32> to vector<8x64xf32>
    %127 = math.tanh %126 : vector<8x64xf32>
    %128 = vector.extract_strided_slice %125 {offsets = [0, 64], sizes = [8, 64], strides = [1, 1]} : vector<8x256xf32> to vector<8x64xf32>
    %c0_69 = arith.constant 0 : index
    %c0_70 = arith.constant 0 : index
    %129 = vector.load %arg11[%c0_69, %c0_70] : memref<8x64xf32, #tpu.memory_space<vmem>>, vector<8x64xf32>
    %130 = arith.mulf %128, %129 : vector<8x64xf32>
    %131 = vector.extract_strided_slice %125 {offsets = [0, 0], sizes = [8, 64], strides = [1, 1]} : vector<8x256xf32> to vector<8x64xf32>
    %132 = arith.mulf %131, %127 : vector<8x64xf32>
    %133 = arith.addf %130, %132 : vector<8x64xf32>
    %134 = vector.extract_strided_slice %125 {offsets = [0, 192], sizes = [8, 64], strides = [1, 1]} : vector<8x256xf32> to vector<8x64xf32>
    %135 = math.tanh %133 : vector<8x64xf32>
    %136 = arith.mulf %134, %135 : vector<8x64xf32>
    %c0_71 = arith.constant 0 : index
    %c0_72 = arith.constant 0 : index
    %137 = vector.load %arg10[%c0_71, %c0_72] : memref<8x64xf32, #tpu.memory_space<vmem>>, vector<8x64xf32>
    tpu.vector_store %arg10[%c0_71, %c0_72], %136 {strides = array<i32>} : memref<8x64xf32, #tpu.memory_space<vmem>>, vector<8x64xf32>,
    %c0_73 = arith.constant 0 : index
    %c0_74 = arith.constant 0 : index
    %138 = vector.load %arg11[%c0_73, %c0_74] : memref<8x64xf32, #tpu.memory_space<vmem>>, vector<8x64xf32>
    tpu.vector_store %arg11[%c0_73, %c0_74], %133 {strides = array<i32>} : memref<8x64xf32, #tpu.memory_space<vmem>>, vector<8x64xf32>,
    %139 = arith.addi %15, %107 : i32
    %c7_i32_75 = arith.constant 7 : i32
    %140 = arith.subi %c7_i32_75, %139 : i32
    %141 = vector.extract_strided_slice %136 {offsets = [0, 0], sizes = [8, 32], strides = [1, 1]} : vector<8x64xf32> to vector<8x32xf32>
    %c8_i32_76 = arith.constant 8 : i32
    %142 = arith.muli %139, %c8_i32_76 : i32
    %143 = tpu.assume_multiple %142, 8 : i32
    %144 = arith.index_cast %143 : i32 to index
    %c0_77 = arith.constant 0 : index
    %145 = vector.load %arg7[%144, %c0_77] : memref<64x64xf32, #tpu.memory_space<vmem>>, vector<8x32xf32>
    tpu.vector_store %arg7[%144, %c0_77], %141 {strides = array<i32>} : memref<64x64xf32, #tpu.memory_space<vmem>>, vector<8x32xf32>,
    %146 = vector.extract_strided_slice %136 {offsets = [0, 32], sizes = [8, 32], strides = [1, 1]} : vector<8x64xf32> to vector<8x32xf32>
    %c8_i32_78 = arith.constant 8 : i32
    %147 = arith.muli %140, %c8_i32_78 : i32
    %148 = tpu.assume_multiple %147, 8 : i32
    %149 = arith.index_cast %148 : i32 to index
    %c32_79 = arith.constant 32 : index
    %150 = vector.load %arg7[%149, %c32_79] : memref<64x64xf32, #tpu.memory_space<vmem>>, vector<8x32xf32>
    tpu.vector_store %arg7[%149, %c32_79], %146 {strides = array<i32>} : memref<64x64xf32, #tpu.memory_space<vmem>>, vector<8x32xf32>,
    %c8_i32_80 = arith.constant 8 : i32
    %151 = arith.muli %c0_i32_17, %c8_i32_80 : i32
    %c3_i32 = arith.constant 3 : i32
    %152 = arith.addi %151, %c3_i32 : i32
    %c8_i32_81 = arith.constant 8 : i32
    %153 = arith.muli %152, %c8_i32_81 : i32
    %154 = tpu.assume_multiple %153, 8 : i32
    %c7_i32_82 = arith.constant 7 : i32
    %155 = arith.subi %c7_i32_82, %152 : i32
    %c8_i32_83 = arith.constant 8 : i32
    %156 = arith.muli %155, %c8_i32_83 : i32
    %157 = tpu.assume_multiple %156, 8 : i32
    %158 = arith.index_cast %154 : i32 to index
    %c0_84 = arith.constant 0 : index
    %159 = vector.load %arg8[%158, %c0_84] : memref<64x256xf32, #tpu.memory_space<vmem>>, vector<8x256xf32>
    %160 = arith.index_cast %157 : i32 to index
    %c0_85 = arith.constant 0 : index
    %161 = vector.load %arg9[%160, %c0_85] : memref<64x256xf32, #tpu.memory_space<vmem>>, vector<8x256xf32>
    %162 = arith.addf %159, %161 : vector<8x256xf32>
    %c0_86 = arith.constant 0 : index
    %c0_87 = arith.constant 0 : index
    %163 = vector.load %arg10[%c0_86, %c0_87] : memref<8x64xf32, #tpu.memory_space<vmem>>, vector<8x64xf32>
    %cst_88 = arith.constant dense<0.000000e+00> : vector<8x256xf32>
    %164 = tpu.matmul %163, %14, %cst_88 {dimension_numbers = #tpu.dot_dimension_numbers<[1], [0], [0], [1], [0, 0, 1, 1], [], []>} : vector<8x64xf32>, vector<64x256xf32>, vector<8x256xf32> -> vector<8x256xf32>
    %165 = arith.addf %162, %164 : vector<8x256xf32>
    %166 = arith.negf %165 : vector<8x256xf32>
    %167 = math.exp %166 : vector<8x256xf32>
    %cst_89 = arith.constant 1.000000e+00 : f32
    %168 = vector.broadcast %cst_89 : f32 to vector<8x256xf32>
    %169 = arith.addf %168, %167 : vector<8x256xf32>
    %170 = arith.divf %168, %169 : vector<8x256xf32>
    %171 = vector.extract_strided_slice %165 {offsets = [0, 128], sizes = [8, 64], strides = [1, 1]} : vector<8x256xf32> to vector<8x64xf32>
    %172 = math.tanh %171 : vector<8x64xf32>
    %173 = vector.extract_strided_slice %170 {offsets = [0, 64], sizes = [8, 64], strides = [1, 1]} : vector<8x256xf32> to vector<8x64xf32>
    %c0_90 = arith.constant 0 : index
    %c0_91 = arith.constant 0 : index
    %174 = vector.load %arg11[%c0_90, %c0_91] : memref<8x64xf32, #tpu.memory_space<vmem>>, vector<8x64xf32>
    %175 = arith.mulf %173, %174 : vector<8x64xf32>
    %176 = vector.extract_strided_slice %170 {offsets = [0, 0], sizes = [8, 64], strides = [1, 1]} : vector<8x256xf32> to vector<8x64xf32>
    %177 = arith.mulf %176, %172 : vector<8x64xf32>
    %178 = arith.addf %175, %177 : vector<8x64xf32>
    %179 = vector.extract_strided_slice %170 {offsets = [0, 192], sizes = [8, 64], strides = [1, 1]} : vector<8x256xf32> to vector<8x64xf32>
    %180 = math.tanh %178 : vector<8x64xf32>
    %181 = arith.mulf %179, %180 : vector<8x64xf32>
    %c0_92 = arith.constant 0 : index
    %c0_93 = arith.constant 0 : index
    %182 = vector.load %arg10[%c0_92, %c0_93] : memref<8x64xf32, #tpu.memory_space<vmem>>, vector<8x64xf32>
    tpu.vector_store %arg10[%c0_92, %c0_93], %181 {strides = array<i32>} : memref<8x64xf32, #tpu.memory_space<vmem>>, vector<8x64xf32>,
    %c0_94 = arith.constant 0 : index
    %c0_95 = arith.constant 0 : index
    %183 = vector.load %arg11[%c0_94, %c0_95] : memref<8x64xf32, #tpu.memory_space<vmem>>, vector<8x64xf32>
    tpu.vector_store %arg11[%c0_94, %c0_95], %178 {strides = array<i32>} : memref<8x64xf32, #tpu.memory_space<vmem>>, vector<8x64xf32>,
    %184 = arith.addi %15, %152 : i32
    %c7_i32_96 = arith.constant 7 : i32
    %185 = arith.subi %c7_i32_96, %184 : i32
    %186 = vector.extract_strided_slice %181 {offsets = [0, 0], sizes = [8, 32], strides = [1, 1]} : vector<8x64xf32> to vector<8x32xf32>
    %c8_i32_97 = arith.constant 8 : i32
    %187 = arith.muli %184, %c8_i32_97 : i32
    %188 = tpu.assume_multiple %187, 8 : i32
    %189 = arith.index_cast %188 : i32 to index
    %c0_98 = arith.constant 0 : index
    %190 = vector.load %arg7[%189, %c0_98] : memref<64x64xf32, #tpu.memory_space<vmem>>, vector<8x32xf32>
    tpu.vector_store %arg7[%189, %c0_98], %186 {strides = array<i32>} : memref<64x64xf32, #tpu.memory_space<vmem>>, vector<8x32xf32>,
    %191 = vector.extract_strided_slice %181 {offsets = [0, 32], sizes = [8, 32], strides = [1, 1]} : vector<8x64xf32> to vector<8x32xf32>
    %c8_i32_99 = arith.constant 8 : i32
    %192 = arith.muli %185, %c8_i32_99 : i32
    %193 = tpu.assume_multiple %192, 8 : i32
    %194 = arith.index_cast %193 : i32 to index
    %c32_100 = arith.constant 32 : index
    %195 = vector.load %arg7[%194, %c32_100] : memref<64x64xf32, #tpu.memory_space<vmem>>, vector<8x32xf32>
    tpu.vector_store %arg7[%194, %c32_100], %191 {strides = array<i32>} : memref<64x64xf32, #tpu.memory_space<vmem>>, vector<8x32xf32>,
    %c8_i32_101 = arith.constant 8 : i32
    %196 = arith.muli %c0_i32_17, %c8_i32_101 : i32
    %c4_i32 = arith.constant 4 : i32
    %197 = arith.addi %196, %c4_i32 : i32
    %c8_i32_102 = arith.constant 8 : i32
    %198 = arith.muli %197, %c8_i32_102 : i32
    %199 = tpu.assume_multiple %198, 8 : i32
    %c7_i32_103 = arith.constant 7 : i32
    %200 = arith.subi %c7_i32_103, %197 : i32
    %c8_i32_104 = arith.constant 8 : i32
    %201 = arith.muli %200, %c8_i32_104 : i32
    %202 = tpu.assume_multiple %201, 8 : i32
    %203 = arith.index_cast %199 : i32 to index
    %c0_105 = arith.constant 0 : index
    %204 = vector.load %arg8[%203, %c0_105] : memref<64x256xf32, #tpu.memory_space<vmem>>, vector<8x256xf32>
    %205 = arith.index_cast %202 : i32 to index
    %c0_106 = arith.constant 0 : index
    %206 = vector.load %arg9[%205, %c0_106] : memref<64x256xf32, #tpu.memory_space<vmem>>, vector<8x256xf32>
    %207 = arith.addf %204, %206 : vector<8x256xf32>
    %c0_107 = arith.constant 0 : index
    %c0_108 = arith.constant 0 : index
    %208 = vector.load %arg10[%c0_107, %c0_108] : memref<8x64xf32, #tpu.memory_space<vmem>>, vector<8x64xf32>
    %cst_109 = arith.constant dense<0.000000e+00> : vector<8x256xf32>
    %209 = tpu.matmul %208, %14, %cst_109 {dimension_numbers = #tpu.dot_dimension_numbers<[1], [0], [0], [1], [0, 0, 1, 1], [], []>} : vector<8x64xf32>, vector<64x256xf32>, vector<8x256xf32> -> vector<8x256xf32>
    %210 = arith.addf %207, %209 : vector<8x256xf32>
    %211 = arith.negf %210 : vector<8x256xf32>
    %212 = math.exp %211 : vector<8x256xf32>
    %cst_110 = arith.constant 1.000000e+00 : f32
    %213 = vector.broadcast %cst_110 : f32 to vector<8x256xf32>
    %214 = arith.addf %213, %212 : vector<8x256xf32>
    %215 = arith.divf %213, %214 : vector<8x256xf32>
    %216 = vector.extract_strided_slice %210 {offsets = [0, 128], sizes = [8, 64], strides = [1, 1]} : vector<8x256xf32> to vector<8x64xf32>
    %217 = math.tanh %216 : vector<8x64xf32>
    %218 = vector.extract_strided_slice %215 {offsets = [0, 64], sizes = [8, 64], strides = [1, 1]} : vector<8x256xf32> to vector<8x64xf32>
    %c0_111 = arith.constant 0 : index
    %c0_112 = arith.constant 0 : index
    %219 = vector.load %arg11[%c0_111, %c0_112] : memref<8x64xf32, #tpu.memory_space<vmem>>, vector<8x64xf32>
    %220 = arith.mulf %218, %219 : vector<8x64xf32>
    %221 = vector.extract_strided_slice %215 {offsets = [0, 0], sizes = [8, 64], strides = [1, 1]} : vector<8x256xf32> to vector<8x64xf32>
    %222 = arith.mulf %221, %217 : vector<8x64xf32>
    %223 = arith.addf %220, %222 : vector<8x64xf32>
    %224 = vector.extract_strided_slice %215 {offsets = [0, 192], sizes = [8, 64], strides = [1, 1]} : vector<8x256xf32> to vector<8x64xf32>
    %225 = math.tanh %223 : vector<8x64xf32>
    %226 = arith.mulf %224, %225 : vector<8x64xf32>
    %c0_113 = arith.constant 0 : index
    %c0_114 = arith.constant 0 : index
    %227 = vector.load %arg10[%c0_113, %c0_114] : memref<8x64xf32, #tpu.memory_space<vmem>>, vector<8x64xf32>
    tpu.vector_store %arg10[%c0_113, %c0_114], %226 {strides = array<i32>} : memref<8x64xf32, #tpu.memory_space<vmem>>, vector<8x64xf32>,
    %c0_115 = arith.constant 0 : index
    %c0_116 = arith.constant 0 : index
    %228 = vector.load %arg11[%c0_115, %c0_116] : memref<8x64xf32, #tpu.memory_space<vmem>>, vector<8x64xf32>
    tpu.vector_store %arg11[%c0_115, %c0_116], %223 {strides = array<i32>} : memref<8x64xf32, #tpu.memory_space<vmem>>, vector<8x64xf32>,
    %229 = arith.addi %15, %197 : i32
    %c7_i32_117 = arith.constant 7 : i32
    %230 = arith.subi %c7_i32_117, %229 : i32
    %231 = vector.extract_strided_slice %226 {offsets = [0, 0], sizes = [8, 32], strides = [1, 1]} : vector<8x64xf32> to vector<8x32xf32>
    %c8_i32_118 = arith.constant 8 : i32
    %232 = arith.muli %229, %c8_i32_118 : i32
    %233 = tpu.assume_multiple %232, 8 : i32
    %234 = arith.index_cast %233 : i32 to index
    %c0_119 = arith.constant 0 : index
    %235 = vector.load %arg7[%234, %c0_119] : memref<64x64xf32, #tpu.memory_space<vmem>>, vector<8x32xf32>
    tpu.vector_store %arg7[%234, %c0_119], %231 {strides = array<i32>} : memref<64x64xf32, #tpu.memory_space<vmem>>, vector<8x32xf32>,
    %236 = vector.extract_strided_slice %226 {offsets = [0, 32], sizes = [8, 32], strides = [1, 1]} : vector<8x64xf32> to vector<8x32xf32>
    %c8_i32_120 = arith.constant 8 : i32
    %237 = arith.muli %230, %c8_i32_120 : i32
    %238 = tpu.assume_multiple %237, 8 : i32
    %239 = arith.index_cast %238 : i32 to index
    %c32_121 = arith.constant 32 : index
    %240 = vector.load %arg7[%239, %c32_121] : memref<64x64xf32, #tpu.memory_space<vmem>>, vector<8x32xf32>
    tpu.vector_store %arg7[%239, %c32_121], %236 {strides = array<i32>} : memref<64x64xf32, #tpu.memory_space<vmem>>, vector<8x32xf32>,
    %c8_i32_122 = arith.constant 8 : i32
    %241 = arith.muli %c0_i32_17, %c8_i32_122 : i32
    %c5_i32 = arith.constant 5 : i32
    %242 = arith.addi %241, %c5_i32 : i32
    %c8_i32_123 = arith.constant 8 : i32
    %243 = arith.muli %242, %c8_i32_123 : i32
    %244 = tpu.assume_multiple %243, 8 : i32
    %c7_i32_124 = arith.constant 7 : i32
    %245 = arith.subi %c7_i32_124, %242 : i32
    %c8_i32_125 = arith.constant 8 : i32
    %246 = arith.muli %245, %c8_i32_125 : i32
    %247 = tpu.assume_multiple %246, 8 : i32
    %248 = arith.index_cast %244 : i32 to index
    %c0_126 = arith.constant 0 : index
    %249 = vector.load %arg8[%248, %c0_126] : memref<64x256xf32, #tpu.memory_space<vmem>>, vector<8x256xf32>
    %250 = arith.index_cast %247 : i32 to index
    %c0_127 = arith.constant 0 : index
    %251 = vector.load %arg9[%250, %c0_127] : memref<64x256xf32, #tpu.memory_space<vmem>>, vector<8x256xf32>
    %252 = arith.addf %249, %251 : vector<8x256xf32>
    %c0_128 = arith.constant 0 : index
    %c0_129 = arith.constant 0 : index
    %253 = vector.load %arg10[%c0_128, %c0_129] : memref<8x64xf32, #tpu.memory_space<vmem>>, vector<8x64xf32>
    %cst_130 = arith.constant dense<0.000000e+00> : vector<8x256xf32>
    %254 = tpu.matmul %253, %14, %cst_130 {dimension_numbers = #tpu.dot_dimension_numbers<[1], [0], [0], [1], [0, 0, 1, 1], [], []>} : vector<8x64xf32>, vector<64x256xf32>, vector<8x256xf32> -> vector<8x256xf32>
    %255 = arith.addf %252, %254 : vector<8x256xf32>
    %256 = arith.negf %255 : vector<8x256xf32>
    %257 = math.exp %256 : vector<8x256xf32>
    %cst_131 = arith.constant 1.000000e+00 : f32
    %258 = vector.broadcast %cst_131 : f32 to vector<8x256xf32>
    %259 = arith.addf %258, %257 : vector<8x256xf32>
    %260 = arith.divf %258, %259 : vector<8x256xf32>
    %261 = vector.extract_strided_slice %255 {offsets = [0, 128], sizes = [8, 64], strides = [1, 1]} : vector<8x256xf32> to vector<8x64xf32>
    %262 = math.tanh %261 : vector<8x64xf32>
    %263 = vector.extract_strided_slice %260 {offsets = [0, 64], sizes = [8, 64], strides = [1, 1]} : vector<8x256xf32> to vector<8x64xf32>
    %c0_132 = arith.constant 0 : index
    %c0_133 = arith.constant 0 : index
    %264 = vector.load %arg11[%c0_132, %c0_133] : memref<8x64xf32, #tpu.memory_space<vmem>>, vector<8x64xf32>
    %265 = arith.mulf %263, %264 : vector<8x64xf32>
    %266 = vector.extract_strided_slice %260 {offsets = [0, 0], sizes = [8, 64], strides = [1, 1]} : vector<8x256xf32> to vector<8x64xf32>
    %267 = arith.mulf %266, %262 : vector<8x64xf32>
    %268 = arith.addf %265, %267 : vector<8x64xf32>
    %269 = vector.extract_strided_slice %260 {offsets = [0, 192], sizes = [8, 64], strides = [1, 1]} : vector<8x256xf32> to vector<8x64xf32>
    %270 = math.tanh %268 : vector<8x64xf32>
    %271 = arith.mulf %269, %270 : vector<8x64xf32>
    %c0_134 = arith.constant 0 : index
    %c0_135 = arith.constant 0 : index
    %272 = vector.load %arg10[%c0_134, %c0_135] : memref<8x64xf32, #tpu.memory_space<vmem>>, vector<8x64xf32>
    tpu.vector_store %arg10[%c0_134, %c0_135], %271 {strides = array<i32>} : memref<8x64xf32, #tpu.memory_space<vmem>>, vector<8x64xf32>,
    %c0_136 = arith.constant 0 : index
    %c0_137 = arith.constant 0 : index
    %273 = vector.load %arg11[%c0_136, %c0_137] : memref<8x64xf32, #tpu.memory_space<vmem>>, vector<8x64xf32>
    tpu.vector_store %arg11[%c0_136, %c0_137], %268 {strides = array<i32>} : memref<8x64xf32, #tpu.memory_space<vmem>>, vector<8x64xf32>,
    %274 = arith.addi %15, %242 : i32
    %c7_i32_138 = arith.constant 7 : i32
    %275 = arith.subi %c7_i32_138, %274 : i32
    %276 = vector.extract_strided_slice %271 {offsets = [0, 0], sizes = [8, 32], strides = [1, 1]} : vector<8x64xf32> to vector<8x32xf32>
    %c8_i32_139 = arith.constant 8 : i32
    %277 = arith.muli %274, %c8_i32_139 : i32
    %278 = tpu.assume_multiple %277, 8 : i32
    %279 = arith.index_cast %278 : i32 to index
    %c0_140 = arith.constant 0 : index
    %280 = vector.load %arg7[%279, %c0_140] : memref<64x64xf32, #tpu.memory_space<vmem>>, vector<8x32xf32>
    tpu.vector_store %arg7[%279, %c0_140], %276 {strides = array<i32>} : memref<64x64xf32, #tpu.memory_space<vmem>>, vector<8x32xf32>,
    %281 = vector.extract_strided_slice %271 {offsets = [0, 32], sizes = [8, 32], strides = [1, 1]} : vector<8x64xf32> to vector<8x32xf32>
    %c8_i32_141 = arith.constant 8 : i32
    %282 = arith.muli %275, %c8_i32_141 : i32
    %283 = tpu.assume_multiple %282, 8 : i32
    %284 = arith.index_cast %283 : i32 to index
    %c32_142 = arith.constant 32 : index
    %285 = vector.load %arg7[%284, %c32_142] : memref<64x64xf32, #tpu.memory_space<vmem>>, vector<8x32xf32>
    tpu.vector_store %arg7[%284, %c32_142], %281 {strides = array<i32>} : memref<64x64xf32, #tpu.memory_space<vmem>>, vector<8x32xf32>,
    %c8_i32_143 = arith.constant 8 : i32
    %286 = arith.muli %c0_i32_17, %c8_i32_143 : i32
    %c6_i32 = arith.constant 6 : i32
    %287 = arith.addi %286, %c6_i32 : i32
    %c8_i32_144 = arith.constant 8 : i32
    %288 = arith.muli %287, %c8_i32_144 : i32
    %289 = tpu.assume_multiple %288, 8 : i32
    %c7_i32_145 = arith.constant 7 : i32
    %290 = arith.subi %c7_i32_145, %287 : i32
    %c8_i32_146 = arith.constant 8 : i32
    %291 = arith.muli %290, %c8_i32_146 : i32
    %292 = tpu.assume_multiple %291, 8 : i32
    %293 = arith.index_cast %289 : i32 to index
    %c0_147 = arith.constant 0 : index
    %294 = vector.load %arg8[%293, %c0_147] : memref<64x256xf32, #tpu.memory_space<vmem>>, vector<8x256xf32>
    %295 = arith.index_cast %292 : i32 to index
    %c0_148 = arith.constant 0 : index
    %296 = vector.load %arg9[%295, %c0_148] : memref<64x256xf32, #tpu.memory_space<vmem>>, vector<8x256xf32>
    %297 = arith.addf %294, %296 : vector<8x256xf32>
    %c0_149 = arith.constant 0 : index
    %c0_150 = arith.constant 0 : index
    %298 = vector.load %arg10[%c0_149, %c0_150] : memref<8x64xf32, #tpu.memory_space<vmem>>, vector<8x64xf32>
    %cst_151 = arith.constant dense<0.000000e+00> : vector<8x256xf32>
    %299 = tpu.matmul %298, %14, %cst_151 {dimension_numbers = #tpu.dot_dimension_numbers<[1], [0], [0], [1], [0, 0, 1, 1], [], []>} : vector<8x64xf32>, vector<64x256xf32>, vector<8x256xf32> -> vector<8x256xf32>
    %300 = arith.addf %297, %299 : vector<8x256xf32>
    %301 = arith.negf %300 : vector<8x256xf32>
    %302 = math.exp %301 : vector<8x256xf32>
    %cst_152 = arith.constant 1.000000e+00 : f32
    %303 = vector.broadcast %cst_152 : f32 to vector<8x256xf32>
    %304 = arith.addf %303, %302 : vector<8x256xf32>
    %305 = arith.divf %303, %304 : vector<8x256xf32>
    %306 = vector.extract_strided_slice %300 {offsets = [0, 128], sizes = [8, 64], strides = [1, 1]} : vector<8x256xf32> to vector<8x64xf32>
    %307 = math.tanh %306 : vector<8x64xf32>
    %308 = vector.extract_strided_slice %305 {offsets = [0, 64], sizes = [8, 64], strides = [1, 1]} : vector<8x256xf32> to vector<8x64xf32>
    %c0_153 = arith.constant 0 : index
    %c0_154 = arith.constant 0 : index
    %309 = vector.load %arg11[%c0_153, %c0_154] : memref<8x64xf32, #tpu.memory_space<vmem>>, vector<8x64xf32>
    %310 = arith.mulf %308, %309 : vector<8x64xf32>
    %311 = vector.extract_strided_slice %305 {offsets = [0, 0], sizes = [8, 64], strides = [1, 1]} : vector<8x256xf32> to vector<8x64xf32>
    %312 = arith.mulf %311, %307 : vector<8x64xf32>
    %313 = arith.addf %310, %312 : vector<8x64xf32>
    %314 = vector.extract_strided_slice %305 {offsets = [0, 192], sizes = [8, 64], strides = [1, 1]} : vector<8x256xf32> to vector<8x64xf32>
    %315 = math.tanh %313 : vector<8x64xf32>
    %316 = arith.mulf %314, %315 : vector<8x64xf32>
    %c0_155 = arith.constant 0 : index
    %c0_156 = arith.constant 0 : index
    %317 = vector.load %arg10[%c0_155, %c0_156] : memref<8x64xf32, #tpu.memory_space<vmem>>, vector<8x64xf32>
    tpu.vector_store %arg10[%c0_155, %c0_156], %316 {strides = array<i32>} : memref<8x64xf32, #tpu.memory_space<vmem>>, vector<8x64xf32>,
    %c0_157 = arith.constant 0 : index
    %c0_158 = arith.constant 0 : index
    %318 = vector.load %arg11[%c0_157, %c0_158] : memref<8x64xf32, #tpu.memory_space<vmem>>, vector<8x64xf32>
    tpu.vector_store %arg11[%c0_157, %c0_158], %313 {strides = array<i32>} : memref<8x64xf32, #tpu.memory_space<vmem>>, vector<8x64xf32>,
    %319 = arith.addi %15, %287 : i32
    %c7_i32_159 = arith.constant 7 : i32
    %320 = arith.subi %c7_i32_159, %319 : i32
    %321 = vector.extract_strided_slice %316 {offsets = [0, 0], sizes = [8, 32], strides = [1, 1]} : vector<8x64xf32> to vector<8x32xf32>
    %c8_i32_160 = arith.constant 8 : i32
    %322 = arith.muli %319, %c8_i32_160 : i32
    %323 = tpu.assume_multiple %322, 8 : i32
    %324 = arith.index_cast %323 : i32 to index
    %c0_161 = arith.constant 0 : index
    %325 = vector.load %arg7[%324, %c0_161] : memref<64x64xf32, #tpu.memory_space<vmem>>, vector<8x32xf32>
    tpu.vector_store %arg7[%324, %c0_161], %321 {strides = array<i32>} : memref<64x64xf32, #tpu.memory_space<vmem>>, vector<8x32xf32>,
    %326 = vector.extract_strided_slice %316 {offsets = [0, 32], sizes = [8, 32], strides = [1, 1]} : vector<8x64xf32> to vector<8x32xf32>
    %c8_i32_162 = arith.constant 8 : i32
    %327 = arith.muli %320, %c8_i32_162 : i32
    %328 = tpu.assume_multiple %327, 8 : i32
    %329 = arith.index_cast %328 : i32 to index
    %c32_163 = arith.constant 32 : index
    %330 = vector.load %arg7[%329, %c32_163] : memref<64x64xf32, #tpu.memory_space<vmem>>, vector<8x32xf32>
    tpu.vector_store %arg7[%329, %c32_163], %326 {strides = array<i32>} : memref<64x64xf32, #tpu.memory_space<vmem>>, vector<8x32xf32>,
    %c8_i32_164 = arith.constant 8 : i32
    %331 = arith.muli %c0_i32_17, %c8_i32_164 : i32
    %c7_i32_165 = arith.constant 7 : i32
    %332 = arith.addi %331, %c7_i32_165 : i32
    %c8_i32_166 = arith.constant 8 : i32
    %333 = arith.muli %332, %c8_i32_166 : i32
    %334 = tpu.assume_multiple %333, 8 : i32
    %c7_i32_167 = arith.constant 7 : i32
    %335 = arith.subi %c7_i32_167, %332 : i32
    %c8_i32_168 = arith.constant 8 : i32
    %336 = arith.muli %335, %c8_i32_168 : i32
    %337 = tpu.assume_multiple %336, 8 : i32
    %338 = arith.index_cast %334 : i32 to index
    %c0_169 = arith.constant 0 : index
    %339 = vector.load %arg8[%338, %c0_169] : memref<64x256xf32, #tpu.memory_space<vmem>>, vector<8x256xf32>
    %340 = arith.index_cast %337 : i32 to index
    %c0_170 = arith.constant 0 : index
    %341 = vector.load %arg9[%340, %c0_170] : memref<64x256xf32, #tpu.memory_space<vmem>>, vector<8x256xf32>
    %342 = arith.addf %339, %341 : vector<8x256xf32>
    %c0_171 = arith.constant 0 : index
    %c0_172 = arith.constant 0 : index
    %343 = vector.load %arg10[%c0_171, %c0_172] : memref<8x64xf32, #tpu.memory_space<vmem>>, vector<8x64xf32>
    %cst_173 = arith.constant dense<0.000000e+00> : vector<8x256xf32>
    %344 = tpu.matmul %343, %14, %cst_173 {dimension_numbers = #tpu.dot_dimension_numbers<[1], [0], [0], [1], [0, 0, 1, 1], [], []>} : vector<8x64xf32>, vector<64x256xf32>, vector<8x256xf32> -> vector<8x256xf32>
    %345 = arith.addf %342, %344 : vector<8x256xf32>
    %346 = arith.negf %345 : vector<8x256xf32>
    %347 = math.exp %346 : vector<8x256xf32>
    %cst_174 = arith.constant 1.000000e+00 : f32
    %348 = vector.broadcast %cst_174 : f32 to vector<8x256xf32>
    %349 = arith.addf %348, %347 : vector<8x256xf32>
    %350 = arith.divf %348, %349 : vector<8x256xf32>
    %351 = vector.extract_strided_slice %345 {offsets = [0, 128], sizes = [8, 64], strides = [1, 1]} : vector<8x256xf32> to vector<8x64xf32>
    %352 = math.tanh %351 : vector<8x64xf32>
    %353 = vector.extract_strided_slice %350 {offsets = [0, 64], sizes = [8, 64], strides = [1, 1]} : vector<8x256xf32> to vector<8x64xf32>
    %c0_175 = arith.constant 0 : index
    %c0_176 = arith.constant 0 : index
    %354 = vector.load %arg11[%c0_175, %c0_176] : memref<8x64xf32, #tpu.memory_space<vmem>>, vector<8x64xf32>
    %355 = arith.mulf %353, %354 : vector<8x64xf32>
    %356 = vector.extract_strided_slice %350 {offsets = [0, 0], sizes = [8, 64], strides = [1, 1]} : vector<8x256xf32> to vector<8x64xf32>
    %357 = arith.mulf %356, %352 : vector<8x64xf32>
    %358 = arith.addf %355, %357 : vector<8x64xf32>
    %359 = vector.extract_strided_slice %350 {offsets = [0, 192], sizes = [8, 64], strides = [1, 1]} : vector<8x256xf32> to vector<8x64xf32>
    %360 = math.tanh %358 : vector<8x64xf32>
    %361 = arith.mulf %359, %360 : vector<8x64xf32>
    %c0_177 = arith.constant 0 : index
    %c0_178 = arith.constant 0 : index
    %362 = vector.load %arg10[%c0_177, %c0_178] : memref<8x64xf32, #tpu.memory_space<vmem>>, vector<8x64xf32>
    tpu.vector_store %arg10[%c0_177, %c0_178], %361 {strides = array<i32>} : memref<8x64xf32, #tpu.memory_space<vmem>>, vector<8x64xf32>,
    %c0_179 = arith.constant 0 : index
    %c0_180 = arith.constant 0 : index
    %363 = vector.load %arg11[%c0_179, %c0_180] : memref<8x64xf32, #tpu.memory_space<vmem>>, vector<8x64xf32>
    tpu.vector_store %arg11[%c0_179, %c0_180], %358 {strides = array<i32>} : memref<8x64xf32, #tpu.memory_space<vmem>>, vector<8x64xf32>,
    %364 = arith.addi %15, %332 : i32
    %c7_i32_181 = arith.constant 7 : i32
    %365 = arith.subi %c7_i32_181, %364 : i32
    %366 = vector.extract_strided_slice %361 {offsets = [0, 0], sizes = [8, 32], strides = [1, 1]} : vector<8x64xf32> to vector<8x32xf32>
    %c8_i32_182 = arith.constant 8 : i32
    %367 = arith.muli %364, %c8_i32_182 : i32
    %368 = tpu.assume_multiple %367, 8 : i32
    %369 = arith.index_cast %368 : i32 to index
    %c0_183 = arith.constant 0 : index
    %370 = vector.load %arg7[%369, %c0_183] : memref<64x64xf32, #tpu.memory_space<vmem>>, vector<8x32xf32>
    tpu.vector_store %arg7[%369, %c0_183], %366 {strides = array<i32>} : memref<64x64xf32, #tpu.memory_space<vmem>>, vector<8x32xf32>,
    %371 = vector.extract_strided_slice %361 {offsets = [0, 32], sizes = [8, 32], strides = [1, 1]} : vector<8x64xf32> to vector<8x32xf32>
    %c8_i32_184 = arith.constant 8 : i32
    %372 = arith.muli %365, %c8_i32_184 : i32
    %373 = tpu.assume_multiple %372, 8 : i32
    %374 = arith.index_cast %373 : i32 to index
    %c32_185 = arith.constant 32 : index
    %375 = vector.load %arg7[%374, %c32_185] : memref<64x64xf32, #tpu.memory_space<vmem>>, vector<8x32xf32>
    tpu.vector_store %arg7[%374, %c32_185], %371 {strides = array<i32>} : memref<64x64xf32, #tpu.memory_space<vmem>>, vector<8x32xf32>,
    %c1_i32_186 = arith.constant 1 : i32
    return
  }
  func.func @transform_0(%arg0: i32) -> (i32, i32) {
    %c0_i32 = arith.constant 0 : i32
    %c0_i32_0 = arith.constant 0 : i32
    return %arg0, %c0_i32 : i32, i32
  }
  func.func @transform_1(%arg0: i32) -> (i32, i32) {
    %c0_i32 = arith.constant 0 : i32
    %0 = arith.subi %c0_i32, %arg0 : i32
    %c0_i32_0 = arith.constant 0 : i32
    %c0_i32_1 = arith.constant 0 : i32
    return %0, %c0_i32_0 : i32, i32
  }
  func.func @transform_2(%arg0: i32) -> (i32, i32) {
    %c0_i32 = arith.constant 0 : i32
    %c0_i32_0 = arith.constant 0 : i32
    %c0_i32_1 = arith.constant 0 : i32
    return %c0_i32, %c0_i32_0 : i32, i32
  }
  func.func @transform_3(%arg0: i32) -> (i32, i32) {
    %c0_i32 = arith.constant 0 : i32
    %c0_i32_0 = arith.constant 0 : i32
    %c0_i32_1 = arith.constant 0 : i32
    return %c0_i32, %c0_i32_0 : i32, i32
  }
  func.func @transform_4(%arg0: i32) -> (i32, i32) {
    %c0_i32 = arith.constant 0 : i32
    %c0_i32_0 = arith.constant 0 : i32
    %c0_i32_1 = arith.constant 0 : i32
    return %c0_i32, %c0_i32_0 : i32, i32
  }
  func.func @transform_5(%arg0: i32) -> (i32, i32) {
    %c0_i32 = arith.constant 0 : i32
    %c0_i32_0 = arith.constant 0 : i32
    %c0_i32_1 = arith.constant 0 : i32
    return %c0_i32, %c0_i32_0 : i32, i32
  }
  func.func @transform_6(%arg0: i32) -> (i32, i32) {
    %c0_i32 = arith.constant 0 : i32
    %c0_i32_0 = arith.constant 0 : i32
    %c0_i32_1 = arith.constant 0 : i32
    return %c0_i32, %c0_i32_0 : i32, i32
  }
}

module attributes {stable_mosaic.version = 11 : i64} {
  func.func @_fc_kernel(%arg0: i32, %arg1: memref<64x64xf32, #tpu.memory_space<vmem>>, %arg2: memref<64x128xf32, #tpu.memory_space<vmem>>, %arg3: memref<1x128xf32, #tpu.memory_space<vmem>>, %arg4: memref<64x128xf32, #tpu.memory_space<vmem>>) attributes {dimension_semantics = [#tpu.dimension_semantics<parallel>], iteration_bounds = array<i64: 1>, scalar_prefetch = 0 : i64, scratch_operands = 0 : i64, tpu.core_type = #tpu.core_type<tc>, window_params = [{transform_indices = @transform_0, window_bounds = array<i64: 64, 64>}, {pipeline_mode = #tpu.pipeline_mode<synchronous>, transform_indices = @transform_1, window_bounds = array<i64: 64, 128>}, {pipeline_mode = #tpu.pipeline_mode<synchronous>, transform_indices = @transform_2, window_bounds = array<i64: 1, 128>}, {transform_indices = @transform_3, window_bounds = array<i64: 64, 128>}]} {
    %c0 = arith.constant 0 : index
    %c0_0 = arith.constant 0 : index
    %0 = vector.load %arg1[%c0, %c0_0] : memref<64x64xf32, #tpu.memory_space<vmem>>, vector<64x64xf32>
    %c0_1 = arith.constant 0 : index
    %c0_2 = arith.constant 0 : index
    %1 = vector.load %arg2[%c0_1, %c0_2] : memref<64x128xf32, #tpu.memory_space<vmem>>, vector<64x128xf32>
    %cst = arith.constant dense<0.000000e+00> : vector<64x128xf32>
    %2 = tpu.matmul %0, %1, %cst {dimension_numbers = #tpu.dot_dimension_numbers<[1], [0], [0], [1], [0, 0, 1, 1], [], []>} : vector<64x64xf32>, vector<64x128xf32>, vector<64x128xf32> -> vector<64x128xf32>
    %c0_3 = arith.constant 0 : index
    %c0_4 = arith.constant 0 : index
    %3 = vector.load %arg3[%c0_3, %c0_4] : memref<1x128xf32, #tpu.memory_space<vmem>>, vector<1x128xf32>
    %4 = vector.broadcast %3 : vector<1x128xf32> to vector<64x128xf32>
    %5 = arith.addf %2, %4 : vector<64x128xf32>
    %c0_5 = arith.constant 0 : index
    %c0_6 = arith.constant 0 : index
    %6 = vector.load %arg4[%c0_5, %c0_6] : memref<64x128xf32, #tpu.memory_space<vmem>>, vector<64x128xf32>
    tpu.vector_store %arg4[%c0_5, %c0_6], %5 {strides = array<i32>} : memref<64x128xf32, #tpu.memory_space<vmem>>, vector<64x128xf32>,
    return
  }
  func.func @transform_0(%arg0: i32) -> (i32, i32) {
    %c0_i32 = arith.constant 0 : i32
    %c0_i32_0 = arith.constant 0 : i32
    return %arg0, %c0_i32 : i32, i32
  }
  func.func @transform_1(%arg0: i32) -> (i32, i32) {
    %c0_i32 = arith.constant 0 : i32
    %c0_i32_0 = arith.constant 0 : i32
    %c0_i32_1 = arith.constant 0 : i32
    return %c0_i32, %c0_i32_0 : i32, i32
  }
  func.func @transform_2(%arg0: i32) -> (i32, i32) {
    %c0_i32 = arith.constant 0 : i32
    %c0_i32_0 = arith.constant 0 : i32
    %c0_i32_1 = arith.constant 0 : i32
    return %c0_i32, %c0_i32_0 : i32, i32
  }
  func.func @transform_3(%arg0: i32) -> (i32, i32) {
    %c0_i32 = arith.constant 0 : i32
    %c0_i32_0 = arith.constant 0 : i32
    return %arg0, %c0_i32 : i32, i32
  }
}

</mosaic_0001>

<bundles_post_ra>
// kernel: speech_model_forward.5
= control target key start
LH: loop header
LB: loop body
LE: loop exit
PB: predicated region body
PF: predicated region fallthrough
CT: control target
= control target key end

     0   :  { %vm37_vm0 = vcmask 523264   ;;  %s351_s1 = inlined_call_operand.vmem [shape: f32[64,128], index: 1, kind: input, shape index: {}]   ;;  %s352_s0 = inlined_call_operand.vmem [shape: f32[64,64], index: 0, kind: input, shape index: {}]   ;;  %s353_s2 = inlined_call_operand.vmem [shape: f32[1,128], index: 2, kind: input, shape index: {}]   ;;  %s354_s3 = inlined_call_operand.vmem [shape: f32[64,128], index: 3, kind: output, shape index: {}]  }
   0x1   :  { %v29_v0 = vld [vmem:[%s351_s1 + $0x38] sm:$0xff]  ;;  %v28_v1 = vld [vmem:[%s351_s1 + $0x30] sm:$0xff]  ;;  %v27_v2 = vld [vmem:[%s351_s1 + $0x28] sm:$0xff] }
   0x2   :  { %204 = vmatprep.subr.mxu0 %v29_v0  ;;  %232 = vmatprep.subr.mxu1 %v29_v0  ;;  %v26_v3 = vld [vmem:[%s351_s1 + $0x20] sm:$0xff]  ;;  %v25_v4 = vld [vmem:[%s351_s1 + $0x18] sm:$0xff]  ;;  %v24_v5 = vld [vmem:[%s351_s1 + $0x10] sm:$0xff] }
   0x3   :  { %205 = vmatpush3.msra.mxu0 %v29_v0  ;;  %240 = vmatpush3.msra.mxu1 %v29_v0  ;;  %v23_v6 = vld [vmem:[%s351_s1 + $0x8] sm:$0xff]  ;;  %v22_v7 = vld [vmem:[%s351_s1] sm:$0xff]  ;;  %v16_v12 = vld [vmem:[%s352_s0 + $0x10] sm:$0xff] }
   0x4   :  { %206 = vmatprep.subr.mxu0 %v28_v1  ;;  %233 = vmatprep.subr.mxu1 %v28_v1  ;;  %v14_v8 = vld [vmem:[%s352_s0] sm:$0xff]  ;;  %v15_v10 = vld [vmem:[%s352_s0 + $0x8] sm:$0xff]  ;;  %v20_v13 = vld [vmem:[%s352_s0 + $0x30] sm:$0xff] }
   0x5   :  { %207 = vmatpush3.msra.mxu0 %v28_v1  ;;  %241 = vmatpush3.msra.mxu1 %v28_v1  ;;  %v18_v9 = vld [vmem:[%s352_s0 + $0x20] sm:$0xff]  ;;  %v19_v11 = vld [vmem:[%s352_s0 + $0x28] sm:$0xff]  ;;  %v17_v14 = vld [vmem:[%s352_s0 + $0x18] sm:$0xff] }
   0x6   :  { %208 = vmatprep.subr.mxu0 %v27_v2  ;;  %234 = vmatprep.subr.mxu1 %v27_v2  ;;  %v21_v15 = vld [vmem:[%s352_s0 + $0x38] sm:$0xff]  ;;  %v179_v16 = vld [vmem:[%s353_s2] ss:$0 sm:$0xff] }
   0x7   :  { %209 = vmatpush3.msra.mxu0 %v27_v2  ;;  %242 = vmatpush3.msra.mxu1 %v27_v2 }
   0x8   :  { %210 = vmatprep.subr.mxu0 %v26_v3  ;;  %235 = vmatprep.subr.mxu1 %v26_v3 }
   0x9   :  { %211 = vmatpush3.msra.mxu0 %v26_v3  ;;  %243 = vmatpush3.msra.mxu1 %v26_v3 }
   0xa   :  { %212 = vmatprep.subr.mxu0 %v25_v4  ;;  %236 = vmatprep.subr.mxu1 %v25_v4 }
   0xb   :  { %213 = vmatpush3.msra.mxu0 %v25_v4  ;;  %244 = vmatpush3.msra.mxu1 %v25_v4 }
   0xc   :  { %214 = vmatprep.subr.mxu0 %v24_v5  ;;  %237 = vmatprep.subr.mxu1 %v24_v5 }
   0xd   :  { %215 = vmatpush3.msra.mxu0 %v24_v5  ;;  %245 = vmatpush3.msra.mxu1 %v24_v5 }
   0xe   :  { %216 = vmatprep.subr.mxu0 %v23_v6  ;;  %238 = vmatprep.subr.mxu1 %v23_v6 }
   0xf   :  { %217 = vmatpush3.msra.mxu0 %v23_v6  ;;  %246 = vmatpush3.msra.mxu1 %v23_v6 }
  0x10   :  { %218 = vmatprep.subr.mxu0 %v22_v7  ;;  %239 = vmatprep.subr.mxu1 %v22_v7 }
  0x11   :  { %219 = vmatpush3.msra.mxu0 %v22_v7  ;;  %247 = vmatpush3.msra.mxu1 %v22_v7 }
  0x12   :  { %220 = vmatprep.mubr.msk.f32.mxu0 %vm37_vm0, %v14_v8  ;;  %226 = vmatprep.mubr.msk.f32.mxu1 %vm37_vm0, %v18_v9 }
  0x13   :  { %221 = vmatmul.mubr.msk.f32.vlgmr.msra.gmra.mxu0 %vm37_vm0, %v15_v10  ;;  %227 = vmatmul.mubr.msk.f32.vlgmr.msra.gmra.mxu1 %vm37_vm0, %v19_v11 }
  0x14   :  { %223 = vmatprep.mubr.msk.f32.mxu0 %vm37_vm0, %v16_v12  ;;  %229 = vmatprep.mubr.msk.f32.mxu1 %vm37_vm0, %v20_v13 }
  0x17   :  { %224 = vmatmul.mubr.msk.f32.gmra.mxu0 %vm37_vm0, %v17_v14  ;;  %230 = vmatmul.mubr.msk.f32.gmra.mxu1 %vm37_vm0, %v21_v15 }
  0xd3   :  { %v222_v17 = vpop.f32.mrf.mxu0  ;;  %v228_v18 = vpop.f32.mrf.mxu1 }
  0xd4   :  { %v134_v19 = vadd.f32 %v222_v17, %v179_v16  ;;  %v154_v20 = vadd.f32 %v228_v18, %v179_v16 }
  0xd5   :  { %v128_v21 = vpop.f32.mrf.mxu0  ;;  %v148_v22 = vpop.f32.mrf.mxu1 }
  0xd6   :  { %168 = vst [vmem:[%s354_s3 + $0x8] sm:$0xff] %v134_v19  ;;  %172 = vst [vmem:[%s354_s3 + $0x28] sm:$0xff] %v154_v20  ;;  %v129_v23 = vadd.f32 %v179_v16, %v128_v21  ;;  %v149_v24 = vadd.f32 %v179_v16, %v148_v22 }
  0xd7   :  { %v225_v25 = vpop.f32.mrf.mxu0  ;;  %v231_v26 = vpop.f32.mrf.mxu1 }
  0xd8   :  { %167 = vst [vmem:[%s354_s3] sm:$0xff] %v129_v23  ;;  %171 = vst [vmem:[%s354_s3 + $0x20] sm:$0xff] %v149_v24  ;;  %v144_v27 = vadd.f32 %v225_v25, %v179_v16  ;;  %v164_v28 = vadd.f32 %v231_v26, %v179_v16 }
  0xd9   :  { %v138_v29 = vpop.f32.mrf.mxu0  ;;  %v158_v30 = vpop.f32.mrf.mxu1 }
  0xda   :  { %170 = vst [vmem:[%s354_s3 + $0x18] sm:$0xff] %v144_v27  ;;  %174 = vst [vmem:[%s354_s3 + $0x38] sm:$0xff] %v164_v28  ;;  %v139_v31 = vadd.f32 %v179_v16, %v138_v29  ;;  %v159_v32 = vadd.f32 %v179_v16, %v158_v30 }
  0xdc   :  { %169 = vst [vmem:[%s354_s3 + $0x10] sm:$0xff] %v139_v31  ;;  %173 = vst [vmem:[%s354_s3 + $0x30] sm:$0xff] %v159_v32 }

// kernel: speech_model_forward.4
= control target key start
LH: loop header
LB: loop body
LE: loop exit
PB: predicated region body
PF: predicated region fallthrough
CT: control target
= control target key end

     0   :  { %vm49_vm0 = vcmask 523264   ;;  %v1700_v3 = vmov 0.0   ;;  %s1701_s13 = smov 64   ;;  %vm565_vm1 = vcmask 261120   ;;  %vm569_vm2 = vcmask 523520   ;;  %s2301_s2 = inlined_call_operand.vmem [shape: f32[64,256], index: 2, kind: input, shape index: {}]   ;;  %s2302_s3 = inlined_call_operand.vmem [shape: f32[64,256], index: 3, kind: input, shape index: {}]   ;;  %s2303_s0 = inlined_call_operand.vmem [shape: f32[64,64], index: 0, kind: input, shape index: {}, may-alias: {0,1}]   ;;  %s2304_s1 = inlined_call_operand.vmem [shape: f32[64,64], index: 1, kind: input, shape index: {}, may-alias: {0,1}]   ;;  %s2305_s4 = inlined_call_operand.vmem [shape: f32[64,256], index: 4, kind: input, shape index: {}]   ;;  %s2306_s5 = inlined_call_operand.vmem [shape: f32[1,256], index: 5, kind: input, shape index: {}]   ;;  %s2307_s6 = inlined_call_operand.vmem [shape: f32[64,64], index: 6, kind: output, shape index: {}]  }
   0x1   :  { %v75_v0 = vld [vmem:[%s2301_s2 + $0x78] sm:$0xff]  ;;  %v74_v2 = vld [vmem:[%s2301_s2 + $0x70] sm:$0xff]  ;;  %177 = vmatprep.mubr.f32.mxu0 %v1700_v3  ;;  %354 = vmatprep.mubr.f32.mxu1 %v1700_v3  ;;  %50 = vst.msk [vmem:[#allocation4] sm:$0xff] %vm49_vm0, %v1700_v3  ;;  %51 = vst.msk [vmem:[#allocation5] sm:$0xff] %vm49_vm0, %v1700_v3 }
   0x2   :  { %v265_v1 = vld [vmem:[%s2302_s3 + $0x78] sm:$0xff]  ;;  %129 = vmatprep.subr.mxu0 %v75_v0  ;;  %v264_v4 = vld [vmem:[%s2302_s3 + $0x70] sm:$0xff]  ;;  %v73_v5 = vld [vmem:[%s2301_s2 + $0x68] sm:$0xff] }
   0x3   :  { %306 = vmatprep.subr.mxu1 %v265_v1  ;;  %v263_v6 = vld [vmem:[%s2302_s3 + $0x68] sm:$0xff]  ;;  %130 = vmatpush1.msra.mxu0 %v74_v2  ;;  %v72_v7 = vld [vmem:[%s2301_s2 + $0x60] sm:$0xff]  ;;  %v71_v9 = vld [vmem:[%s2301_s2 + $0x58] sm:$0xff] }
   0x4   :  { %307 = vmatpush1.msra.mxu1 %v264_v4  ;;  %v262_v8 = vld [vmem:[%s2302_s3 + $0x60] sm:$0xff]  ;;  %131 = vmatprep.subr.mxu0 %v73_v5  ;;  %v261_v10 = vld [vmem:[%s2302_s3 + $0x58] sm:$0xff]  ;;  %v70_v11 = vld [vmem:[%s2301_s2 + $0x50] sm:$0xff]  ;;  %v78_v4 = vlaneseq }
   0x5   :  { %308 = vmatprep.subr.mxu1 %v263_v6  ;;  %v260_v12 = vld [vmem:[%s2302_s3 + $0x50] sm:$0xff]  ;;  %132 = vmatpush1.msra.mxu0 %v72_v7  ;;  %v69_v13 = vld [vmem:[%s2301_s2 + $0x48] sm:$0xff]  ;;  %v68_v15 = vld [vmem:[%s2301_s2 + $0x40] sm:$0xff] }
   0x6   :  { %309 = vmatpush1.msra.mxu1 %v262_v8  ;;  %v259_v14 = vld [vmem:[%s2302_s3 + $0x48] sm:$0xff]  ;;  %133 = vmatprep.subr.mxu0 %v71_v9  ;;  %v258_v16 = vld [vmem:[%s2302_s3 + $0x40] sm:$0xff]  ;;  %v67_v17 = vld [vmem:[%s2301_s2 + $0x38] sm:$0xff]  ;;  %v79_v5 = vshrl.u32 %v78_v4, 7 }
   0x7   :  { %310 = vmatprep.subr.mxu1 %v261_v10  ;;  %134 = vmatpush1.msra.mxu0 %v70_v11  ;;  %v257_v18 = vld [vmem:[%s2302_s3 + $0x38] sm:$0xff]  ;;  %v66_v19 = vld [vmem:[%s2301_s2 + $0x30] sm:$0xff]  ;;  %v65_v21 = vld [vmem:[%s2301_s2 + $0x28] sm:$0xff] }
   0x8   :  { %311 = vmatpush1.msra.mxu1 %v260_v12  ;;  %135 = vmatprep.subr.mxu0 %v69_v13  ;;  %v256_v20 = vld [vmem:[%s2302_s3 + $0x30] sm:$0xff]  ;;  %v255_v22 = vld [vmem:[%s2302_s3 + $0x28] sm:$0xff]  ;;  %v64_v23 = vld [vmem:[%s2301_s2 + $0x20] sm:$0xff]  ;;  %v80_v6 = vsub.s32 0, %v79_v5  ;;  %v84_v10 = vsub.s32 1, %v79_v5 }
   0x9   :  { %312 = vmatprep.subr.mxu1 %v259_v14  ;;  %136 = vmatpush1.msra.mxu0 %v68_v15  ;;  %v254_v24 = vld [vmem:[%s2302_s3 + $0x20] sm:$0xff]  ;;  %v63_v25 = vld [vmem:[%s2301_s2 + $0x18] sm:$0xff]  ;;  %v62_v27 = vld [vmem:[%s2301_s2 + $0x10] sm:$0xff] }
   0xa   :  { %313 = vmatpush1.msra.mxu1 %v258_v16  ;;  %137 = vmatprep.subr.mxu0 %v67_v17  ;;  %v253_v26 = vld [vmem:[%s2302_s3 + $0x18] sm:$0xff]  ;;  %v252_v28 = vld [vmem:[%s2302_s3 + $0x10] sm:$0xff]  ;;  %v61_v29 = vld [vmem:[%s2301_s2 + $0x8] sm:$0xff] }
   0xb   :  { %314 = vmatprep.subr.mxu1 %v257_v18  ;;  %138 = vmatpush1.msra.mxu0 %v66_v19  ;;  %v251_v30 = vld [vmem:[%s2302_s3 + $0x8] sm:$0xff]  ;;  %v60_v31 = vld [vmem:[%s2301_s2] sm:$0xff]  ;;  %v1848_v35 = vld [vmem:[%s2305_s4 + $0x78] sm:$0xff] }
   0xc   :  { %315 = vmatpush1.msra.mxu1 %v256_v20  ;;  %139 = vmatprep.subr.mxu0 %v65_v21  ;;  %v250_v32 = vld [vmem:[%s2302_s3] sm:$0xff]  ;;  %v1853_v36 = vld [vmem:[%s2305_s4 + $0x70] sm:$0xff]  ;;  %v1860_v37 = vld [vmem:[%s2305_s4 + $0x68] sm:$0xff] }
   0xd   :  { %316 = vmatprep.subr.mxu1 %v255_v22  ;;  %140 = vmatpush1.msra.mxu0 %v64_v23  ;;  %v52_v33 = vld [vmem:[%s2303_s0] sm:$0xff]  ;;  %v53_v38 = vld [vmem:[%s2303_s0 + $0x8] sm:$0xff]  ;;  %v1881_v41 = vld [vmem:[%s2305_s4 + $0x58] sm:$0xff] }
   0xe   :  { %317 = vmatpush1.msra.mxu1 %v254_v24  ;;  %141 = vmatprep.subr.mxu0 %v63_v25  ;;  %v242_v34 = vld [vmem:[%s2304_s1] sm:$0xff]  ;;  %v243_v39 = vld [vmem:[%s2304_s1 + $0x8] sm:$0xff]  ;;  %v1889_v42 = vld [vmem:[%s2305_s4 + $0x50] sm:$0xff] }
   0xf   :  { %318 = vmatprep.subr.mxu1 %v253_v26  ;;  %142 = vmatpush1.msra.mxu0 %v62_v27  ;;  %v1875_v40 = vld [vmem:[%s2305_s4 + $0x60] sm:$0xff]  ;;  %v538_v43 = vld [vmem:[#allocation5] sm:$0xff]  ;;  %v54_v44 = vld [vmem:[%s2303_s0 + $0x10] sm:$0xff] }
  0x10   :  { %319 = vmatpush1.msra.mxu1 %v252_v28  ;;  %143 = vmatprep.subr.mxu0 %v61_v29  ;;  %v244_v45 = vld [vmem:[%s2304_s1 + $0x10] sm:$0xff]  ;;  %v1905_v46 = vld [vmem:[%s2305_s4 + $0x48] sm:$0xff]  ;;  %v1913_v47 = vld [vmem:[%s2305_s4 + $0x40] sm:$0xff] }
  0x11   :  { %320 = vmatprep.subr.mxu1 %v251_v30  ;;  %144 = vmatpush1.msra.mxu0 %v60_v31  ;;  %v55_v48 = vld [vmem:[%s2303_s0 + $0x18] sm:$0xff]  ;;  %v1937_v51 = vld [vmem:[%s2305_s4 + $0x30] sm:$0xff]  ;;  %v56_v52 = vld [vmem:[%s2303_s0 + $0x20] sm:$0xff] }
  0x12   :  { %321 = vmatpush1.msra.mxu1 %v250_v32  ;;  %1548 = vmatmul.mubr.msk.f32.vlgmr.msra.gmra.mxu0 %vm49_vm0, %v52_v33  ;;  %v245_v49 = vld [vmem:[%s2304_s1 + $0x18] sm:$0xff]  ;;  %v246_v53 = vld [vmem:[%s2304_s1 + $0x20] sm:$0xff]  ;;  %v1953_v54 = vld [vmem:[%s2305_s4 + $0x28] sm:$0xff] }
  0x13   :  { %1556 = vmatmul.mubr.msk.f32.vlgmr.msra.gmra.mxu1 %vm49_vm0, %v242_v34  ;;  %468 = vmatprep.subr.mxu0 %v1848_v35  ;;  %v1929_v50 = vld [vmem:[%s2305_s4 + $0x38] sm:$0xff]  ;;  %v1961_v55 = vld [vmem:[%s2305_s4 + $0x20] sm:$0xff]  ;;  %v57_v56 = vld [vmem:[%s2303_s0 + $0x28] sm:$0xff] }
  0x14   :  { %183 = vmatprep.mubr.f32.mxu0 %v1700_v3  ;;  %469 = vmatpush1.msra.mxu0 %v1853_v36  ;;  %v247_v57 = vld [vmem:[%s2304_s1 + $0x28] sm:$0xff]  ;;  %v1977_v58 = vld [vmem:[%s2305_s4 + $0x18] sm:$0xff]  ;;  %v1985_v59 = vld [vmem:[%s2305_s4 + $0x10] sm:$0xff] }
  0x15   :  { %360 = vmatprep.mubr.f32.mxu1 %v1700_v3  ;;  %470 = vmatprep.subr.mxu0 %v1860_v37  ;;  %v58_v60 = vld [vmem:[%s2303_s0 + $0x30] sm:$0xff]  ;;  %v2001_v62 = vld [vmem:[%s2305_s4 + $0x8] sm:$0xff]  ;;  %v2009_v63 = vld [vmem:[%s2305_s4] sm:$0xff] }
  0x16   :  { %603 = vmatprep.subr.mxu1 %v1848_v35  ;;  %1549 = vmatmul.mubr.msk.f32.gmra.mxu0 %vm49_vm0, %v53_v38  ;;  %v248_v61 = vld [vmem:[%s2304_s1 + $0x30] sm:$0xff]  ;;  %v59_v0 = vld [vmem:[%s2303_s0 + $0x38] sm:$0xff]  ;;  %v448_v2 = vld [vmem:[#allocation4] sm:$0xff] }
  0x17   :  { %1557 = vmatmul.mubr.msk.f32.gmra.mxu1 %vm49_vm0, %v243_v39  ;;  %471 = vmatpush1.msra.mxu0 %v1875_v40  ;;  %v249_v1 = vld [vmem:[%s2304_s1 + $0x38] sm:$0xff]  ;;  %v76_v7 = vld [vmem:[%s2306_s5] sm:$0x3] }
  0x18   :  { %189 = vmatprep.mubr.f32.mxu0 %v1700_v3  ;;  %366 = vmatprep.mubr.f32.mxu1 %v1700_v3  ;;  %v81_v13 = vrot.slane %v76_v7, %v80_v6  ;;  %v85_v16 = vrot.slane %v76_v7, %v84_v10 }
  0x19   :  { %472 = vmatprep.subr.mxu0 %v1881_v41  ;;  %540 = vrot.lane.b32.xlu0 %v538_v43, %s1701_s13 }
  0x1a   :  { %473 = vmatpush1.msra.mxu0 %v1889_v42  ;;  %604 = vmatpush1.msra.mxu1 %v1853_v36 }
  0x1b   :  { %1550 = vmatmul.mubr.msk.f32.gmra.mxu0 %vm49_vm0, %v54_v44  ;;  %1558 = vmatmul.mubr.msk.f32.gmra.mxu1 %vm49_vm0, %v244_v45 }
  0x1c   :  { %195 = vmatprep.mubr.f32.mxu0 %v1700_v3  ;;  %372 = vmatprep.mubr.f32.mxu1 %v1700_v3 }
  0x1d   :  { %474 = vmatprep.subr.mxu0 %v1905_v46  ;;  %605 = vmatprep.subr.mxu1 %v1860_v37 }
  0x1e   :  { %475 = vmatpush1.msra.mxu0 %v1913_v47  ;;  %606 = vmatpush1.msra.mxu1 %v1875_v40 }
  0x1f   :  { %1551 = vmatmul.mubr.msk.f32.gmra.mxu0 %vm49_vm0, %v55_v48  ;;  %1559 = vmatmul.mubr.msk.f32.gmra.mxu1 %vm49_vm0, %v245_v49 }
  0x20   :  { %201 = vmatprep.mubr.f32.mxu0 %v1700_v3  ;;  %378 = vmatprep.mubr.f32.mxu1 %v1700_v3 }
  0x21   :  { %476 = vmatprep.subr.mxu0 %v1929_v50  ;;  %607 = vmatprep.subr.mxu1 %v1881_v41 }
  0x22   :  { %477 = vmatpush1.msra.mxu0 %v1937_v51  ;;  %608 = vmatpush1.msra.mxu1 %v1889_v42 }
  0x23   :  { %1552 = vmatmul.mubr.msk.f32.gmra.mxu0 %vm49_vm0, %v56_v52  ;;  %1560 = vmatmul.mubr.msk.f32.gmra.mxu1 %vm49_vm0, %v246_v53 }
  0x24   :  { %207 = vmatprep.mubr.f32.mxu0 %v1700_v3  ;;  %384 = vmatprep.mubr.f32.mxu1 %v1700_v3 }
  0x25   :  { %478 = vmatprep.subr.mxu0 %v1953_v54  ;;  %609 = vmatprep.subr.mxu1 %v1905_v46 }
  0x26   :  { %479 = vmatpush1.msra.mxu0 %v1961_v55  ;;  %610 = vmatpush1.msra.mxu1 %v1913_v47 }
  0x27   :  { %1553 = vmatmul.mubr.msk.f32.gmra.mxu0 %vm49_vm0, %v57_v56  ;;  %1561 = vmatmul.mubr.msk.f32.gmra.mxu1 %vm49_vm0, %v247_v57 }
  0x28   :  { %213 = vmatprep.mubr.f32.mxu0 %v1700_v3  ;;  %390 = vmatprep.mubr.f32.mxu1 %v1700_v3 }
  0x29   :  { %480 = vmatprep.subr.mxu0 %v1977_v58  ;;  %611 = vmatprep.subr.mxu1 %v1929_v50 }
  0x2a   :  { %481 = vmatpush1.msra.mxu0 %v1985_v59  ;;  %612 = vmatpush1.msra.mxu1 %v1937_v51 }
  0x2b   :  { %1554 = vmatmul.mubr.msk.f32.gmra.mxu0 %vm49_vm0, %v58_v60  ;;  %1562 = vmatmul.mubr.msk.f32.gmra.mxu1 %vm49_vm0, %v248_v61 }
  0x2c   :  { %219 = vmatprep.mubr.f32.mxu0 %v1700_v3  ;;  %396 = vmatprep.mubr.f32.mxu1 %v1700_v3 }
  0x2d   :  { %482 = vmatprep.subr.mxu0 %v2001_v62  ;;  %613 = vmatprep.subr.mxu1 %v1953_v54 }
  0x2e   :  { %483 = vmatpush1.msra.mxu0 %v2009_v63  ;;  %614 = vmatpush1.msra.mxu1 %v1961_v55 }
  0x2f   :  { %1555 = vmatmul.mubr.msk.f32.gmra.mxu0 %vm49_vm0, %v59_v0  ;;  %1563 = vmatmul.mubr.msk.f32.gmra.mxu1 %vm49_vm0, %v249_v1 }
  0x30   :  { %516 = vmatprep.mubr.f32.mxu0 %v1700_v3  ;;  %615 = vmatprep.subr.mxu1 %v1977_v58 }
  0x31   :  { %651 = vmatprep.mubr.f32.mxu1 %v1700_v3  ;;  %616 = vmatpush1.msra.mxu1 %v1985_v59 }
  0x32   :  { %737 = vmatprep.subr.mxu0 %v1848_v35  ;;  %617 = vmatprep.subr.mxu1 %v2001_v62 }
  0x33   :  { %1564 = vmatmul.mubr.msk.f32.vlgmr.msra.gmra.mxu0 %vm49_vm0, %v448_v2  ;;  %618 = vmatpush1.msra.mxu1 %v2009_v63 }
  0x34   :  { %738 = vmatpush1.msra.mxu0 %v1853_v36  ;;  %785 = vmatprep.mubr.f32.mxu0 %v1700_v3 }
  0x35   :  { %739 = vmatprep.subr.mxu0 %v1860_v37  ;;  %871 = vmatprep.subr.mxu1 %v1848_v35 }
  0x36   :  { %740 = vmatpush1.msra.mxu0 %v1875_v40 }
  0x37   :  { %741 = vmatprep.subr.mxu0 %v1881_v41 }
  0x38   :  { %742 = vmatpush1.msra.mxu0 %v1889_v42 }
  0x39   :  { %743 = vmatprep.subr.mxu0 %v1905_v46 }
  0x3a   :  { %744 = vmatpush1.msra.mxu0 %v1913_v47 }
  0x3b   :  { %745 = vmatprep.subr.mxu0 %v1929_v50 }
  0x3c   :  { %746 = vmatpush1.msra.mxu0 %v1937_v51 }
  0x3d   :  { %747 = vmatprep.subr.mxu0 %v1953_v54 }
  0x3e   :  { %748 = vmatpush1.msra.mxu0 %v1961_v55 }
  0x3f   :  { %749 = vmatprep.subr.mxu0 %v1977_v58 }
  0x40   :  { %750 = vmatpush1.msra.mxu0 %v1985_v59 }
  0x41   :  { %751 = vmatprep.subr.mxu0 %v2001_v62 }
  0x42   :  { %752 = vmatpush1.msra.mxu0 %v2009_v63 }
  0x43   :  { %1003 = vmatprep.subr.mxu0 %v1848_v35 }
  0xd2   :  { %v179_v8 = vpop.f32.mrf.mxu0 }
  0xd3   :  { %v356_v9 = vpop.f32.mrf.mxu1 }
  0xd4   :  { %v2055_v11 = vpop.f32.mrf.mxu0 }
  0xd5   :  { %v358_v12 = vpop.f32.mrf.mxu1 }
  0xd6   :  { %v185_v14 = vpop.f32.mrf.mxu0 }
  0xd7   :  { %v362_v15 = vpop.f32.mrf.mxu1  ;;  %v186_v17 = vadd.f32 %v185_v14, %v81_v13 }
  0xd8   :  { %v187_v18 = vpop.f32.mrf.mxu0 }
  0xd9   :  { %v364_v19 = vpop.f32.mrf.mxu1  ;;  %v188_v20 = vadd.f32 %v187_v18, %v85_v16 }
  0xdb   :  { %v191_v21 = vpop.f32.mrf.mxu0  ;;  %v368_v22 = vpop.f32.mrf.mxu1 }
  0xdc   :  { %v192_v23 = vadd.f32 %v191_v21, %v81_v13 }
  0xdd   :  { %v193_v24 = vpop.f32.mrf.mxu0  ;;  %v370_v25 = vpop.f32.mrf.mxu1 }
  0xde   :  { %v194_v26 = vadd.f32 %v193_v24, %v85_v16 }
  0xdf   :  { %v197_v27 = vpop.f32.mrf.mxu0  ;;  %v374_v28 = vpop.f32.mrf.mxu1 }
  0xe0   :  { %v198_v29 = vadd.f32 %v197_v27, %v81_v13 }
  0xe1   :  { %v199_v30 = vpop.f32.mrf.mxu0  ;;  %v376_v31 = vpop.f32.mrf.mxu1 }
  0xe2   :  { %v200_v32 = vadd.f32 %v199_v30, %v85_v16 }
  0xe3   :  { %v203_v33 = vpop.f32.mrf.mxu0  ;;  %v380_v34 = vpop.f32.mrf.mxu1 }
  0xe4   :  { %v204_v38 = vadd.f32 %v203_v33, %v81_v13  ;;  %v2057_v39 = vadd.f32 %v380_v34, %v198_v29 }
  0xe5   :  { %v205_v43 = vpop.f32.mrf.mxu0  ;;  %v382_v44 = vpop.f32.mrf.mxu1 }
  0xe6   :  { %v206_v45 = vadd.f32 %v205_v43, %v85_v16  ;;  %v2059_v48 = vadd.f32 %v382_v44, %v200_v32  ;;  %v2061_v49 = vadd.f32 %v374_v28, %v204_v38 }
  0xe7   :  { %v209_v52 = vpop.f32.mrf.mxu0  ;;  %v386_v53 = vpop.f32.mrf.mxu1 }
  0xe8   :  { %v210_v56 = vadd.f32 %v209_v52, %v81_v13  ;;  %v2063_v57 = vadd.f32 %v386_v53, %v192_v23  ;;  %v2065_v60 = vadd.f32 %v376_v31, %v206_v45 }
  0xe9   :  { %v211_v61 = vpop.f32.mrf.mxu0  ;;  %v388_v0 = vpop.f32.mrf.mxu1 }
  0xea   :  { %v212_v1 = vadd.f32 %v211_v61, %v85_v16  ;;  %v2067_v2 = vadd.f32 %v388_v0, %v194_v26  ;;  %v2069_v4 = vadd.f32 %v368_v22, %v210_v56  ;;  %v180_v26 = vadd.f32 %v179_v8, %v81_v13  ;;  %v541_v61 = vpop.permute.xlu0 %540 }
  0xeb   :  { %v215_v5 = vpop.f32.mrf.mxu0  ;;  %v392_v6 = vpop.f32.mrf.mxu1 }
  0xec   :  { %v216_v7 = vadd.f32 %v215_v5, %v81_v13  ;;  %v2071_v10 = vadd.f32 %v392_v6, %v186_v17  ;;  %v2073_v14 = vadd.f32 %v370_v25, %v212_v1 }
  0xed   :  { %v217_v18 = vpop.f32.mrf.mxu0  ;;  %v394_v21 = vpop.f32.mrf.mxu1 }
  0xee   :  { %v218_v23 = vadd.f32 %v217_v18, %v85_v16  ;;  %v2075_v24 = vadd.f32 %v394_v21, %v188_v20  ;;  %v2077_v27 = vadd.f32 %v362_v15, %v216_v7  ;;  %v182_v15 = vadd.f32 %v2055_v11, %v85_v16 }
  0xef   :  { %v221_v28 = vpop.f32.mrf.mxu0  ;;  %v398_v29 = vpop.f32.mrf.mxu1 }
  0xf0   :  { %v222_v30 = vadd.f32 %v221_v28, %v81_v13  ;;  %v2079_v22 = vadd.f32 %v364_v19, %v218_v23  ;;  %v446_v32 = vadd.f32 %v398_v29, %v180_v26 }
  0xf1   :  { %v223_v31 = vpop.f32.mrf.mxu0  ;;  %v400_v20 = vpop.f32.mrf.mxu1 }
  0xf2   :  { %v224_v33 = vadd.f32 %v223_v31, %v85_v16  ;;  %v2081_v17 = vadd.f32 %v356_v9, %v222_v30  ;;  %v447_v45 = vadd.f32 %v400_v20, %v182_v15 }
  0xf3   :  { %v518_v25 = vpop.f32.mrf.mxu0 }
  0xf4   :  { %v523_v34 = vadd.f32 %v518_v25, %v446_v32  ;;  %v2083_v38 = vadd.f32 %v358_v12, %v224_v33 }
  0xf5   :  { %v520_v44 = vpop.f32.mrf.mxu0 }
  0xf6   :  { %v1565_v43 = vmul.f32 -1.442695, %v523_v34  ;;  %v524_v8 = vadd.f32 %v520_v44, %v447_v45 }
  0xf8   :  { %1604 = vpow2.f32 %v1565_v43  ;;  %v1566_v56 = vmul.f32 -1.442695, %v524_v8 }
  0xf9   :  { %1606 = vtanh.f32 %v524_v8 }
 0x105   :  { %v1605_v13 = vpop.eup %1604 }
 0x106   :  { %v531_v19 = vadd.f32 1.0, %v1605_v13  ;;  %v1607_v52 = vpop.eup %1606 }
 0x108   :  { %1608 = vrcp.f32 %v531_v19 }
 0x109   :  { %1610 = vpow2.f32 %v1566_v56 }
 0x115   :  { %v1609_v53 = vpop.eup %1608 }
 0x116   :  { %v544_v9 = vmul.f32 %v1609_v53, %v1607_v52  ;;  %v1611_v12 = vpop.eup %1610  ;;  %v543_v1 = vmul.f32 %v1609_v53, %v541_v61 }
 0x117   :  { %v532_v0 = vadd.f32 1.0, %v1611_v12 }
 0x118   :  { %546 = vrot.lane.b32.xlu0 %v544_v9, %s1701_s13 }
 0x119   :  { %1612 = vrcp.f32 %v532_v0 }
 0x126   :  { %v1613_v16 = vpop.eup %1612 }
 0x18a   :  { %v547_v5 = vpop.permute.xlu0 %546 }
 0x18b   :  { %v549_v11 = vadd.f32 %v547_v5, %v543_v1 }
 0x18d   :  { %1614 = vtanh.f32 %v549_v11 }
 0x19a   :  { %v1615_v6 = vpop.eup %1614 }
 0x19b   :  { %v551_v7 = vmul.f32 %v1615_v6, %v1613_v16 }
 0x19d   :  { %553 = vrot.lane.b32.xlu1 %v551_v7, %s1701_s13 }
 0x1a1   :  { %558 = vrot.lane.b32.xlu1 %v549_v11, %s1701_s13 }
 0x20f   :  { %v554_v18 = vpop.permute.xlu1 %553 }
 0x210   :  { %556 = vst.msk [vmem:[#allocation4] sm:$0xff] %vm49_vm0, %v554_v18 }
 0x211   :  { %566 = vst.msk [vmem:[%s2307_s6] sm:$0xff] %vm565_vm1, %v554_v18 }
 0x212   :  { %1567 = vst.msk [vmem:[%s2307_s6 + $0x38] sm:$0xff] %vm569_vm2, %v554_v18 }
 0x213   :  { %v559_v21 = vpop.permute.xlu1 %558 }
 0x214   :  { %561 = vst.msk [vmem:[#allocation5] sm:$0xff] %vm49_vm0, %v559_v21 }
 0x217   :  { %v583_v23 = vld [vmem:[#allocation4] sm:$0xff] }
 0x218   :  { %1568 = vmatmul.mubr.msk.f32.vlgmr.msra.gmra.mxu1 %vm49_vm0, %v583_v23 }
 0x219   :  { %872 = vmatpush1.msra.mxu1 %v1853_v36  ;;  %919 = vmatprep.mubr.f32.mxu1 %v1700_v3 }
 0x21a   :  { %873 = vmatprep.subr.mxu1 %v1860_v37 }
 0x21b   :  { %v673_v28 = vld [vmem:[#allocation5] sm:$0xff]  ;;  %874 = vmatpush1.msra.mxu1 %v1875_v40 }
 0x21c   :  { %675 = vrot.lane.b32.xlu0 %v673_v28, %s1701_s13  ;;  %875 = vmatprep.subr.mxu1 %v1881_v41 }
 0x21d   :  { %876 = vmatpush1.msra.mxu1 %v1889_v42 }
 0x21e   :  { %877 = vmatprep.subr.mxu1 %v1905_v46 }
 0x21f   :  { %878 = vmatpush1.msra.mxu1 %v1913_v47 }
 0x220   :  { %879 = vmatprep.subr.mxu1 %v1929_v50 }
 0x221   :  { %880 = vmatpush1.msra.mxu1 %v1937_v51 }
 0x222   :  { %881 = vmatprep.subr.mxu1 %v1953_v54 }
 0x223   :  { %882 = vmatpush1.msra.mxu1 %v1961_v55 }
 0x224   :  { %883 = vmatprep.subr.mxu1 %v1977_v58 }
 0x225   :  { %884 = vmatpush1.msra.mxu1 %v1985_v59 }
 0x226   :  { %885 = vmatprep.subr.mxu1 %v2001_v62 }
 0x227   :  { %886 = vmatpush1.msra.mxu1 %v2009_v63 }
 0x228   :  { %1135 = vmatprep.subr.mxu1 %v1848_v35 }
 0x28e   :  { %v676_v45 = vpop.permute.xlu0 %675 }
 0x2d8   :  { %v653_v29 = vpop.f32.mrf.mxu1 }
 0x2d9   :  { %v658_v26 = vadd.f32 %v653_v29, %v2071_v10 }
 0x2da   :  { %v655_v31 = vpop.f32.mrf.mxu1 }
 0x2db   :  { %v1569_v30 = vmul.f32 -1.442695, %v658_v26  ;;  %v659_v32 = vadd.f32 %v655_v31, %v2075_v24 }
 0x2dd   :  { %1616 = vpow2.f32 %v1569_v30  ;;  %v1570_v15 = vmul.f32 -1.442695, %v659_v32 }
 0x2de   :  { %1618 = vtanh.f32 %v659_v32 }
 0x2ea   :  { %v1617_v33 = vpop.eup %1616 }
 0x2eb   :  { %v666_v25 = vadd.f32 1.0, %v1617_v33  ;;  %v1619_v34 = vpop.eup %1618 }
 0x2ed   :  { %1620 = vrcp.f32 %v666_v25 }
 0x2ee   :  { %1622 = vpow2.f32 %v1570_v15 }
 0x2fa   :  { %v1621_v43 = vpop.eup %1620 }
 0x2fb   :  { %v679_v20 = vmul.f32 %v1621_v43, %v1619_v34  ;;  %v1623_v44 = vpop.eup %1622  ;;  %v678_v10 = vmul.f32 %v1621_v43, %v676_v45 }
 0x2fc   :  { %v667_v8 = vadd.f32 1.0, %v1623_v44 }
 0x2fd   :  { %681 = vrot.lane.b32.xlu1 %v679_v20, %s1701_s13 }
 0x2fe   :  { %1624 = vrcp.f32 %v667_v8 }
 0x30b   :  { %v1625_v24 = vpop.eup %1624 }
 0x36f   :  { %v682_v13 = vpop.permute.xlu1 %681 }
 0x370   :  { %v684_v19 = vadd.f32 %v682_v13, %v678_v10 }
 0x372   :  { %1626 = vtanh.f32 %v684_v19  ;;  %693 = vrot.lane.b32.xlu1 %v684_v19, %s1701_s13 }
 0x37f   :  { %v1627_v52 = vpop.eup %1626 }
 0x380   :  { %v686_v53 = vmul.f32 %v1627_v52, %v1625_v24 }
 0x382   :  { %688 = vrot.lane.b32.xlu0 %v686_v53, %s1701_s13 }
 0x3e4   :  { %v694_v9 = vpop.permute.xlu1 %693 }
 0x3e5   :  { %696 = vst.msk [vmem:[#allocation5] sm:$0xff] %vm49_vm0, %v694_v9 }
 0x3ec   :  { %v807_v56 = vld [vmem:[#allocation5] sm:$0xff] }
 0x3ed   :  { %809 = vrot.lane.b32.xlu0 %v807_v56, %s1701_s13 }
 0x3f4   :  { %v689_v12 = vpop.permute.xlu0 %688 }
 0x3f5   :  { %691 = vst.msk [vmem:[#allocation4] sm:$0xff] %vm49_vm0, %v689_v12 }
 0x3f6   :  { %1571 = vst.msk [vmem:[%s2307_s6 + $0x8] sm:$0xff] %vm565_vm1, %v689_v12 }
 0x3f7   :  { %1572 = vst.msk [vmem:[%s2307_s6 + $0x30] sm:$0xff] %vm569_vm2, %v689_v12 }
 0x3fc   :  { %v717_v61 = vld [vmem:[#allocation4] sm:$0xff] }
 0x3fd   :  { %1573 = vmatmul.mubr.msk.f32.vlgmr.msra.gmra.mxu0 %vm49_vm0, %v717_v61 }
 0x3fe   :  { %1004 = vmatpush1.msra.mxu0 %v1853_v36  ;;  %1051 = vmatprep.mubr.f32.mxu0 %v1700_v3 }
 0x3ff   :  { %1005 = vmatprep.subr.mxu0 %v1860_v37 }
 0x400   :  { %1006 = vmatpush1.msra.mxu0 %v1875_v40 }
 0x401   :  { %1007 = vmatprep.subr.mxu0 %v1881_v41 }
 0x402   :  { %1008 = vmatpush1.msra.mxu0 %v1889_v42 }
 0x403   :  { %1009 = vmatprep.subr.mxu0 %v1905_v46 }
 0x404   :  { %1010 = vmatpush1.msra.mxu0 %v1913_v47 }
 0x405   :  { %1011 = vmatprep.subr.mxu0 %v1929_v50 }
 0x406   :  { %1012 = vmatpush1.msra.mxu0 %v1937_v51 }
 0x407   :  { %1013 = vmatprep.subr.mxu0 %v1953_v54 }
 0x408   :  { %1014 = vmatpush1.msra.mxu0 %v1961_v55 }
 0x409   :  { %1015 = vmatprep.subr.mxu0 %v1977_v58 }
 0x40a   :  { %1016 = vmatpush1.msra.mxu0 %v1985_v59 }
 0x40b   :  { %1017 = vmatprep.subr.mxu0 %v2001_v62 }
 0x40c   :  { %1018 = vmatpush1.msra.mxu0 %v2009_v63 }
 0x40d   :  { %1267 = vmatprep.subr.mxu0 %v1848_v35 }
 0x45f   :  { %v810_v26 = vpop.permute.xlu0 %809 }
 0x4bd   :  { %v787_v0 = vpop.f32.mrf.mxu0 }
 0x4be   :  { %v792_v1 = vadd.f32 %v787_v0, %v2063_v57 }
 0x4bf   :  { %v789_v11 = vpop.f32.mrf.mxu0 }
 0x4c0   :  { %v1574_v5 = vmul.f32 -1.442695, %v792_v1  ;;  %v793_v16 = vadd.f32 %v789_v11, %v2067_v2 }
 0x4c2   :  { %1628 = vpow2.f32 %v1574_v5  ;;  %v1575_v28 = vmul.f32 -1.442695, %v793_v16 }
 0x4c3   :  { %1630 = vtanh.f32 %v793_v16 }
 0x4cf   :  { %v1629_v6 = vpop.eup %1628 }
 0x4d0   :  { %v800_v7 = vadd.f32 1.0, %v1629_v6  ;;  %v1631_v18 = vpop.eup %1630 }
 0x4d2   :  { %1632 = vrcp.f32 %v800_v7 }
 0x4d3   :  { %1634 = vpow2.f32 %v1575_v28 }
 0x4df   :  { %v1633_v21 = vpop.eup %1632 }
 0x4e0   :  { %v813_v23 = vmul.f32 %v1633_v21, %v1631_v18  ;;  %v1635_v29 = vpop.eup %1634  ;;  %v812_v57 = vmul.f32 %v1633_v21, %v810_v26 }
 0x4e1   :  { %v801_v30 = vadd.f32 1.0, %v1635_v29 }
 0x4e2   :  { %815 = vrot.lane.b32.xlu1 %v813_v23, %s1701_s13 }
 0x4e3   :  { %1636 = vrcp.f32 %v801_v30 }
 0x4f0   :  { %v1637_v2 = vpop.eup %1636 }
 0x554   :  { %v816_v31 = vpop.permute.xlu1 %815 }
 0x555   :  { %v818_v32 = vadd.f32 %v816_v31, %v812_v57 }
 0x557   :  { %1638 = vtanh.f32 %v818_v32  ;;  %827 = vrot.lane.b32.xlu1 %v818_v32, %s1701_s13 }
 0x564   :  { %v1639_v33 = vpop.eup %1638 }
 0x565   :  { %v820_v25 = vmul.f32 %v1639_v33, %v1637_v2 }
 0x567   :  { %822 = vrot.lane.b32.xlu0 %v820_v25, %s1701_s13 }
 0x5c9   :  { %v828_v34 = vpop.permute.xlu1 %827 }
 0x5ca   :  { %830 = vst.msk [vmem:[#allocation5] sm:$0xff] %vm49_vm0, %v828_v34 }
 0x5d1   :  { %v941_v43 = vld [vmem:[#allocation5] sm:$0xff] }
 0x5d2   :  { %943 = vrot.lane.b32.xlu0 %v941_v43, %s1701_s13 }
 0x5d9   :  { %v823_v20 = vpop.permute.xlu0 %822 }
 0x5da   :  { %825 = vst.msk [vmem:[#allocation4] sm:$0xff] %vm49_vm0, %v823_v20 }
 0x5db   :  { %1576 = vst.msk [vmem:[%s2307_s6 + $0x10] sm:$0xff] %vm565_vm1, %v823_v20 }
 0x5dc   :  { %1577 = vst.msk [vmem:[%s2307_s6 + $0x28] sm:$0xff] %vm569_vm2, %v823_v20 }
 0x5e1   :  { %v851_v15 = vld [vmem:[#allocation4] sm:$0xff] }
 0x5e2   :  { %1578 = vmatmul.mubr.msk.f32.vlgmr.msra.gmra.mxu1 %vm49_vm0, %v851_v15 }
 0x5e3   :  { %1136 = vmatpush1.msra.mxu1 %v1853_v36  ;;  %1183 = vmatprep.mubr.f32.mxu1 %v1700_v3 }
 0x5e4   :  { %1137 = vmatprep.subr.mxu1 %v1860_v37 }
 0x5e5   :  { %1138 = vmatpush1.msra.mxu1 %v1875_v40 }
 0x5e6   :  { %1139 = vmatprep.subr.mxu1 %v1881_v41 }
 0x5e7   :  { %1140 = vmatpush1.msra.mxu1 %v1889_v42 }
 0x5e8   :  { %1141 = vmatprep.subr.mxu1 %v1905_v46 }
 0x5e9   :  { %1142 = vmatpush1.msra.mxu1 %v1913_v47 }
 0x5ea   :  { %1143 = vmatprep.subr.mxu1 %v1929_v50 }
 0x5eb   :  { %1144 = vmatpush1.msra.mxu1 %v1937_v51 }
 0x5ec   :  { %1145 = vmatprep.subr.mxu1 %v1953_v54 }
 0x5ed   :  { %1146 = vmatpush1.msra.mxu1 %v1961_v55 }
 0x5ee   :  { %1147 = vmatprep.subr.mxu1 %v1977_v58 }
 0x5ef   :  { %1148 = vmatpush1.msra.mxu1 %v1985_v59 }
 0x5f0   :  { %1149 = vmatprep.subr.mxu1 %v2001_v62 }
 0x5f1   :  { %1150 = vmatpush1.msra.mxu1 %v2009_v63 }
 0x5f2   :  { %1399 = vmatprep.subr.mxu1 %v1848_v35 }
 0x644   :  { %v944_v12 = vpop.permute.xlu0 %943 }
 0x6a2   :  { %v921_v44 = vpop.f32.mrf.mxu1 }
 0x6a3   :  { %v926_v45 = vadd.f32 %v921_v44, %v2057_v39 }
 0x6a4   :  { %v923_v10 = vpop.f32.mrf.mxu1 }
 0x6a5   :  { %v1579_v8 = vmul.f32 -1.442695, %v926_v45  ;;  %v927_v13 = vadd.f32 %v923_v10, %v2059_v48 }
 0x6a7   :  { %1640 = vpow2.f32 %v1579_v8  ;;  %v1580_v56 = vmul.f32 -1.442695, %v927_v13 }
 0x6a8   :  { %1642 = vtanh.f32 %v927_v13 }
 0x6b4   :  { %v1641_v19 = vpop.eup %1640 }
 0x6b5   :  { %v934_v24 = vadd.f32 1.0, %v1641_v19  ;;  %v1643_v52 = vpop.eup %1642 }
 0x6b7   :  { %1644 = vrcp.f32 %v934_v24 }
 0x6b8   :  { %1646 = vpow2.f32 %v1580_v56 }
 0x6c4   :  { %v1645_v53 = vpop.eup %1644 }
 0x6c5   :  { %v947_v9 = vmul.f32 %v1645_v53, %v1643_v52  ;;  %v1647_v35 = vpop.eup %1646  ;;  %v946_v39 = vmul.f32 %v1645_v53, %v944_v12 }
 0x6c6   :  { %v935_v61 = vadd.f32 1.0, %v1647_v35 }
 0x6c7   :  { %949 = vrot.lane.b32.xlu1 %v947_v9, %s1701_s13 }
 0x6c8   :  { %1648 = vrcp.f32 %v935_v61 }
 0x6d5   :  { %v1649_v48 = vpop.eup %1648 }
 0x739   :  { %v950_v0 = vpop.permute.xlu1 %949 }
 0x73a   :  { %v952_v1 = vadd.f32 %v950_v0, %v946_v39 }
 0x73c   :  { %1650 = vtanh.f32 %v952_v1  ;;  %961 = vrot.lane.b32.xlu1 %v952_v1, %s1701_s13 }
 0x749   :  { %v1651_v5 = vpop.eup %1650 }
 0x74a   :  { %v954_v11 = vmul.f32 %v1651_v5, %v1649_v48 }
 0x74c   :  { %956 = vrot.lane.b32.xlu0 %v954_v11, %s1701_s13 }
 0x7ae   :  { %v962_v16 = vpop.permute.xlu1 %961 }
 0x7af   :  { %964 = vst.msk [vmem:[#allocation5] sm:$0xff] %vm49_vm0, %v962_v16 }
 0x7b6   :  { %v1073_v6 = vld [vmem:[#allocation5] sm:$0xff] }
 0x7b7   :  { %1075 = vrot.lane.b32.xlu0 %v1073_v6, %s1701_s13 }
 0x7be   :  { %v957_v7 = vpop.permute.xlu0 %956 }
 0x7bf   :  { %959 = vst.msk [vmem:[#allocation4] sm:$0xff] %vm49_vm0, %v957_v7 }
 0x7c0   :  { %1581 = vst.msk [vmem:[%s2307_s6 + $0x18] sm:$0xff] %vm565_vm1, %v957_v7 }
 0x7c1   :  { %1582 = vst.msk [vmem:[%s2307_s6 + $0x20] sm:$0xff] %vm569_vm2, %v957_v7 }
 0x7c6   :  { %v983_v18 = vld [vmem:[#allocation4] sm:$0xff] }
 0x7c7   :  { %1583 = vmatmul.mubr.msk.f32.vlgmr.msra.gmra.mxu0 %vm49_vm0, %v983_v18 }
 0x7c8   :  { %1268 = vmatpush1.msra.mxu0 %v1853_v36  ;;  %1315 = vmatprep.mubr.f32.mxu0 %v1700_v3 }
 0x7c9   :  { %1269 = vmatprep.subr.mxu0 %v1860_v37 }
 0x7ca   :  { %1270 = vmatpush1.msra.mxu0 %v1875_v40 }
 0x7cb   :  { %1271 = vmatprep.subr.mxu0 %v1881_v41 }
 0x7cc   :  { %1272 = vmatpush1.msra.mxu0 %v1889_v42 }
 0x7cd   :  { %1273 = vmatprep.subr.mxu0 %v1905_v46 }
 0x7ce   :  { %1274 = vmatpush1.msra.mxu0 %v1913_v47 }
 0x7cf   :  { %1275 = vmatprep.subr.mxu0 %v1929_v50 }
 0x7d0   :  { %1276 = vmatpush1.msra.mxu0 %v1937_v51 }
 0x7d1   :  { %1277 = vmatprep.subr.mxu0 %v1953_v54 }
 0x7d2   :  { %1278 = vmatpush1.msra.mxu0 %v1961_v55 }
 0x7d3   :  { %1279 = vmatprep.subr.mxu0 %v1977_v58 }
 0x7d4   :  { %1280 = vmatpush1.msra.mxu0 %v1985_v59 }
 0x7d5   :  { %1281 = vmatprep.subr.mxu0 %v2001_v62 }
 0x7d6   :  { %1282 = vmatpush1.msra.mxu0 %v2009_v63 }
 0x829   :  { %v1076_v34 = vpop.permute.xlu0 %1075 }
 0x887   :  { %v1053_v21 = vpop.f32.mrf.mxu0 }
 0x888   :  { %v1058_v23 = vadd.f32 %v1053_v21, %v2061_v49 }
 0x889   :  { %v1055_v29 = vpop.f32.mrf.mxu0 }
 0x88a   :  { %v1584_v28 = vmul.f32 -1.442695, %v1058_v23  ;;  %v1059_v26 = vadd.f32 %v1055_v29, %v2065_v60 }
 0x88c   :  { %1652 = vpow2.f32 %v1584_v28  ;;  %v1585_v33 = vmul.f32 -1.442695, %v1059_v26 }
 0x88d   :  { %1654 = vtanh.f32 %v1059_v26 }
 0x899   :  { %v1653_v30 = vpop.eup %1652 }
 0x89a   :  { %v1066_v57 = vadd.f32 1.0, %v1653_v30  ;;  %v1655_v31 = vpop.eup %1654 }
 0x89c   :  { %1656 = vrcp.f32 %v1066_v57 }
 0x89d   :  { %1658 = vpow2.f32 %v1585_v33 }
 0x8a9   :  { %v1657_v32 = vpop.eup %1656 }
 0x8aa   :  { %v1079_v2 = vmul.f32 %v1657_v32, %v1655_v31  ;;  %v1659_v25 = vpop.eup %1658  ;;  %v1078_v49 = vmul.f32 %v1657_v32, %v1076_v34 }
 0x8ab   :  { %v1067_v43 = vadd.f32 1.0, %v1659_v25 }
 0x8ac   :  { %1081 = vrot.lane.b32.xlu1 %v1079_v2, %s1701_s13 }
 0x8ad   :  { %1660 = vrcp.f32 %v1067_v43 }
 0x8ba   :  { %v1661_v60 = vpop.eup %1660 }
 0x91e   :  { %v1082_v20 = vpop.permute.xlu1 %1081 }
 0x91f   :  { %v1084_v15 = vadd.f32 %v1082_v20, %v1078_v49 }
 0x921   :  { %1662 = vtanh.f32 %v1084_v15  ;;  %1093 = vrot.lane.b32.xlu1 %v1084_v15, %s1701_s13 }
 0x92e   :  { %v1663_v44 = vpop.eup %1662 }
 0x92f   :  { %v1086_v45 = vmul.f32 %v1663_v44, %v1661_v60 }
 0x931   :  { %1088 = vrot.lane.b32.xlu0 %v1086_v45, %s1701_s13 }
 0x993   :  { %v1094_v8 = vpop.permute.xlu1 %1093 }
 0x994   :  { %1096 = vst.msk [vmem:[#allocation5] sm:$0xff] %vm49_vm0, %v1094_v8 }
 0x99b   :  { %v1205_v10 = vld [vmem:[#allocation5] sm:$0xff] }
 0x99c   :  { %1207 = vrot.lane.b32.xlu0 %v1205_v10, %s1701_s13 }
 0x9a3   :  { %v1089_v13 = vpop.permute.xlu0 %1088 }
 0x9a4   :  { %1091 = vst.msk [vmem:[#allocation4] sm:$0xff] %vm49_vm0, %v1089_v13 }
 0x9a5   :  { %1586 = vst.msk [vmem:[%s2307_s6 + $0x20] sm:$0xff] %vm565_vm1, %v1089_v13 }
 0x9a6   :  { %1587 = vst.msk [vmem:[%s2307_s6 + $0x18] sm:$0xff] %vm569_vm2, %v1089_v13 }
 0x9ab   :  { %v1115_v19 = vld [vmem:[#allocation4] sm:$0xff] }
 0x9ac   :  { %1588 = vmatmul.mubr.msk.f32.vlgmr.msra.gmra.mxu1 %vm49_vm0, %v1115_v19 }
 0x9ad   :  { %1400 = vmatpush1.msra.mxu1 %v1853_v36  ;;  %1447 = vmatprep.mubr.f32.mxu1 %v1700_v3 }
 0x9ae   :  { %1401 = vmatprep.subr.mxu1 %v1860_v37 }
 0x9af   :  { %1402 = vmatpush1.msra.mxu1 %v1875_v40 }
 0x9b0   :  { %1403 = vmatprep.subr.mxu1 %v1881_v41 }
 0x9b1   :  { %1404 = vmatpush1.msra.mxu1 %v1889_v42 }
 0x9b2   :  { %1405 = vmatprep.subr.mxu1 %v1905_v46 }
 0x9b3   :  { %1406 = vmatpush1.msra.mxu1 %v1913_v47 }
 0x9b4   :  { %1407 = vmatprep.subr.mxu1 %v1929_v50 }
 0x9b5   :  { %1408 = vmatpush1.msra.mxu1 %v1937_v51 }
 0x9b6   :  { %1409 = vmatprep.subr.mxu1 %v1953_v54 }
 0x9b7   :  { %1410 = vmatpush1.msra.mxu1 %v1961_v55 }
 0x9b8   :  { %1411 = vmatprep.subr.mxu1 %v1977_v58 }
 0x9b9   :  { %1412 = vmatpush1.msra.mxu1 %v1985_v59 }
 0x9ba   :  { %1413 = vmatprep.subr.mxu1 %v2001_v62 }
 0x9bb   :  { %1414 = vmatpush1.msra.mxu1 %v2009_v63 }
 0xa0e   :  { %v1208_v58 = vpop.permute.xlu0 %1207 }
 0xa6c   :  { %v1185_v3 = vpop.f32.mrf.mxu1 }
 0xa6d   :  { %v1190_v36 = vadd.f32 %v1185_v3, %v2069_v4 }
 0xa6e   :  { %v1187_v40 = vpop.f32.mrf.mxu1 }
 0xa6f   :  { %v1589_v37 = vmul.f32 -1.442695, %v1190_v36  ;;  %v1191_v41 = vadd.f32 %v1187_v40, %v2073_v14 }
 0xa71   :  { %1664 = vpow2.f32 %v1589_v37  ;;  %v1590_v54 = vmul.f32 -1.442695, %v1191_v41 }
 0xa72   :  { %1666 = vtanh.f32 %v1191_v41 }
 0xa7e   :  { %v1665_v42 = vpop.eup %1664 }
 0xa7f   :  { %v1198_v46 = vadd.f32 1.0, %v1665_v42  ;;  %v1667_v47 = vpop.eup %1666 }
 0xa81   :  { %1668 = vrcp.f32 %v1198_v46 }
 0xa82   :  { %1670 = vpow2.f32 %v1590_v54 }
 0xa8e   :  { %v1669_v50 = vpop.eup %1668 }
 0xa8f   :  { %v1211_v51 = vmul.f32 %v1669_v50, %v1667_v47  ;;  %v1671_v55 = vpop.eup %1670  ;;  %v1210_v62 = vmul.f32 %v1669_v50, %v1208_v58 }
 0xa90   :  { %v1199_v59 = vadd.f32 1.0, %v1671_v55 }
 0xa91   :  { %1213 = vrot.lane.b32.xlu1 %v1211_v51, %s1701_s13 }
 0xa92   :  { %1672 = vrcp.f32 %v1199_v59 }
 0xa9f   :  { %v1673_v14 = vpop.eup %1672 }
 0xb03   :  { %v1214_v63 = vpop.permute.xlu1 %1213 }
 0xb04   :  { %v1216_v4 = vadd.f32 %v1214_v63, %v1210_v62 }
 0xb06   :  { %1674 = vtanh.f32 %v1216_v4  ;;  %1225 = vrot.lane.b32.xlu1 %v1216_v4, %s1701_s13 }
 0xb13   :  { %v1675_v24 = vpop.eup %1674 }
 0xb14   :  { %v1218_v52 = vmul.f32 %v1675_v24, %v1673_v14 }
 0xb16   :  { %1220 = vrot.lane.b32.xlu0 %v1218_v52, %s1701_s13 }
 0xb78   :  { %v1226_v53 = vpop.permute.xlu1 %1225 }
 0xb79   :  { %1228 = vst.msk [vmem:[#allocation5] sm:$0xff] %vm49_vm0, %v1226_v53 }
 0xb80   :  { %v1337_v9 = vld [vmem:[#allocation5] sm:$0xff] }
 0xb81   :  { %1339 = vrot.lane.b32.xlu0 %v1337_v9, %s1701_s13 }
 0xb88   :  { %v1221_v56 = vpop.permute.xlu0 %1220 }
 0xb89   :  { %1223 = vst.msk [vmem:[#allocation4] sm:$0xff] %vm49_vm0, %v1221_v56 }
 0xb8a   :  { %1591 = vst.msk [vmem:[%s2307_s6 + $0x28] sm:$0xff] %vm565_vm1, %v1221_v56 }
 0xb8b   :  { %1592 = vst.msk [vmem:[%s2307_s6 + $0x10] sm:$0xff] %vm569_vm2, %v1221_v56 }
 0xb90   :  { %v1247_v35 = vld [vmem:[#allocation4] sm:$0xff] }
 0xb91   :  { %1593 = vmatmul.mubr.msk.f32.vlgmr.msra.gmra.mxu0 %vm49_vm0, %v1247_v35 }
 0xbf3   :  { %v1340_v21 = vpop.permute.xlu0 %1339 }
 0xc51   :  { %v1317_v12 = vpop.f32.mrf.mxu0 }
 0xc52   :  { %v1322_v61 = vadd.f32 %v1317_v12, %v2077_v27 }
 0xc53   :  { %v1319_v0 = vpop.f32.mrf.mxu0 }
 0xc54   :  { %v1594_v39 = vmul.f32 -1.442695, %v1322_v61  ;;  %v1323_v1 = vadd.f32 %v1319_v0, %v2079_v22 }
 0xc56   :  { %1676 = vpow2.f32 %v1594_v39  ;;  %v1595_v7 = vmul.f32 -1.442695, %v1323_v1 }
 0xc57   :  { %1678 = vtanh.f32 %v1323_v1 }
 0xc63   :  { %v1677_v48 = vpop.eup %1676 }
 0xc64   :  { %v1330_v5 = vadd.f32 1.0, %v1677_v48  ;;  %v1679_v11 = vpop.eup %1678 }
 0xc66   :  { %1680 = vrcp.f32 %v1330_v5 }
 0xc67   :  { %1682 = vpow2.f32 %v1595_v7 }
 0xc73   :  { %v1681_v16 = vpop.eup %1680 }
 0xc74   :  { %v1343_v6 = vmul.f32 %v1681_v16, %v1679_v11  ;;  %v1683_v18 = vpop.eup %1682  ;;  %v1342_v27 = vmul.f32 %v1681_v16, %v1340_v21 }
 0xc75   :  { %v1331_v23 = vadd.f32 1.0, %v1683_v18 }
 0xc76   :  { %1345 = vrot.lane.b32.xlu1 %v1343_v6, %s1701_s13 }
 0xc77   :  { %1684 = vrcp.f32 %v1331_v23 }
 0xc84   :  { %v1685_v22 = vpop.eup %1684 }
 0xce8   :  { %v1346_v28 = vpop.permute.xlu1 %1345 }
 0xce9   :  { %v1348_v29 = vadd.f32 %v1346_v28, %v1342_v27 }
 0xceb   :  { %1686 = vtanh.f32 %v1348_v29  ;;  %1357 = vrot.lane.b32.xlu1 %v1348_v29, %s1701_s13 }
 0xcf8   :  { %v1687_v26 = vpop.eup %1686 }
 0xcf9   :  { %v1350_v30 = vmul.f32 %v1687_v26, %v1685_v22 }
 0xcfb   :  { %1352 = vrot.lane.b32.xlu0 %v1350_v30, %s1701_s13 }
 0xd5d   :  { %v1358_v57 = vpop.permute.xlu1 %1357 }
 0xd5e   :  { %1360 = vst.msk [vmem:[#allocation5] sm:$0xff] %vm49_vm0, %v1358_v57 }
 0xd65   :  { %v1469_v31 = vld [vmem:[#allocation5] sm:$0xff] }
 0xd66   :  { %1471 = vrot.lane.b32.xlu0 %v1469_v31, %s1701_s13 }
 0xd6d   :  { %v1353_v32 = vpop.permute.xlu0 %1352 }
 0xd6e   :  { %1355 = vst.msk [vmem:[#allocation4] sm:$0xff] %vm49_vm0, %v1353_v32 }
 0xd6f   :  { %1596 = vst.msk [vmem:[%s2307_s6 + $0x30] sm:$0xff] %vm565_vm1, %v1353_v32 }
 0xd70   :  { %1597 = vst.msk [vmem:[%s2307_s6 + $0x8] sm:$0xff] %vm569_vm2, %v1353_v32 }
 0xd75   :  { %v1379_v2 = vld [vmem:[#allocation4] sm:$0xff] }
 0xd76   :  { %1598 = vmatmul.mubr.msk.f32.vlgmr.msra.gmra.mxu1 %vm49_vm0, %v1379_v2 }
 0xdd8   :  { %v1472_v13 = vpop.permute.xlu0 %1471 }
 0xe36   :  { %v1449_v33 = vpop.f32.mrf.mxu1 }
 0xe37   :  { %v1454_v25 = vadd.f32 %v1449_v33, %v2081_v17 }
 0xe38   :  { %v1451_v43 = vpop.f32.mrf.mxu1 }
 0xe39   :  { %v1599_v34 = vmul.f32 -1.442695, %v1454_v25  ;;  %v1455_v49 = vadd.f32 %v1451_v43, %v2083_v38 }
 0xe3b   :  { %1688 = vpow2.f32 %v1599_v34  ;;  %v1600_v8 = vmul.f32 -1.442695, %v1455_v49 }
 0xe3c   :  { %1690 = vtanh.f32 %v1455_v49 }
 0xe48   :  { %v1689_v20 = vpop.eup %1688 }
 0xe49   :  { %v1462_v15 = vadd.f32 1.0, %v1689_v20  ;;  %v1691_v60 = vpop.eup %1690 }
 0xe4b   :  { %1692 = vrcp.f32 %v1462_v15 }
 0xe4c   :  { %1694 = vpow2.f32 %v1600_v8 }
 0xe58   :  { %v1693_v44 = vpop.eup %1692 }
 0xe59   :  { %v1475_v45 = vmul.f32 %v1693_v44, %v1691_v60  ;;  %v1695_v10 = vpop.eup %1694  ;;  %v1474_v17 = vmul.f32 %v1693_v44, %v1472_v13 }
 0xe5a   :  { %v1463_v19 = vadd.f32 1.0, %v1695_v10 }
 0xe5b   :  { %1477 = vrot.lane.b32.xlu1 %v1475_v45, %s1701_s13 }
 0xe5c   :  { %1696 = vrcp.f32 %v1463_v19 }
 0xe69   :  { %v1697_v38 = vpop.eup %1696 }
 0xecd   :  { %v1478_v3 = vpop.permute.xlu1 %1477 }
 0xece   :  { %v1480_v36 = vadd.f32 %v1478_v3, %v1474_v17 }
 0xed0   :  { %1698 = vtanh.f32 %v1480_v36  ;;  %1489 = vrot.lane.b32.xlu1 %v1480_v36, %s1701_s13 }
 0xedd   :  { %v1699_v37 = vpop.eup %1698 }
 0xede   :  { %v1482_v40 = vmul.f32 %v1699_v37, %v1697_v38 }
 0xee0   :  { %1484 = vrot.lane.b32.xlu0 %v1482_v40, %s1701_s13 }
 0xf42   :  { %v1490_v41 = vpop.permute.xlu1 %1489 }
 0xf43   :  { %1492 = vst.msk [vmem:[#allocation5] sm:$0xff] %vm49_vm0, %v1490_v41 }
 0xf52   :  { %v1485_v42 = vpop.permute.xlu0 %1484 }
 0xf53   :  { %1487 = vst.msk [vmem:[#allocation4] sm:$0xff] %vm49_vm0, %v1485_v42 }
 0xf54   :  { %1601 = vst.msk [vmem:[%s2307_s6 + $0x38] sm:$0xff] %vm565_vm1, %v1485_v42 }
 0xf55   :  { %1500 = vst.msk [vmem:[%s2307_s6] sm:$0xff] %vm569_vm2, %v1485_v42 }

// kernel: speech_model_forward.3
= control target key start
LH: loop header
LB: loop body
LE: loop exit
PB: predicated region body
PF: predicated region fallthrough
CT: control target
= control target key end

     0   :  { %vm49_vm0 = vcmask 523264   ;;  %v1677_v3 = vmov 0.0   ;;  %vm76_vm1 = vcmask 130048   ;;  %v66_v43 = vlaneseq  ;;  %s2206_s2 = inlined_call_operand.vmem [shape: f32[16,256], index: 2, kind: input, shape index: {}]   ;;  %s2207_s3 = inlined_call_operand.vmem [shape: f32[16,256], index: 3, kind: input, shape index: {}]   ;;  %s2208_s0 = inlined_call_operand.vmem [shape: f32[64,16], index: 0, kind: input, shape index: {}, may-alias: {0,1}]   ;;  %s2209_s1 = inlined_call_operand.vmem [shape: f32[64,16], index: 1, kind: input, shape index: {}, may-alias: {0,1}]   ;;  %s2210_s4 = inlined_call_operand.vmem [shape: f32[64,256], index: 4, kind: input, shape index: {}]   ;;  %s2211_s5 = inlined_call_operand.vmem [shape: f32[1,256], index: 5, kind: input, shape index: {}]   ;;  %s2212_s6 = inlined_call_operand.vmem [shape: f32[64,64], index: 6, kind: output, shape index: {}]  }
   0x1   :  { %v63_v0 = vld [vmem:[%s2206_s2 + $0x18] sm:$0xff]  ;;  %v62_v2 = vld [vmem:[%s2206_s2 + $0x10] sm:$0xff]  ;;  %165 = vmatprep.mubr.f32.mxu0 %v1677_v3  ;;  %330 = vmatprep.mubr.f32.mxu1 %v1677_v3  ;;  %50 = vst.msk [vmem:[#allocation4] sm:$0xff] %vm49_vm0, %v1677_v3  ;;  %51 = vst.msk [vmem:[#allocation5] sm:$0xff] %vm49_vm0, %v1677_v3  ;;  %vm542_vm2 = vcmask 261120   ;;  %vm546_vm3 = vcmask 523520  }
   0x2   :  { %v241_v1 = vld [vmem:[%s2207_s3 + $0x18] sm:$0xff]  ;;  %129 = vmatprep.subr.mxu0 %v63_v0  ;;  %v240_v4 = vld [vmem:[%s2207_s3 + $0x10] sm:$0xff]  ;;  %v61_v5 = vld [vmem:[%s2206_s2 + $0x8] sm:$0xff]  ;;  %v67_v44 = vshrl.u32 %v66_v43, 7 }
   0x3   :  { %294 = vmatprep.subr.mxu1 %v241_v1  ;;  %v239_v6 = vld [vmem:[%s2207_s3 + $0x8] sm:$0xff]  ;;  %130 = vmatpush1.msra.mxu0 %v62_v2  ;;  %v60_v7 = vld [vmem:[%s2206_s2] sm:$0xff]  ;;  %v1753_v11 = vld [vmem:[%s2210_s4 + $0x78] sm:$0xff]  ;;  %s1678_s2 = smov 64  }
   0x4   :  { %295 = vmatpush1.msra.mxu1 %v240_v4  ;;  %v238_v8 = vld [vmem:[%s2207_s3] sm:$0xff]  ;;  %131 = vmatprep.subr.mxu0 %v61_v5  ;;  %v1758_v12 = vld [vmem:[%s2210_s4 + $0x70] sm:$0xff]  ;;  %v1765_v13 = vld [vmem:[%s2210_s4 + $0x68] sm:$0xff]  ;;  %v68_v45 = vsub.s32 0, %v67_v44  ;;  %v72_v49 = vsub.s32 1, %v67_v44 }
   0x5   :  { %v52_v9 = vld [vmem:[%s2208_s0] sm:$0xff]  ;;  %296 = vmatprep.subr.mxu1 %v239_v6  ;;  %132 = vmatpush1.msra.mxu0 %v60_v7  ;;  %v53_v14 = vld [vmem:[%s2208_s0 + $0x8] sm:$0xff]  ;;  %v1786_v17 = vld [vmem:[%s2210_s4 + $0x58] sm:$0xff] }
   0x6   :  { %v230_v10 = vld [vmem:[%s2209_s1] sm:$0xff]  ;;  %297 = vmatpush1.msra.mxu1 %v238_v8  ;;  %1525 = vmatmul.mubr.msk.f32.vlgmr.msra.gmra.mxu0 %vm76_vm1, %v52_v9  ;;  %v231_v15 = vld [vmem:[%s2209_s1 + $0x8] sm:$0xff]  ;;  %v1794_v18 = vld [vmem:[%s2210_s4 + $0x50] sm:$0xff] }
   0x7   :  { %1533 = vmatmul.mubr.msk.f32.vlgmr.msra.gmra.mxu1 %vm76_vm1, %v230_v10  ;;  %445 = vmatprep.subr.mxu0 %v1753_v11  ;;  %v1780_v16 = vld [vmem:[%s2210_s4 + $0x60] sm:$0xff]  ;;  %v54_v19 = vld [vmem:[%s2208_s0 + $0x10] sm:$0xff]  ;;  %v1810_v21 = vld [vmem:[%s2210_s4 + $0x48] sm:$0xff] }
   0x8   :  { %171 = vmatprep.mubr.f32.mxu0 %v1677_v3  ;;  %446 = vmatpush1.msra.mxu0 %v1758_v12  ;;  %v232_v20 = vld [vmem:[%s2209_s1 + $0x10] sm:$0xff]  ;;  %v1818_v22 = vld [vmem:[%s2210_s4 + $0x40] sm:$0xff]  ;;  %v515_v23 = vld [vmem:[#allocation5] sm:$0xff] }
   0x9   :  { %336 = vmatprep.mubr.f32.mxu1 %v1677_v3  ;;  %447 = vmatprep.subr.mxu0 %v1765_v13  ;;  %v55_v24 = vld [vmem:[%s2208_s0 + $0x18] sm:$0xff]  ;;  %v1842_v27 = vld [vmem:[%s2210_s4 + $0x30] sm:$0xff]  ;;  %v56_v28 = vld [vmem:[%s2208_s0 + $0x20] sm:$0xff] }
   0xa   :  { %580 = vmatprep.subr.mxu1 %v1753_v11  ;;  %1526 = vmatmul.mubr.msk.f32.gmra.mxu0 %vm76_vm1, %v53_v14  ;;  %v233_v25 = vld [vmem:[%s2209_s1 + $0x18] sm:$0xff]  ;;  %v234_v29 = vld [vmem:[%s2209_s1 + $0x20] sm:$0xff]  ;;  %v1858_v30 = vld [vmem:[%s2210_s4 + $0x28] sm:$0xff] }
   0xb   :  { %1534 = vmatmul.mubr.msk.f32.gmra.mxu1 %vm76_vm1, %v231_v15  ;;  %448 = vmatpush1.msra.mxu0 %v1780_v16  ;;  %v1834_v26 = vld [vmem:[%s2210_s4 + $0x38] sm:$0xff]  ;;  %v1866_v31 = vld [vmem:[%s2210_s4 + $0x20] sm:$0xff]  ;;  %v57_v32 = vld [vmem:[%s2208_s0 + $0x28] sm:$0xff] }
   0xc   :  { %177 = vmatprep.mubr.f32.mxu0 %v1677_v3  ;;  %342 = vmatprep.mubr.f32.mxu1 %v1677_v3  ;;  %v235_v33 = vld [vmem:[%s2209_s1 + $0x28] sm:$0xff]  ;;  %v1882_v34 = vld [vmem:[%s2210_s4 + $0x18] sm:$0xff]  ;;  %v1890_v35 = vld [vmem:[%s2210_s4 + $0x10] sm:$0xff] }
   0xd   :  { %449 = vmatprep.subr.mxu0 %v1786_v17  ;;  %581 = vmatpush1.msra.mxu1 %v1758_v12  ;;  %v58_v36 = vld [vmem:[%s2208_s0 + $0x30] sm:$0xff]  ;;  %v1906_v38 = vld [vmem:[%s2210_s4 + $0x8] sm:$0xff]  ;;  %v1914_v39 = vld [vmem:[%s2210_s4] sm:$0xff] }
   0xe   :  { %450 = vmatpush1.msra.mxu0 %v1794_v18  ;;  %517 = vrot.lane.b32.xlu0 %v515_v23, %s1678_s2  ;;  %v236_v37 = vld [vmem:[%s2209_s1 + $0x30] sm:$0xff]  ;;  %v59_v40 = vld [vmem:[%s2208_s0 + $0x38] sm:$0xff]  ;;  %v424_v42 = vld [vmem:[#allocation4] sm:$0xff] }
   0xf   :  { %1527 = vmatmul.mubr.msk.f32.gmra.mxu0 %vm76_vm1, %v54_v19  ;;  %1535 = vmatmul.mubr.msk.f32.gmra.mxu1 %vm76_vm1, %v232_v20  ;;  %v237_v41 = vld [vmem:[%s2209_s1 + $0x38] sm:$0xff]  ;;  %v64_v46 = vld [vmem:[%s2211_s5] sm:$0x3] }
  0x10   :  { %183 = vmatprep.mubr.f32.mxu0 %v1677_v3  ;;  %348 = vmatprep.mubr.f32.mxu1 %v1677_v3  ;;  %v69_v52 = vrot.slane %v64_v46, %v68_v45  ;;  %v73_v55 = vrot.slane %v64_v46, %v72_v49 }
  0x11   :  { %451 = vmatprep.subr.mxu0 %v1810_v21  ;;  %582 = vmatprep.subr.mxu1 %v1765_v13 }
  0x12   :  { %452 = vmatpush1.msra.mxu0 %v1818_v22  ;;  %583 = vmatpush1.msra.mxu1 %v1780_v16 }
  0x13   :  { %1528 = vmatmul.mubr.msk.f32.gmra.mxu0 %vm76_vm1, %v55_v24  ;;  %1536 = vmatmul.mubr.msk.f32.gmra.mxu1 %vm76_vm1, %v233_v25 }
  0x14   :  { %189 = vmatprep.mubr.f32.mxu0 %v1677_v3  ;;  %354 = vmatprep.mubr.f32.mxu1 %v1677_v3 }
  0x15   :  { %453 = vmatprep.subr.mxu0 %v1834_v26  ;;  %584 = vmatprep.subr.mxu1 %v1786_v17 }
  0x16   :  { %454 = vmatpush1.msra.mxu0 %v1842_v27  ;;  %585 = vmatpush1.msra.mxu1 %v1794_v18 }
  0x17   :  { %1529 = vmatmul.mubr.msk.f32.gmra.mxu0 %vm76_vm1, %v56_v28  ;;  %1537 = vmatmul.mubr.msk.f32.gmra.mxu1 %vm76_vm1, %v234_v29 }
  0x18   :  { %195 = vmatprep.mubr.f32.mxu0 %v1677_v3  ;;  %360 = vmatprep.mubr.f32.mxu1 %v1677_v3 }
  0x19   :  { %455 = vmatprep.subr.mxu0 %v1858_v30  ;;  %586 = vmatprep.subr.mxu1 %v1810_v21 }
  0x1a   :  { %456 = vmatpush1.msra.mxu0 %v1866_v31  ;;  %587 = vmatpush1.msra.mxu1 %v1818_v22 }
  0x1b   :  { %1530 = vmatmul.mubr.msk.f32.gmra.mxu0 %vm76_vm1, %v57_v32  ;;  %1538 = vmatmul.mubr.msk.f32.gmra.mxu1 %vm76_vm1, %v235_v33 }
  0x1c   :  { %201 = vmatprep.mubr.f32.mxu0 %v1677_v3  ;;  %366 = vmatprep.mubr.f32.mxu1 %v1677_v3 }
  0x1d   :  { %457 = vmatprep.subr.mxu0 %v1882_v34  ;;  %588 = vmatprep.subr.mxu1 %v1834_v26 }
  0x1e   :  { %458 = vmatpush1.msra.mxu0 %v1890_v35  ;;  %589 = vmatpush1.msra.mxu1 %v1842_v27 }
  0x1f   :  { %1531 = vmatmul.mubr.msk.f32.gmra.mxu0 %vm76_vm1, %v58_v36  ;;  %1539 = vmatmul.mubr.msk.f32.gmra.mxu1 %vm76_vm1, %v236_v37 }
  0x20   :  { %207 = vmatprep.mubr.f32.mxu0 %v1677_v3  ;;  %372 = vmatprep.mubr.f32.mxu1 %v1677_v3 }
  0x21   :  { %459 = vmatprep.subr.mxu0 %v1906_v38  ;;  %590 = vmatprep.subr.mxu1 %v1858_v30 }
  0x22   :  { %460 = vmatpush1.msra.mxu0 %v1914_v39  ;;  %591 = vmatpush1.msra.mxu1 %v1866_v31 }
  0x23   :  { %1532 = vmatmul.mubr.msk.f32.gmra.mxu0 %vm76_vm1, %v59_v40  ;;  %1540 = vmatmul.mubr.msk.f32.gmra.mxu1 %vm76_vm1, %v237_v41 }
  0x24   :  { %493 = vmatprep.mubr.f32.mxu0 %v1677_v3  ;;  %592 = vmatprep.subr.mxu1 %v1882_v34 }
  0x25   :  { %628 = vmatprep.mubr.f32.mxu1 %v1677_v3  ;;  %593 = vmatpush1.msra.mxu1 %v1890_v35 }
  0x26   :  { %714 = vmatprep.subr.mxu0 %v1753_v11  ;;  %594 = vmatprep.subr.mxu1 %v1906_v38 }
  0x27   :  { %1541 = vmatmul.mubr.msk.f32.vlgmr.msra.gmra.mxu0 %vm49_vm0, %v424_v42  ;;  %595 = vmatpush1.msra.mxu1 %v1914_v39 }
  0x28   :  { %715 = vmatpush1.msra.mxu0 %v1758_v12  ;;  %762 = vmatprep.mubr.f32.mxu0 %v1677_v3 }
  0x29   :  { %716 = vmatprep.subr.mxu0 %v1765_v13  ;;  %848 = vmatprep.subr.mxu1 %v1753_v11 }
  0x2a   :  { %717 = vmatpush1.msra.mxu0 %v1780_v16 }
  0x2b   :  { %718 = vmatprep.subr.mxu0 %v1786_v17 }
  0x2c   :  { %719 = vmatpush1.msra.mxu0 %v1794_v18 }
  0x2d   :  { %720 = vmatprep.subr.mxu0 %v1810_v21 }
  0x2e   :  { %721 = vmatpush1.msra.mxu0 %v1818_v22 }
  0x2f   :  { %722 = vmatprep.subr.mxu0 %v1834_v26 }
  0x30   :  { %723 = vmatpush1.msra.mxu0 %v1842_v27 }
  0x31   :  { %724 = vmatprep.subr.mxu0 %v1858_v30 }
  0x32   :  { %725 = vmatpush1.msra.mxu0 %v1866_v31 }
  0x33   :  { %726 = vmatprep.subr.mxu0 %v1882_v34 }
  0x34   :  { %727 = vmatpush1.msra.mxu0 %v1890_v35 }
  0x35   :  { %728 = vmatprep.subr.mxu0 %v1906_v38 }
  0x36   :  { %729 = vmatpush1.msra.mxu0 %v1914_v39 }
  0x37   :  { %980 = vmatprep.subr.mxu0 %v1753_v11 }
  0xc6   :  { %v167_v47 = vpop.f32.mrf.mxu0 }
  0xc7   :  { %v332_v48 = vpop.f32.mrf.mxu1 }
  0xc8   :  { %v1960_v50 = vpop.f32.mrf.mxu0 }
  0xc9   :  { %v334_v51 = vpop.f32.mrf.mxu1 }
  0xca   :  { %v173_v53 = vpop.f32.mrf.mxu0 }
  0xcb   :  { %v338_v54 = vpop.f32.mrf.mxu1  ;;  %v174_v56 = vadd.f32 %v173_v53, %v69_v52 }
  0xcc   :  { %v175_v57 = vpop.f32.mrf.mxu0 }
  0xcd   :  { %v340_v58 = vpop.f32.mrf.mxu1  ;;  %v176_v59 = vadd.f32 %v175_v57, %v73_v55 }
  0xcf   :  { %v179_v60 = vpop.f32.mrf.mxu0  ;;  %v344_v61 = vpop.f32.mrf.mxu1 }
  0xd0   :  { %v180_v62 = vadd.f32 %v179_v60, %v69_v52 }
  0xd1   :  { %v181_v63 = vpop.f32.mrf.mxu0  ;;  %v346_v0 = vpop.f32.mrf.mxu1 }
  0xd2   :  { %v182_v1 = vadd.f32 %v181_v63, %v73_v55 }
  0xd3   :  { %v185_v2 = vpop.f32.mrf.mxu0  ;;  %v350_v4 = vpop.f32.mrf.mxu1 }
  0xd4   :  { %v186_v5 = vadd.f32 %v185_v2, %v69_v52 }
  0xd5   :  { %v187_v6 = vpop.f32.mrf.mxu0  ;;  %v352_v7 = vpop.f32.mrf.mxu1 }
  0xd6   :  { %v188_v8 = vadd.f32 %v187_v6, %v73_v55 }
  0xd7   :  { %v191_v9 = vpop.f32.mrf.mxu0  ;;  %v356_v10 = vpop.f32.mrf.mxu1 }
  0xd8   :  { %v192_v14 = vadd.f32 %v191_v9, %v69_v52  ;;  %v1962_v15 = vadd.f32 %v356_v10, %v186_v5 }
  0xd9   :  { %v193_v19 = vpop.f32.mrf.mxu0  ;;  %v358_v20 = vpop.f32.mrf.mxu1 }
  0xda   :  { %v194_v23 = vadd.f32 %v193_v19, %v73_v55  ;;  %v1964_v24 = vadd.f32 %v358_v20, %v188_v8  ;;  %v1966_v25 = vadd.f32 %v350_v4, %v192_v14 }
  0xdb   :  { %v197_v28 = vpop.f32.mrf.mxu0  ;;  %v362_v29 = vpop.f32.mrf.mxu1 }
  0xdc   :  { %v198_v32 = vadd.f32 %v197_v28, %v69_v52  ;;  %v1968_v33 = vadd.f32 %v362_v29, %v180_v62  ;;  %v1970_v36 = vadd.f32 %v352_v7, %v194_v23 }
  0xdd   :  { %v199_v37 = vpop.f32.mrf.mxu0  ;;  %v364_v40 = vpop.f32.mrf.mxu1 }
  0xde   :  { %v200_v41 = vadd.f32 %v199_v37, %v73_v55  ;;  %v1972_v42 = vadd.f32 %v364_v40, %v182_v1  ;;  %v1974_v43 = vadd.f32 %v344_v61, %v198_v32  ;;  %v168_v1 = vadd.f32 %v167_v47, %v69_v52  ;;  %v518_v37 = vpop.permute.xlu0 %517 }
  0xdf   :  { %v203_v44 = vpop.f32.mrf.mxu0  ;;  %v368_v45 = vpop.f32.mrf.mxu1 }
  0xe0   :  { %v204_v46 = vadd.f32 %v203_v44, %v69_v52  ;;  %v1976_v49 = vadd.f32 %v368_v45, %v174_v56  ;;  %v1978_v53 = vadd.f32 %v346_v0, %v200_v41 }
  0xe1   :  { %v205_v57 = vpop.f32.mrf.mxu0  ;;  %v370_v60 = vpop.f32.mrf.mxu1 }
  0xe2   :  { %v206_v62 = vadd.f32 %v205_v57, %v73_v55  ;;  %v1980_v63 = vadd.f32 %v370_v60, %v176_v59  ;;  %v1982_v2 = vadd.f32 %v338_v54, %v204_v46  ;;  %v170_v54 = vadd.f32 %v1960_v50, %v73_v55 }
  0xe3   :  { %v209_v4 = vpop.f32.mrf.mxu0  ;;  %v374_v5 = vpop.f32.mrf.mxu1 }
  0xe4   :  { %v210_v6 = vadd.f32 %v209_v4, %v69_v52  ;;  %v1984_v61 = vadd.f32 %v340_v58, %v206_v62  ;;  %v422_v8 = vadd.f32 %v374_v5, %v168_v1 }
  0xe5   :  { %v211_v7 = vpop.f32.mrf.mxu0  ;;  %v376_v59 = vpop.f32.mrf.mxu1 }
  0xe6   :  { %v212_v9 = vadd.f32 %v211_v7, %v73_v55  ;;  %v1986_v56 = vadd.f32 %v332_v48, %v210_v6  ;;  %v423_v23 = vadd.f32 %v376_v59, %v170_v54 }
  0xe7   :  { %v495_v0 = vpop.f32.mrf.mxu0 }
  0xe8   :  { %v500_v10 = vadd.f32 %v495_v0, %v422_v8  ;;  %v1988_v14 = vadd.f32 %v334_v51, %v212_v9 }
  0xe9   :  { %v497_v20 = vpop.f32.mrf.mxu0 }
  0xea   :  { %v1542_v19 = vmul.f32 -1.442695, %v500_v10  ;;  %v501_v47 = vadd.f32 %v497_v20, %v423_v23 }
  0xec   :  { %1581 = vpow2.f32 %v1542_v19  ;;  %v1543_v32 = vmul.f32 -1.442695, %v501_v47 }
  0xed   :  { %1583 = vtanh.f32 %v501_v47 }
  0xf9   :  { %v1582_v52 = vpop.eup %1581 }
  0xfa   :  { %v508_v58 = vadd.f32 1.0, %v1582_v52  ;;  %v1584_v28 = vpop.eup %1583 }
  0xfc   :  { %1585 = vrcp.f32 %v508_v58 }
  0xfd   :  { %1587 = vpow2.f32 %v1543_v32 }
 0x109   :  { %v1586_v29 = vpop.eup %1585 }
 0x10a   :  { %v521_v48 = vmul.f32 %v1586_v29, %v1584_v28  ;;  %v1588_v51 = vpop.eup %1587  ;;  %v520_v41 = vmul.f32 %v1586_v29, %v518_v37 }
 0x10b   :  { %v509_v40 = vadd.f32 1.0, %v1588_v51 }
 0x10c   :  { %523 = vrot.lane.b32.xlu0 %v521_v48, %s1678_s2 }
 0x10d   :  { %1589 = vrcp.f32 %v509_v40 }
 0x11a   :  { %v1590_v55 = vpop.eup %1589 }
 0x17e   :  { %v524_v44 = vpop.permute.xlu0 %523 }
 0x17f   :  { %v526_v50 = vadd.f32 %v524_v44, %v520_v41 }
 0x181   :  { %1591 = vtanh.f32 %v526_v50 }
 0x18e   :  { %v1592_v45 = vpop.eup %1591 }
 0x18f   :  { %v528_v46 = vmul.f32 %v1592_v45, %v1590_v55 }
 0x191   :  { %530 = vrot.lane.b32.xlu1 %v528_v46, %s1678_s2 }
 0x195   :  { %535 = vrot.lane.b32.xlu1 %v526_v50, %s1678_s2 }
 0x203   :  { %v531_v57 = vpop.permute.xlu1 %530 }
 0x204   :  { %533 = vst.msk [vmem:[#allocation4] sm:$0xff] %vm49_vm0, %v531_v57 }
 0x205   :  { %543 = vst.msk [vmem:[%s2212_s6] sm:$0xff] %vm542_vm2, %v531_v57 }
 0x206   :  { %1544 = vst.msk [vmem:[%s2212_s6 + $0x38] sm:$0xff] %vm546_vm3, %v531_v57 }
 0x207   :  { %v536_v60 = vpop.permute.xlu1 %535 }
 0x208   :  { %538 = vst.msk [vmem:[#allocation5] sm:$0xff] %vm49_vm0, %v536_v60 }
 0x20b   :  { %v560_v62 = vld [vmem:[#allocation4] sm:$0xff] }
 0x20c   :  { %1545 = vmatmul.mubr.msk.f32.vlgmr.msra.gmra.mxu1 %vm49_vm0, %v560_v62 }
 0x20d   :  { %849 = vmatpush1.msra.mxu1 %v1758_v12  ;;  %896 = vmatprep.mubr.f32.mxu1 %v1677_v3 }
 0x20e   :  { %850 = vmatprep.subr.mxu1 %v1765_v13 }
 0x20f   :  { %v650_v4 = vld [vmem:[#allocation5] sm:$0xff]  ;;  %851 = vmatpush1.msra.mxu1 %v1780_v16 }
 0x210   :  { %652 = vrot.lane.b32.xlu0 %v650_v4, %s1678_s2  ;;  %852 = vmatprep.subr.mxu1 %v1786_v17 }
 0x211   :  { %853 = vmatpush1.msra.mxu1 %v1794_v18 }
 0x212   :  { %854 = vmatprep.subr.mxu1 %v1810_v21 }
 0x213   :  { %855 = vmatpush1.msra.mxu1 %v1818_v22 }
 0x214   :  { %856 = vmatprep.subr.mxu1 %v1834_v26 }
 0x215   :  { %857 = vmatpush1.msra.mxu1 %v1842_v27 }
 0x216   :  { %858 = vmatprep.subr.mxu1 %v1858_v30 }
 0x217   :  { %859 = vmatpush1.msra.mxu1 %v1866_v31 }
 0x218   :  { %860 = vmatprep.subr.mxu1 %v1882_v34 }
 0x219   :  { %861 = vmatpush1.msra.mxu1 %v1890_v35 }
 0x21a   :  { %862 = vmatprep.subr.mxu1 %v1906_v38 }
 0x21b   :  { %863 = vmatpush1.msra.mxu1 %v1914_v39 }
 0x21c   :  { %1112 = vmatprep.subr.mxu1 %v1753_v11 }
 0x282   :  { %v653_v23 = vpop.permute.xlu0 %652 }
 0x2cc   :  { %v630_v5 = vpop.f32.mrf.mxu1 }
 0x2cd   :  { %v635_v1 = vadd.f32 %v630_v5, %v1976_v49 }
 0x2ce   :  { %v632_v7 = vpop.f32.mrf.mxu1 }
 0x2cf   :  { %v1546_v6 = vmul.f32 -1.442695, %v635_v1  ;;  %v636_v8 = vadd.f32 %v632_v7, %v1980_v63 }
 0x2d1   :  { %1593 = vpow2.f32 %v1546_v6  ;;  %v1547_v54 = vmul.f32 -1.442695, %v636_v8 }
 0x2d2   :  { %1595 = vtanh.f32 %v636_v8 }
 0x2de   :  { %v1594_v9 = vpop.eup %1593 }
 0x2df   :  { %v643_v0 = vadd.f32 1.0, %v1594_v9  ;;  %v1596_v10 = vpop.eup %1595 }
 0x2e1   :  { %1597 = vrcp.f32 %v643_v0 }
 0x2e2   :  { %1599 = vpow2.f32 %v1547_v54 }
 0x2ee   :  { %v1598_v19 = vpop.eup %1597 }
 0x2ef   :  { %v656_v59 = vmul.f32 %v1598_v19, %v1596_v10  ;;  %v1600_v20 = vpop.eup %1599  ;;  %v655_v49 = vmul.f32 %v1598_v19, %v653_v23 }
 0x2f0   :  { %v644_v47 = vadd.f32 1.0, %v1600_v20 }
 0x2f1   :  { %658 = vrot.lane.b32.xlu1 %v656_v59, %s1678_s2 }
 0x2f2   :  { %1601 = vrcp.f32 %v644_v47 }
 0x2ff   :  { %v1602_v63 = vpop.eup %1601 }
 0x363   :  { %v659_v52 = vpop.permute.xlu1 %658 }
 0x364   :  { %v661_v58 = vadd.f32 %v659_v52, %v655_v49 }
 0x366   :  { %1603 = vtanh.f32 %v661_v58  ;;  %670 = vrot.lane.b32.xlu1 %v661_v58, %s1678_s2 }
 0x373   :  { %v1604_v28 = vpop.eup %1603 }
 0x374   :  { %v663_v29 = vmul.f32 %v1604_v28, %v1602_v63 }
 0x376   :  { %665 = vrot.lane.b32.xlu0 %v663_v29, %s1678_s2 }
 0x3d8   :  { %v671_v48 = vpop.permute.xlu1 %670 }
 0x3d9   :  { %673 = vst.msk [vmem:[#allocation5] sm:$0xff] %vm49_vm0, %v671_v48 }
 0x3e0   :  { %v784_v32 = vld [vmem:[#allocation5] sm:$0xff] }
 0x3e1   :  { %786 = vrot.lane.b32.xlu0 %v784_v32, %s1678_s2 }
 0x3e8   :  { %v666_v51 = vpop.permute.xlu0 %665 }
 0x3e9   :  { %668 = vst.msk [vmem:[#allocation4] sm:$0xff] %vm49_vm0, %v666_v51 }
 0x3ea   :  { %1548 = vst.msk [vmem:[%s2212_s6 + $0x8] sm:$0xff] %vm542_vm2, %v666_v51 }
 0x3eb   :  { %1549 = vst.msk [vmem:[%s2212_s6 + $0x30] sm:$0xff] %vm546_vm3, %v666_v51 }
 0x3f0   :  { %v694_v37 = vld [vmem:[#allocation4] sm:$0xff] }
 0x3f1   :  { %1550 = vmatmul.mubr.msk.f32.vlgmr.msra.gmra.mxu0 %vm49_vm0, %v694_v37 }
 0x3f2   :  { %981 = vmatpush1.msra.mxu0 %v1758_v12  ;;  %1028 = vmatprep.mubr.f32.mxu0 %v1677_v3 }
 0x3f3   :  { %982 = vmatprep.subr.mxu0 %v1765_v13 }
 0x3f4   :  { %983 = vmatpush1.msra.mxu0 %v1780_v16 }
 0x3f5   :  { %984 = vmatprep.subr.mxu0 %v1786_v17 }
 0x3f6   :  { %985 = vmatpush1.msra.mxu0 %v1794_v18 }
 0x3f7   :  { %986 = vmatprep.subr.mxu0 %v1810_v21 }
 0x3f8   :  { %987 = vmatpush1.msra.mxu0 %v1818_v22 }
 0x3f9   :  { %988 = vmatprep.subr.mxu0 %v1834_v26 }
 0x3fa   :  { %989 = vmatpush1.msra.mxu0 %v1842_v27 }
 0x3fb   :  { %990 = vmatprep.subr.mxu0 %v1858_v30 }
 0x3fc   :  { %991 = vmatpush1.msra.mxu0 %v1866_v31 }
 0x3fd   :  { %992 = vmatprep.subr.mxu0 %v1882_v34 }
 0x3fe   :  { %993 = vmatpush1.msra.mxu0 %v1890_v35 }
 0x3ff   :  { %994 = vmatprep.subr.mxu0 %v1906_v38 }
 0x400   :  { %995 = vmatpush1.msra.mxu0 %v1914_v39 }
 0x401   :  { %1244 = vmatprep.subr.mxu0 %v1753_v11 }
 0x453   :  { %v787_v1 = vpop.permute.xlu0 %786 }
 0x4b1   :  { %v764_v40 = vpop.f32.mrf.mxu0 }
 0x4b2   :  { %v769_v41 = vadd.f32 %v764_v40, %v1968_v33 }
 0x4b3   :  { %v766_v50 = vpop.f32.mrf.mxu0 }
 0x4b4   :  { %v1551_v44 = vmul.f32 -1.442695, %v769_v41  ;;  %v770_v55 = vadd.f32 %v766_v50, %v1972_v42 }
 0x4b6   :  { %1605 = vpow2.f32 %v1551_v44  ;;  %v1552_v4 = vmul.f32 -1.442695, %v770_v55 }
 0x4b7   :  { %1607 = vtanh.f32 %v770_v55 }
 0x4c3   :  { %v1606_v45 = vpop.eup %1605 }
 0x4c4   :  { %v777_v46 = vadd.f32 1.0, %v1606_v45  ;;  %v1608_v57 = vpop.eup %1607 }
 0x4c6   :  { %1609 = vrcp.f32 %v777_v46 }
 0x4c7   :  { %1611 = vpow2.f32 %v1552_v4 }
 0x4d3   :  { %v1610_v60 = vpop.eup %1609 }
 0x4d4   :  { %v790_v62 = vmul.f32 %v1610_v60, %v1608_v57  ;;  %v1612_v5 = vpop.eup %1611  ;;  %v789_v33 = vmul.f32 %v1610_v60, %v787_v1 }
 0x4d5   :  { %v778_v6 = vadd.f32 1.0, %v1612_v5 }
 0x4d6   :  { %792 = vrot.lane.b32.xlu1 %v790_v62, %s1678_s2 }
 0x4d7   :  { %1613 = vrcp.f32 %v778_v6 }
 0x4e4   :  { %v1614_v42 = vpop.eup %1613 }
 0x548   :  { %v793_v7 = vpop.permute.xlu1 %792 }
 0x549   :  { %v795_v8 = vadd.f32 %v793_v7, %v789_v33 }
 0x54b   :  { %1615 = vtanh.f32 %v795_v8  ;;  %804 = vrot.lane.b32.xlu1 %v795_v8, %s1678_s2 }
 0x558   :  { %v1616_v9 = vpop.eup %1615 }
 0x559   :  { %v797_v0 = vmul.f32 %v1616_v9, %v1614_v42 }
 0x55b   :  { %799 = vrot.lane.b32.xlu0 %v797_v0, %s1678_s2 }
 0x5bd   :  { %v805_v10 = vpop.permute.xlu1 %804 }
 0x5be   :  { %807 = vst.msk [vmem:[#allocation5] sm:$0xff] %vm49_vm0, %v805_v10 }
 0x5c5   :  { %v918_v19 = vld [vmem:[#allocation5] sm:$0xff] }
 0x5c6   :  { %920 = vrot.lane.b32.xlu0 %v918_v19, %s1678_s2 }
 0x5cd   :  { %v800_v59 = vpop.permute.xlu0 %799 }
 0x5ce   :  { %802 = vst.msk [vmem:[#allocation4] sm:$0xff] %vm49_vm0, %v800_v59 }
 0x5cf   :  { %1553 = vst.msk [vmem:[%s2212_s6 + $0x10] sm:$0xff] %vm542_vm2, %v800_v59 }
 0x5d0   :  { %1554 = vst.msk [vmem:[%s2212_s6 + $0x28] sm:$0xff] %vm546_vm3, %v800_v59 }
 0x5d5   :  { %v828_v54 = vld [vmem:[#allocation4] sm:$0xff] }
 0x5d6   :  { %1555 = vmatmul.mubr.msk.f32.vlgmr.msra.gmra.mxu1 %vm49_vm0, %v828_v54 }
 0x5d7   :  { %1113 = vmatpush1.msra.mxu1 %v1758_v12  ;;  %1160 = vmatprep.mubr.f32.mxu1 %v1677_v3 }
 0x5d8   :  { %1114 = vmatprep.subr.mxu1 %v1765_v13 }
 0x5d9   :  { %1115 = vmatpush1.msra.mxu1 %v1780_v16 }
 0x5da   :  { %1116 = vmatprep.subr.mxu1 %v1786_v17 }
 0x5db   :  { %1117 = vmatpush1.msra.mxu1 %v1794_v18 }
 0x5dc   :  { %1118 = vmatprep.subr.mxu1 %v1810_v21 }
 0x5dd   :  { %1119 = vmatpush1.msra.mxu1 %v1818_v22 }
 0x5de   :  { %1120 = vmatprep.subr.mxu1 %v1834_v26 }
 0x5df   :  { %1121 = vmatpush1.msra.mxu1 %v1842_v27 }
 0x5e0   :  { %1122 = vmatprep.subr.mxu1 %v1858_v30 }
 0x5e1   :  { %1123 = vmatpush1.msra.mxu1 %v1866_v31 }
 0x5e2   :  { %1124 = vmatprep.subr.mxu1 %v1882_v34 }
 0x5e3   :  { %1125 = vmatpush1.msra.mxu1 %v1890_v35 }
 0x5e4   :  { %1126 = vmatprep.subr.mxu1 %v1906_v38 }
 0x5e5   :  { %1127 = vmatpush1.msra.mxu1 %v1914_v39 }
 0x5e6   :  { %1376 = vmatprep.subr.mxu1 %v1753_v11 }
 0x638   :  { %v921_v51 = vpop.permute.xlu0 %920 }
 0x696   :  { %v898_v20 = vpop.f32.mrf.mxu1 }
 0x697   :  { %v903_v23 = vadd.f32 %v898_v20, %v1962_v15 }
 0x698   :  { %v900_v49 = vpop.f32.mrf.mxu1 }
 0x699   :  { %v1556_v47 = vmul.f32 -1.442695, %v903_v23  ;;  %v904_v52 = vadd.f32 %v900_v49, %v1964_v24 }
 0x69b   :  { %1617 = vpow2.f32 %v1556_v47  ;;  %v1557_v32 = vmul.f32 -1.442695, %v904_v52 }
 0x69c   :  { %1619 = vtanh.f32 %v904_v52 }
 0x6a8   :  { %v1618_v58 = vpop.eup %1617 }
 0x6a9   :  { %v911_v63 = vadd.f32 1.0, %v1618_v58  ;;  %v1620_v28 = vpop.eup %1619 }
 0x6ab   :  { %1621 = vrcp.f32 %v911_v63 }
 0x6ac   :  { %1623 = vpow2.f32 %v1557_v32 }
 0x6b8   :  { %v1622_v29 = vpop.eup %1621 }
 0x6b9   :  { %v924_v48 = vmul.f32 %v1622_v29, %v1620_v28  ;;  %v1624_v11 = vpop.eup %1623  ;;  %v923_v15 = vmul.f32 %v1622_v29, %v921_v51 }
 0x6ba   :  { %v912_v37 = vadd.f32 1.0, %v1624_v11 }
 0x6bb   :  { %926 = vrot.lane.b32.xlu1 %v924_v48, %s1678_s2 }
 0x6bc   :  { %1625 = vrcp.f32 %v912_v37 }
 0x6c9   :  { %v1626_v24 = vpop.eup %1625 }
 0x72d   :  { %v927_v40 = vpop.permute.xlu1 %926 }
 0x72e   :  { %v929_v41 = vadd.f32 %v927_v40, %v923_v15 }
 0x730   :  { %1627 = vtanh.f32 %v929_v41  ;;  %938 = vrot.lane.b32.xlu1 %v929_v41, %s1678_s2 }
 0x73d   :  { %v1628_v44 = vpop.eup %1627 }
 0x73e   :  { %v931_v50 = vmul.f32 %v1628_v44, %v1626_v24 }
 0x740   :  { %933 = vrot.lane.b32.xlu0 %v931_v50, %s1678_s2 }
 0x7a2   :  { %v939_v55 = vpop.permute.xlu1 %938 }
 0x7a3   :  { %941 = vst.msk [vmem:[#allocation5] sm:$0xff] %vm49_vm0, %v939_v55 }
 0x7aa   :  { %v1050_v45 = vld [vmem:[#allocation5] sm:$0xff] }
 0x7ab   :  { %1052 = vrot.lane.b32.xlu0 %v1050_v45, %s1678_s2 }
 0x7b2   :  { %v934_v46 = vpop.permute.xlu0 %933 }
 0x7b3   :  { %936 = vst.msk [vmem:[#allocation4] sm:$0xff] %vm49_vm0, %v934_v46 }
 0x7b4   :  { %1558 = vst.msk [vmem:[%s2212_s6 + $0x18] sm:$0xff] %vm542_vm2, %v934_v46 }
 0x7b5   :  { %1559 = vst.msk [vmem:[%s2212_s6 + $0x20] sm:$0xff] %vm546_vm3, %v934_v46 }
 0x7ba   :  { %v960_v57 = vld [vmem:[#allocation4] sm:$0xff] }
 0x7bb   :  { %1560 = vmatmul.mubr.msk.f32.vlgmr.msra.gmra.mxu0 %vm49_vm0, %v960_v57 }
 0x7bc   :  { %1245 = vmatpush1.msra.mxu0 %v1758_v12  ;;  %1292 = vmatprep.mubr.f32.mxu0 %v1677_v3 }
 0x7bd   :  { %1246 = vmatprep.subr.mxu0 %v1765_v13 }
 0x7be   :  { %1247 = vmatpush1.msra.mxu0 %v1780_v16 }
 0x7bf   :  { %1248 = vmatprep.subr.mxu0 %v1786_v17 }
 0x7c0   :  { %1249 = vmatpush1.msra.mxu0 %v1794_v18 }
 0x7c1   :  { %1250 = vmatprep.subr.mxu0 %v1810_v21 }
 0x7c2   :  { %1251 = vmatpush1.msra.mxu0 %v1818_v22 }
 0x7c3   :  { %1252 = vmatprep.subr.mxu0 %v1834_v26 }
 0x7c4   :  { %1253 = vmatpush1.msra.mxu0 %v1842_v27 }
 0x7c5   :  { %1254 = vmatprep.subr.mxu0 %v1858_v30 }
 0x7c6   :  { %1255 = vmatpush1.msra.mxu0 %v1866_v31 }
 0x7c7   :  { %1256 = vmatprep.subr.mxu0 %v1882_v34 }
 0x7c8   :  { %1257 = vmatpush1.msra.mxu0 %v1890_v35 }
 0x7c9   :  { %1258 = vmatprep.subr.mxu0 %v1906_v38 }
 0x7ca   :  { %1259 = vmatpush1.msra.mxu0 %v1914_v39 }
 0x81d   :  { %v1053_v10 = vpop.permute.xlu0 %1052 }
 0x87b   :  { %v1030_v60 = vpop.f32.mrf.mxu0 }
 0x87c   :  { %v1035_v62 = vadd.f32 %v1030_v60, %v1966_v25 }
 0x87d   :  { %v1032_v5 = vpop.f32.mrf.mxu0 }
 0x87e   :  { %v1561_v4 = vmul.f32 -1.442695, %v1035_v62  ;;  %v1036_v1 = vadd.f32 %v1032_v5, %v1970_v36 }
 0x880   :  { %1629 = vpow2.f32 %v1561_v4  ;;  %v1562_v9 = vmul.f32 -1.442695, %v1036_v1 }
 0x881   :  { %1631 = vtanh.f32 %v1036_v1 }
 0x88d   :  { %v1630_v6 = vpop.eup %1629 }
 0x88e   :  { %v1043_v33 = vadd.f32 1.0, %v1630_v6  ;;  %v1632_v7 = vpop.eup %1631 }
 0x890   :  { %1633 = vrcp.f32 %v1043_v33 }
 0x891   :  { %1635 = vpow2.f32 %v1562_v9 }
 0x89d   :  { %v1634_v8 = vpop.eup %1633 }
 0x89e   :  { %v1056_v42 = vmul.f32 %v1634_v8, %v1632_v7  ;;  %v1636_v0 = vpop.eup %1635  ;;  %v1055_v25 = vmul.f32 %v1634_v8, %v1053_v10 }
 0x89f   :  { %v1044_v19 = vadd.f32 1.0, %v1636_v0 }
 0x8a0   :  { %1058 = vrot.lane.b32.xlu1 %v1056_v42, %s1678_s2 }
 0x8a1   :  { %1637 = vrcp.f32 %v1044_v19 }
 0x8ae   :  { %v1638_v36 = vpop.eup %1637 }
 0x912   :  { %v1059_v59 = vpop.permute.xlu1 %1058 }
 0x913   :  { %v1061_v54 = vadd.f32 %v1059_v59, %v1055_v25 }
 0x915   :  { %1639 = vtanh.f32 %v1061_v54  ;;  %1070 = vrot.lane.b32.xlu1 %v1061_v54, %s1678_s2 }
 0x922   :  { %v1640_v20 = vpop.eup %1639 }
 0x923   :  { %v1063_v23 = vmul.f32 %v1640_v20, %v1638_v36 }
 0x925   :  { %1065 = vrot.lane.b32.xlu0 %v1063_v23, %s1678_s2 }
 0x987   :  { %v1071_v47 = vpop.permute.xlu1 %1070 }
 0x988   :  { %1073 = vst.msk [vmem:[#allocation5] sm:$0xff] %vm49_vm0, %v1071_v47 }
 0x98f   :  { %v1182_v49 = vld [vmem:[#allocation5] sm:$0xff] }
 0x990   :  { %1184 = vrot.lane.b32.xlu0 %v1182_v49, %s1678_s2 }
 0x997   :  { %v1066_v52 = vpop.permute.xlu0 %1065 }
 0x998   :  { %1068 = vst.msk [vmem:[#allocation4] sm:$0xff] %vm49_vm0, %v1066_v52 }
 0x999   :  { %1563 = vst.msk [vmem:[%s2212_s6 + $0x20] sm:$0xff] %vm542_vm2, %v1066_v52 }
 0x99a   :  { %1564 = vst.msk [vmem:[%s2212_s6 + $0x18] sm:$0xff] %vm546_vm3, %v1066_v52 }
 0x99f   :  { %v1092_v58 = vld [vmem:[#allocation4] sm:$0xff] }
 0x9a0   :  { %1565 = vmatmul.mubr.msk.f32.vlgmr.msra.gmra.mxu1 %vm49_vm0, %v1092_v58 }
 0x9a1   :  { %1377 = vmatpush1.msra.mxu1 %v1758_v12  ;;  %1424 = vmatprep.mubr.f32.mxu1 %v1677_v3 }
 0x9a2   :  { %1378 = vmatprep.subr.mxu1 %v1765_v13 }
 0x9a3   :  { %1379 = vmatpush1.msra.mxu1 %v1780_v16 }
 0x9a4   :  { %1380 = vmatprep.subr.mxu1 %v1786_v17 }
 0x9a5   :  { %1381 = vmatpush1.msra.mxu1 %v1794_v18 }
 0x9a6   :  { %1382 = vmatprep.subr.mxu1 %v1810_v21 }
 0x9a7   :  { %1383 = vmatpush1.msra.mxu1 %v1818_v22 }
 0x9a8   :  { %1384 = vmatprep.subr.mxu1 %v1834_v26 }
 0x9a9   :  { %1385 = vmatpush1.msra.mxu1 %v1842_v27 }
 0x9aa   :  { %1386 = vmatprep.subr.mxu1 %v1858_v30 }
 0x9ab   :  { %1387 = vmatpush1.msra.mxu1 %v1866_v31 }
 0x9ac   :  { %1388 = vmatprep.subr.mxu1 %v1882_v34 }
 0x9ad   :  { %1389 = vmatpush1.msra.mxu1 %v1890_v35 }
 0x9ae   :  { %1390 = vmatprep.subr.mxu1 %v1906_v38 }
 0x9af   :  { %1391 = vmatpush1.msra.mxu1 %v1914_v39 }
 0xa02   :  { %v1185_v34 = vpop.permute.xlu0 %1184 }
 0xa60   :  { %v1162_v3 = vpop.f32.mrf.mxu1 }
 0xa61   :  { %v1167_v12 = vadd.f32 %v1162_v3, %v1974_v43 }
 0xa62   :  { %v1164_v16 = vpop.f32.mrf.mxu1 }
 0xa63   :  { %v1566_v13 = vmul.f32 -1.442695, %v1167_v12  ;;  %v1168_v17 = vadd.f32 %v1164_v16, %v1978_v53 }
 0xa65   :  { %1641 = vpow2.f32 %v1566_v13  ;;  %v1567_v30 = vmul.f32 -1.442695, %v1168_v17 }
 0xa66   :  { %1643 = vtanh.f32 %v1168_v17 }
 0xa72   :  { %v1642_v18 = vpop.eup %1641 }
 0xa73   :  { %v1175_v21 = vadd.f32 1.0, %v1642_v18  ;;  %v1644_v22 = vpop.eup %1643 }
 0xa75   :  { %1645 = vrcp.f32 %v1175_v21 }
 0xa76   :  { %1647 = vpow2.f32 %v1567_v30 }
 0xa82   :  { %v1646_v26 = vpop.eup %1645 }
 0xa83   :  { %v1188_v27 = vmul.f32 %v1646_v26, %v1644_v22  ;;  %v1648_v31 = vpop.eup %1647  ;;  %v1187_v38 = vmul.f32 %v1646_v26, %v1185_v34 }
 0xa84   :  { %v1176_v35 = vadd.f32 1.0, %v1648_v31 }
 0xa85   :  { %1190 = vrot.lane.b32.xlu1 %v1188_v27, %s1678_s2 }
 0xa86   :  { %1649 = vrcp.f32 %v1176_v35 }
 0xa93   :  { %v1650_v53 = vpop.eup %1649 }
 0xaf7   :  { %v1191_v39 = vpop.permute.xlu1 %1190 }
 0xaf8   :  { %v1193_v43 = vadd.f32 %v1191_v39, %v1187_v38 }
 0xafa   :  { %1651 = vtanh.f32 %v1193_v43  ;;  %1202 = vrot.lane.b32.xlu1 %v1193_v43, %s1678_s2 }
 0xb07   :  { %v1652_v63 = vpop.eup %1651 }
 0xb08   :  { %v1195_v28 = vmul.f32 %v1652_v63, %v1650_v53 }
 0xb0a   :  { %1197 = vrot.lane.b32.xlu0 %v1195_v28, %s1678_s2 }
 0xb6c   :  { %v1203_v29 = vpop.permute.xlu1 %1202 }
 0xb6d   :  { %1205 = vst.msk [vmem:[#allocation5] sm:$0xff] %vm49_vm0, %v1203_v29 }
 0xb74   :  { %v1314_v48 = vld [vmem:[#allocation5] sm:$0xff] }
 0xb75   :  { %1316 = vrot.lane.b32.xlu0 %v1314_v48, %s1678_s2 }
 0xb7c   :  { %v1198_v32 = vpop.permute.xlu0 %1197 }
 0xb7d   :  { %1200 = vst.msk [vmem:[#allocation4] sm:$0xff] %vm49_vm0, %v1198_v32 }
 0xb7e   :  { %1568 = vst.msk [vmem:[%s2212_s6 + $0x28] sm:$0xff] %vm542_vm2, %v1198_v32 }
 0xb7f   :  { %1569 = vst.msk [vmem:[%s2212_s6 + $0x10] sm:$0xff] %vm546_vm3, %v1198_v32 }
 0xb84   :  { %v1224_v11 = vld [vmem:[#allocation4] sm:$0xff] }
 0xb85   :  { %1570 = vmatmul.mubr.msk.f32.vlgmr.msra.gmra.mxu0 %vm49_vm0, %v1224_v11 }
 0xbe7   :  { %v1317_v60 = vpop.permute.xlu0 %1316 }
 0xc45   :  { %v1294_v51 = vpop.f32.mrf.mxu0 }
 0xc46   :  { %v1299_v37 = vadd.f32 %v1294_v51, %v1982_v2 }
 0xc47   :  { %v1296_v40 = vpop.f32.mrf.mxu0 }
 0xc48   :  { %v1571_v15 = vmul.f32 -1.442695, %v1299_v37  ;;  %v1300_v41 = vadd.f32 %v1296_v40, %v1984_v61 }
 0xc4a   :  { %1653 = vpow2.f32 %v1571_v15  ;;  %v1572_v46 = vmul.f32 -1.442695, %v1300_v41 }
 0xc4b   :  { %1655 = vtanh.f32 %v1300_v41 }
 0xc57   :  { %v1654_v24 = vpop.eup %1653 }
 0xc58   :  { %v1307_v44 = vadd.f32 1.0, %v1654_v24  ;;  %v1656_v50 = vpop.eup %1655 }
 0xc5a   :  { %1657 = vrcp.f32 %v1307_v44 }
 0xc5b   :  { %1659 = vpow2.f32 %v1572_v46 }
 0xc67   :  { %v1658_v55 = vpop.eup %1657 }
 0xc68   :  { %v1320_v45 = vmul.f32 %v1658_v55, %v1656_v50  ;;  %v1660_v57 = vpop.eup %1659  ;;  %v1319_v2 = vmul.f32 %v1658_v55, %v1317_v60 }
 0xc69   :  { %v1308_v62 = vadd.f32 1.0, %v1660_v57 }
 0xc6a   :  { %1322 = vrot.lane.b32.xlu1 %v1320_v45, %s1678_s2 }
 0xc6b   :  { %1661 = vrcp.f32 %v1308_v62 }
 0xc78   :  { %v1662_v61 = vpop.eup %1661 }
 0xcdc   :  { %v1323_v4 = vpop.permute.xlu1 %1322 }
 0xcdd   :  { %v1325_v5 = vadd.f32 %v1323_v4, %v1319_v2 }
 0xcdf   :  { %1663 = vtanh.f32 %v1325_v5  ;;  %1334 = vrot.lane.b32.xlu1 %v1325_v5, %s1678_s2 }
 0xcec   :  { %v1664_v1 = vpop.eup %1663 }
 0xced   :  { %v1327_v6 = vmul.f32 %v1664_v1, %v1662_v61 }
 0xcef   :  { %1329 = vrot.lane.b32.xlu0 %v1327_v6, %s1678_s2 }
 0xd51   :  { %v1335_v33 = vpop.permute.xlu1 %1334 }
 0xd52   :  { %1337 = vst.msk [vmem:[#allocation5] sm:$0xff] %vm49_vm0, %v1335_v33 }
 0xd59   :  { %v1446_v7 = vld [vmem:[#allocation5] sm:$0xff] }
 0xd5a   :  { %1448 = vrot.lane.b32.xlu0 %v1446_v7, %s1678_s2 }
 0xd61   :  { %v1330_v8 = vpop.permute.xlu0 %1329 }
 0xd62   :  { %1332 = vst.msk [vmem:[#allocation4] sm:$0xff] %vm49_vm0, %v1330_v8 }
 0xd63   :  { %1573 = vst.msk [vmem:[%s2212_s6 + $0x30] sm:$0xff] %vm542_vm2, %v1330_v8 }
 0xd64   :  { %1574 = vst.msk [vmem:[%s2212_s6 + $0x8] sm:$0xff] %vm546_vm3, %v1330_v8 }
 0xd69   :  { %v1356_v42 = vld [vmem:[#allocation4] sm:$0xff] }
 0xd6a   :  { %1575 = vmatmul.mubr.msk.f32.vlgmr.msra.gmra.mxu1 %vm49_vm0, %v1356_v42 }
 0xdcc   :  { %v1449_v52 = vpop.permute.xlu0 %1448 }
 0xe2a   :  { %v1426_v9 = vpop.f32.mrf.mxu1 }
 0xe2b   :  { %v1431_v0 = vadd.f32 %v1426_v9, %v1986_v56 }
 0xe2c   :  { %v1428_v19 = vpop.f32.mrf.mxu1 }
 0xe2d   :  { %v1576_v10 = vmul.f32 -1.442695, %v1431_v0  ;;  %v1432_v25 = vadd.f32 %v1428_v19, %v1988_v14 }
 0xe2f   :  { %1665 = vpow2.f32 %v1576_v10  ;;  %v1577_v47 = vmul.f32 -1.442695, %v1432_v25 }
 0xe30   :  { %1667 = vtanh.f32 %v1432_v25 }
 0xe3c   :  { %v1666_v59 = vpop.eup %1665 }
 0xe3d   :  { %v1439_v54 = vadd.f32 1.0, %v1666_v59  ;;  %v1668_v36 = vpop.eup %1667 }
 0xe3f   :  { %1669 = vrcp.f32 %v1439_v54 }
 0xe40   :  { %1671 = vpow2.f32 %v1577_v47 }
 0xe4c   :  { %v1670_v20 = vpop.eup %1669 }
 0xe4d   :  { %v1452_v23 = vmul.f32 %v1670_v20, %v1668_v36  ;;  %v1672_v49 = vpop.eup %1671  ;;  %v1451_v56 = vmul.f32 %v1670_v20, %v1449_v52 }
 0xe4e   :  { %v1440_v58 = vadd.f32 1.0, %v1672_v49 }
 0xe4f   :  { %1454 = vrot.lane.b32.xlu1 %v1452_v23, %s1678_s2 }
 0xe50   :  { %1673 = vrcp.f32 %v1440_v58 }
 0xe5d   :  { %v1674_v14 = vpop.eup %1673 }
 0xec1   :  { %v1455_v3 = vpop.permute.xlu1 %1454 }
 0xec2   :  { %v1457_v12 = vadd.f32 %v1455_v3, %v1451_v56 }
 0xec4   :  { %1675 = vtanh.f32 %v1457_v12  ;;  %1466 = vrot.lane.b32.xlu1 %v1457_v12, %s1678_s2 }
 0xed1   :  { %v1676_v13 = vpop.eup %1675 }
 0xed2   :  { %v1459_v16 = vmul.f32 %v1676_v13, %v1674_v14 }
 0xed4   :  { %1461 = vrot.lane.b32.xlu0 %v1459_v16, %s1678_s2 }
 0xf36   :  { %v1467_v17 = vpop.permute.xlu1 %1466 }
 0xf37   :  { %1469 = vst.msk [vmem:[#allocation5] sm:$0xff] %vm49_vm0, %v1467_v17 }
 0xf46   :  { %v1462_v18 = vpop.permute.xlu0 %1461 }
 0xf47   :  { %1464 = vst.msk [vmem:[#allocation4] sm:$0xff] %vm49_vm0, %v1462_v18 }
 0xf48   :  { %1578 = vst.msk [vmem:[%s2212_s6 + $0x38] sm:$0xff] %vm542_vm2, %v1462_v18 }
 0xf49   :  { %1477 = vst.msk [vmem:[%s2212_s6] sm:$0xff] %vm546_vm3, %v1462_v18 }

</bundles_post_ra>
